<compile_context>
chip_gen: v7x
topology: tpu7x:2x2x1
jax: 0.10.0
libtpu: 0.0.40
codegen_flags: <defaults>
</compile_context>

<pallas_src>
import functools
import numpy as np
import jax
import jax.numpy as jnp
from jax.experimental import pallas as pl
from jax.experimental.pallas import tpu as pltpu

_HAS_BUFFERED = hasattr(pl, "Buffered")


def _window_attn_kernel(x_ref, t1_ref, wq_ref, wkv_ref, bq_ref, bkv_ref,
                        wproj_ref, bproj_ref, bm_ref, o_ref,
                        *, num_heads, head_dim, bw, nw):
    """One grid step = bw windows.

    x_ref / t1_ref : (bw, N, C)    f32
    wq             : (C, C)        bf16 (scale already folded in; y = x @ W + b layout)
    wkv            : (C, 2C)       bf16 (k and v fused)
    bq / bkv       : (1, C)/(1,2C) f32 (scale folded into bq)
    wproj          : (C, C)        bf16
    bproj          : (1, C)        f32
    bm             : (H, nw, N, N) f32 rel-pos bias [+ mask]; nw == 1 when no mask
    o_ref          : (bw, N, C)
    """
    N = x_ref.shape[1]
    C = num_heads * head_dim
    M = bw * N

    x = x_ref[...].reshape(M, C).astype(jnp.bfloat16)
    t = t1_ref[...].reshape(M, C).astype(jnp.bfloat16)

    # Projections on the MXU (bf16 inputs, f32 accumulation). q is pre-scaled via the weights.
    q = jnp.dot(x, wq_ref[...], preferred_element_type=jnp.float32) + bq_ref[...]
    kv = jnp.dot(t, wkv_ref[...], preferred_element_type=jnp.float32) + bkv_ref[...]

    q = q.astype(jnp.bfloat16).reshape(bw, N, C)
    kv = kv.astype(jnp.bfloat16).reshape(bw, N, 2 * C)
    k = kv[:, :, :C]
    v = kv[:, :, C:]

    heads = []
    for h in range(num_heads):                 # static unroll; work inside is window-batched
        lo = h * head_dim
        # TODO(synk): per-head lane slices with head_dim < 128 may force relayouts; audit the
        # bundle dump before splitting weights per-head (that costs extra MXU passes).
        qh = q[:, :, lo:lo + head_dim]         # (bw, N, Dh)
        kh = k[:, :, lo:lo + head_dim]
        vh = v[:, :, lo:lo + head_dim]

        # q @ k^T without explicit transpose: contract on the last dim of both operands.
        attn = jnp.einsum("bnd,bmd->bnm", qh, kh,
                          preferred_element_type=jnp.float32)        # (bw, N, N) f32

        if nw == 1:
            attn = attn + bm_ref[h, 0]                               # (N, N) broadcast
        else:
            # bias+mask kept at per-window-index granularity: bw % nw == 0 and every grid
            # step starts at a global window index that is 0 mod nw (bw is a multiple of nw).
            attn = (attn.reshape(bw // nw, nw, N, N)
                    + bm_ref[h][None]).reshape(bw, N, N)

        # softmax over the last dim; divide replaced by EUP approx reciprocal.
        m = jnp.max(attn, axis=-1, keepdims=True)
        e = jnp.exp(attn - m)
        s = jnp.sum(e, axis=-1, keepdims=True)
        p = (e * pl.reciprocal(s, approx=True)).astype(jnp.bfloat16)

        heads.append(jnp.einsum("bnm,bmd->bnd", p, vh,
                                preferred_element_type=jnp.float32))  # (bw, N, Dh)

    # Concatenate heads in registers (no VMEM scratch / masked Dh-wide stores), then one big
    # output projection over all bw*N tokens.
    o = jnp.concatenate(heads, axis=-1).reshape(M, C).astype(jnp.bfloat16)
    y = jnp.dot(o, wproj_ref[...], preferred_element_type=jnp.float32) + bproj_ref[...]
    o_ref[...] = y.reshape(bw, N, C).astype(o_ref.dtype)
    # TODO(synk): attn_drop / proj_drop are rate 0.0 -> identity; dropout not implemented.
    # TODO(synk): for small C (< 128) a lane-dense (B_, N*C) out layout could help further,
    # but only if the in-kernel relayout doesn't cancel the win — measure before changing.


def _relative_position_bias(rpb_table, window_size, num_heads):
    Wh, Ww = window_size
    N = Wh * Ww
    coords = np.stack(np.meshgrid(np.arange(Wh), np.arange(Ww), indexing="ij"))
    cf = coords.reshape(2, -1)
    rel = (cf[:, :, None] - cf[:, None, :]).transpose(1, 2, 0).astype(np.int32)
    rel[:, :, 0] += Wh - 1
    rel[:, :, 1] += Ww - 1
    rel[:, :, 0] *= 2 * Ww - 1
    idx = rel.sum(-1)                                                   # (N, N)
    bias = rpb_table[idx.reshape(-1)].reshape(N, N, num_heads)
    return jnp.transpose(bias, (2, 0, 1)).astype(jnp.float32)           # (H, N, N)


def _vmem_capacity_bytes():
    """Per-generation VMEM capacity (v5e/v6e: 128 MiB, v7x: 64 MiB per TC)."""
    try:
        cap = int(pltpu.get_tpu_info().vmem_capacity_bytes)
        if cap > 0:
            return cap
    except Exception:
        pass
    return 64 * 1024 * 1024   # conservative default (v7x per-TC VMEM)


def _pick_bw(B_, N, C, num_heads, nW, budget_bytes, fixed_bytes):
    """Windows per grid step:
      * multiple of nW when a mask is present (bias+mask reshape alignment),
      * within the per-generation VMEM budget (resident weights counted as fixed cost),
      * grid = B_//bw kept >= 2 whenever possible (activation-DMA pipelining + megacore),
      * big enough to fill the MXU M-dim for the projection matmuls when possible.
    """
    step = nW if nW else 1
    # per-window working set (bytes): x/t1/out double-buffered activations, q/kv bf16 +
    # f32 matmul results, per-head attn temporaries, head concat + projection result.
    per_win = N * C * 4 * 14 + N * N * 4 * 6
    avail = max(budget_bytes - fixed_bytes, per_win)
    cap = max(step, avail // per_win)
    grid_cap = B_ // 2 if (B_ // 2) >= step else B_      # keep >= 2 grid steps when possible
    cands = [bw for bw in range(step, B_ + 1, step)
             if B_ % bw == 0 and bw <= cap and bw <= grid_cap]
    if not cands:
        legal = [bw for bw in range(step, B_ + 1, step) if B_ % bw == 0]
        cands = [min(legal)] if legal else [B_]
    big = [bw for bw in cands if bw * N >= 512]          # enough MXU rows for the projections
    return min(big) if big else max(cands)


def _resident_spec(block_shape, single_buffer):
    """BlockSpec for operands whose block index never changes.

    Single-buffered (pl.Buffered(1)) when supported: double-buffering a constant-index DMA
    only wastes VMEM.
    """
    ndim = len(block_shape)
    index_map = lambda i: (0,) * ndim
    if single_buffer and _HAS_BUFFERED:
        try:
            return pl.BlockSpec(block_shape, index_map, pipeline_mode=pl.Buffered(1))
        except TypeError:
            pass
    return pl.BlockSpec(block_shape, index_map)


def window_attention(x, t1, params, window_size, num_heads, mask=None, qk_scale=None):
    """x, t1: (B_, N, C) float32. mask: (nW, N, N) or None. Returns (B_, N, C)."""
    B_, N, C = x.shape
    head_dim = C // num_heads
    scale = qk_scale if qk_scale is not None else head_dim ** (-0.5)

    wqkv, bqkv = params["wqkv"], params["bqkv"]          # (C, 3C), (1, 3C)
    # Fold the qk scale into the q weights/bias (one-time transform; removes an M×C VPU mul
    # per grid step). k/v fused into a single (C, 2C) matmul against the T1 tokens.
    wq = (wqkv[:, :C] * scale).astype(jnp.bfloat16)
    bq = (bqkv[:, :C] * scale).astype(jnp.float32)
    wkv = wqkv[:, C:].astype(jnp.bfloat16)               # (C, 2C)
    bkv = bqkv[:, C:].astype(jnp.float32)                # (1, 2C)
    wproj = params["wproj"].astype(jnp.bfloat16)
    bproj = params["bproj"].astype(jnp.float32)

    bias = _relative_position_bias(params["rpb_table"], window_size, num_heads)  # (H, N, N)

    if mask is None:
        bm = bias[:, None]                                              # (H, 1, N, N)
        nW = None
    else:
        nW = mask.shape[0]
        assert B_ % nW == 0, "B_ must be a multiple of num_windows when a mask is given"
        # Combined bias + mask at per-window-index granularity only (NOT tiled to bw).
        bm = bias[:, None] + mask.astype(jnp.float32)[None]             # (H, nW, N, N)
    H, P = bm.shape[0], bm.shape[1]

    # Generation-aware VMEM budgeting (resident weights/bias counted as fixed cost;
    # factor 2 keeps us safe even if the single-buffer request falls back to double-buffering).
    vmem_cap = _vmem_capacity_bytes()
    budget = vmem_cap // 2
    vmem_limit = (vmem_cap * 3) // 4
    fixed_bytes = 2 * ((wq.size + wkv.size + wproj.size) * 2
                       + (bq.size + bkv.size + bproj.size) * 4
                       + bm.size * 4)

    bw = _pick_bw(B_, N, C, num_heads, nW, budget, fixed_bytes)
    assert B_ % bw == 0
    assert mask is None or bw % nW == 0

    kernel = functools.partial(_window_attn_kernel, num_heads=num_heads,
                               head_dim=head_dim, bw=bw, nw=P)

    def _run(single_buffer):
        return pl.pallas_call(
            kernel,
            out_shape=jax.ShapeDtypeStruct((B_, N, C), x.dtype),
            grid_spec=pltpu.PrefetchScalarGridSpec(
                num_scalar_prefetch=0,
                grid=(B_ // bw,),
                in_specs=[
                    pl.BlockSpec((bw, N, C), lambda i: (i, 0, 0)),        # x
                    pl.BlockSpec((bw, N, C), lambda i: (i, 0, 0)),        # T1
                    _resident_spec((C, C), single_buffer),                # Wq (scaled, bf16)
                    _resident_spec((C, 2 * C), single_buffer),            # Wkv (bf16)
                    _resident_spec((1, C), single_buffer),                # bq (scaled)
                    _resident_spec((1, 2 * C), single_buffer),            # bkv
                    _resident_spec((C, C), single_buffer),                # Wproj (bf16)
                    _resident_spec((1, C), single_buffer),                # bproj
                    _resident_spec((H, P, N, N), single_buffer),          # bias [+ mask]
                ],
                out_specs=pl.BlockSpec((bw, N, C), lambda i: (i, 0, 0)),
            ),
            compiler_params=pltpu.CompilerParams(
                dimension_semantics=("parallel",),
                vmem_limit_bytes=int(vmem_limit)),
        )(x, t1, wq, wkv, bq, bkv, wproj, bproj, bm)

    if _HAS_BUFFERED:
        try:
            return _run(True)
        except Exception:
            pass   # pipeline_mode=pl.Buffered(1) unsupported on this backend; use defaults.
    return _run(False)
    # TODO(synk): if the surrounding model runs bf16, accept bf16 x/t1 and emit bf16 out at
    # the pallas_call boundary (halves HBM traffic; biggest win on v5e).


def reference(x, t1, params, window_size, num_heads, mask=None, qk_scale=None):
    """Pure-JAX reference mirroring the PyTorch forward."""
    B_, N, C = x.shape
    H = num_heads
    Dh = C // H
    scale = qk_scale if qk_scale is not None else Dh ** (-0.5)
    wqkv, bqkv, wproj, bproj = params["wqkv"], params["bqkv"], params["wproj"], params["bproj"]

    def qkv(z):
        y = z @ wqkv + bqkv[0]
        return y.reshape(B_, N, 3, H, Dh).transpose(2, 0, 3, 1, 4)       # (3, B_, H, N, Dh)

    q = qkv(x)[0]
    kv = qkv(t1)
    k, v = kv[1], kv[2]
    q = q * scale
    attn = jnp.einsum("bhnd,bhmd->bhnm", q, k)

    bias = _relative_position_bias(params["rpb_table"], window_size, num_heads)
    attn = attn + bias[None]
    if mask is not None:
        nW = mask.shape[0]
        attn = attn.reshape(B_ // nW, nW, H, N, N) + mask[None, :, None]
        attn = attn.reshape(B_, H, N, N)
    attn = jax.nn.softmax(attn, axis=-1)
    out = jnp.einsum("bhnm,bhmd->bhnd", attn, v).transpose(0, 2, 1, 3).reshape(B_, N, C)
    return out @ wproj + bproj[0]


def init_params(key, dim, num_heads, window_size):
    Wh, Ww = window_size
    k1, k2, k3, k4, k5 = jax.random.split(key, 5)
    num_rel = (2 * Wh - 1) * (2 * Ww - 1)
    return {
        "wqkv": jax.random.normal(k1, (dim, 3 * dim), jnp.float32) * 0.05,
        "bqkv": jax.random.normal(k2, (1, 3 * dim), jnp.float32) * 0.02,
        "wproj": jax.random.normal(k3, (dim, dim), jnp.float32) * 0.05,
        "bproj": jax.random.normal(k4, (1, dim), jnp.float32) * 0.02,
        "rpb_table": jax.random.normal(k5, (num_rel, num_heads), jnp.float32) * 0.02,
    }


if __name__ == "__main__":
    dim = 32
    num_heads = 4
    window_size = (4, 4)
    N = window_size[0] * window_size[1]   # 16
    batch = 2
    nW = 4
    B_ = batch * nW                       # 8

    key = jax.random.PRNGKey(0)
    kx, kt, kp = jax.random.split(key, 3)
    x = jax.random.normal(kx, (B_, N, dim), jnp.float32)
    t1 = jax.random.normal(kt, (B_, N, dim), jnp.float32)
    params = init_params(kp, dim, num_heads, window_size)

    # Case 1: no mask.
    out = jax.block_until_ready(window_attention(x, t1, params, window_size, num_heads, mask=None))
    ref = reference(x, t1, params, window_size, num_heads, mask=None)
    np.testing.assert_allclose(np.asarray(out), np.asarray(ref), rtol=2e-2, atol=2e-2)

    # Case 2: shifted-window style additive mask (0 / -100), different per window index.
    grp = jnp.arange(N) // (N // 2)
    blocked = jnp.where(grp[:, None] == grp[None, :], 0.0, -100.0).astype(jnp.float32)
    mask = jnp.stack([jnp.zeros((N, N), jnp.float32), blocked,
                      jnp.zeros((N, N), jnp.float32), blocked])          # (nW, N, N)
    out_m = jax.block_until_ready(
        window_attention(x, t1, params, window_size, num_heads, mask=mask))
    ref_m = reference(x, t1, params, window_size, num_heads, mask=mask)
    np.testing.assert_allclose(np.asarray(out_m), np.asarray(ref_m), rtol=2e-2, atol=2e-2)

    print("KERNEL_OK")
</pallas_src>

<mosaic_0001>
module attributes {stable_mosaic.version = 11 : i64} {
  func.func @_window_attn_kernel(%arg0: i32, %arg1: memref<4x16x32xf32, #tpu.memory_space<vmem>>, %arg2: memref<4x16x32xf32, #tpu.memory_space<vmem>>, %arg3: memref<32x32xbf16, #tpu.memory_space<vmem>>, %arg4: memref<32x64xbf16, #tpu.memory_space<vmem>>, %arg5: memref<1x32xf32, #tpu.memory_space<vmem>>, %arg6: memref<1x64xf32, #tpu.memory_space<vmem>>, %arg7: memref<32x32xbf16, #tpu.memory_space<vmem>>, %arg8: memref<1x32xf32, #tpu.memory_space<vmem>>, %arg9: memref<4x1x16x16xf32, #tpu.memory_space<vmem>>, %arg10: memref<4x16x32xf32, #tpu.memory_space<vmem>>) attributes {dimension_semantics = [#tpu.dimension_semantics<parallel>], iteration_bounds = array<i64: 2>, scalar_prefetch = 0 : i64, scratch_operands = 0 : i64, tpu.core_type = #tpu.core_type<tc>, window_params = [{transform_indices = @transform_0, window_bounds = array<i64: 4, 16, 32>}, {transform_indices = @transform_1, window_bounds = array<i64: 4, 16, 32>}, {pipeline_mode = #tpu.pipeline_mode<synchronous>, transform_indices = @transform_2, window_bounds = array<i64: 32, 32>}, {pipeline_mode = #tpu.pipeline_mode<synchronous>, transform_indices = @transform_3, window_bounds = array<i64: 32, 64>}, {pipeline_mode = #tpu.pipeline_mode<synchronous>, transform_indices = @transform_4, window_bounds = array<i64: 1, 32>}, {pipeline_mode = #tpu.pipeline_mode<synchronous>, transform_indices = @transform_5, window_bounds = array<i64: 1, 64>}, {pipeline_mode = #tpu.pipeline_mode<synchronous>, transform_indices = @transform_6, window_bounds = array<i64: 32, 32>}, {pipeline_mode = #tpu.pipeline_mode<synchronous>, transform_indices = @transform_7, window_bounds = array<i64: 1, 32>}, {pipeline_mode = #tpu.pipeline_mode<synchronous>, transform_indices = @transform_8, window_bounds = array<i64: 4, 1, 16, 16>}, {transform_indices = @transform_9, window_bounds = array<i64: 4, 16, 32>}]} {
    %c0 = arith.constant 0 : index
    %c0_0 = arith.constant 0 : index
    %c0_1 = arith.constant 0 : index
    %0 = vector.load %arg1[%c0, %c0_0, %c0_1] : memref<4x16x32xf32, #tpu.memory_space<vmem>>, vector<4x16x32xf32>
    %1 = vector.shape_cast %0 : vector<4x16x32xf32> to vector<64x32xf32>
    %2 = arith.truncf %1 : vector<64x32xf32> to vector<64x32xbf16>
    %c0_2 = arith.constant 0 : index
    %c0_3 = arith.constant 0 : index
    %c0_4 = arith.constant 0 : index
    %3 = vector.load %arg2[%c0_2, %c0_3, %c0_4] : memref<4x16x32xf32, #tpu.memory_space<vmem>>, vector<4x16x32xf32>
    %4 = vector.shape_cast %3 : vector<4x16x32xf32> to vector<64x32xf32>
    %5 = arith.truncf %4 : vector<64x32xf32> to vector<64x32xbf16>
    %c0_5 = arith.constant 0 : index
    %c0_6 = arith.constant 0 : index
    %6 = vector.load %arg3[%c0_5, %c0_6] : memref<32x32xbf16, #tpu.memory_space<vmem>>, vector<32x32xbf16>
    %cst = arith.constant dense<0.000000e+00> : vector<64x32xf32>
    %7 = tpu.matmul %2, %6, %cst {dimension_numbers = #tpu.dot_dimension_numbers<[1], [0], [0], [1], [0, 0, 1, 1], [], []>} : vector<64x32xbf16>, vector<32x32xbf16>, vector<64x32xf32> -> vector<64x32xf32>
    %c0_7 = arith.constant 0 : index
    %c0_8 = arith.constant 0 : index
    %8 = vector.load %arg5[%c0_7, %c0_8] : memref<1x32xf32, #tpu.memory_space<vmem>>, vector<1x32xf32>
    %9 = vector.broadcast %8 : vector<1x32xf32> to vector<64x32xf32>
    %10 = arith.addf %7, %9 : vector<64x32xf32>
    %c0_9 = arith.constant 0 : index
    %c0_10 = arith.constant 0 : index
    %11 = vector.load %arg4[%c0_9, %c0_10] : memref<32x64xbf16, #tpu.memory_space<vmem>>, vector<32x64xbf16>
    %cst_11 = arith.constant dense<0.000000e+00> : vector<64x64xf32>
    %12 = tpu.matmul %5, %11, %cst_11 {dimension_numbers = #tpu.dot_dimension_numbers<[1], [0], [0], [1], [0, 0, 1, 1], [], []>} : vector<64x32xbf16>, vector<32x64xbf16>, vector<64x64xf32> -> vector<64x64xf32>
    %c0_12 = arith.constant 0 : index
    %c0_13 = arith.constant 0 : index
    %13 = vector.load %arg6[%c0_12, %c0_13] : memref<1x64xf32, #tpu.memory_space<vmem>>, vector<1x64xf32>
    %14 = vector.broadcast %13 : vector<1x64xf32> to vector<64x64xf32>
    %15 = arith.addf %12, %14 : vector<64x64xf32>
    %16 = arith.truncf %10 : vector<64x32xf32> to vector<64x32xbf16>
    %17 = vector.shape_cast %16 : vector<64x32xbf16> to vector<4x16x32xbf16>
    %18 = arith.truncf %15 : vector<64x64xf32> to vector<64x64xbf16>
    %19 = vector.shape_cast %18 : vector<64x64xbf16> to vector<4x16x64xbf16>
    %20 = vector.extract_strided_slice %19 {offsets = [0, 0, 0], sizes = [4, 16, 32], strides = [1, 1, 1]} : vector<4x16x64xbf16> to vector<4x16x32xbf16>
    %21 = vector.extract_strided_slice %19 {offsets = [0, 0, 32], sizes = [4, 16, 32], strides = [1, 1, 1]} : vector<4x16x64xbf16> to vector<4x16x32xbf16>
    %22 = vector.extract_strided_slice %17 {offsets = [0, 0, 0], sizes = [4, 16, 8], strides = [1, 1, 1]} : vector<4x16x32xbf16> to vector<4x16x8xbf16>
    %23 = vector.extract_strided_slice %20 {offsets = [0, 0, 0], sizes = [4, 16, 8], strides = [1, 1, 1]} : vector<4x16x32xbf16> to vector<4x16x8xbf16>
    %24 = vector.extract_strided_slice %21 {offsets = [0, 0, 0], sizes = [4, 16, 8], strides = [1, 1, 1]} : vector<4x16x32xbf16> to vector<4x16x8xbf16>
    "tpu.trace_start"() <{level = 10 : i32, message = "bnd,bmd->bnm"}> : () -> ()
    %cst_14 = arith.constant dense<0.000000e+00> : vector<4x16x16xf32>
    %25 = tpu.matmul %22, %23, %cst_14 {dimension_numbers = #tpu.dot_dimension_numbers<[2], [2], [1], [1], [0, 0, 0, 1, 1, 1], [0], [0]>} : vector<4x16x8xbf16>, vector<4x16x8xbf16>, vector<4x16x16xf32> -> vector<4x16x16xf32>
    "tpu.trace_stop"() : () -> ()
    %c0_15 = arith.constant 0 : index
    %c0_16 = arith.constant 0 : index
    %c0_17 = arith.constant 0 : index
    %c0_18 = arith.constant 0 : index
    %26 = vector.load %arg9[%c0_15, %c0_16, %c0_17, %c0_18] : memref<4x1x16x16xf32, #tpu.memory_space<vmem>>, vector<1x1x16x16xf32>
    %27 = vector.shape_cast %26 : vector<1x1x16x16xf32> to vector<16x16xf32>
    %28 = vector.shape_cast %27 : vector<16x16xf32> to vector<1x16x16xf32>
    %29 = vector.broadcast %28 : vector<1x16x16xf32> to vector<4x16x16xf32>
    %30 = arith.addf %25, %29 : vector<4x16x16xf32>
    %cst_19 = arith.constant dense<0xFF800000> : vector<4x16xf32>
    %31 = vector.multi_reduction <maximumf>, %30, %cst_19 [2] : vector<4x16x16xf32> to vector<4x16xf32>
    %32 = vector.shape_cast %31 : vector<4x16xf32> to vector<4x16x1xf32>
    %33 = vector.broadcast %32 : vector<4x16x1xf32> to vector<4x16x16xf32>
    %34 = arith.subf %30, %33 : vector<4x16x16xf32>
    %35 = math.exp %34 : vector<4x16x16xf32>
    %cst_20 = arith.constant dense<0.000000e+00> : vector<4x16xf32>
    %36 = vector.multi_reduction <add>, %35, %cst_20 [2] : vector<4x16x16xf32> to vector<4x16xf32>
    %37 = vector.shape_cast %36 : vector<4x16xf32> to vector<4x16x1xf32>
    %38 = tpu.reciprocal %37 {approx = true} : vector<4x16x1xf32> -> vector<4x16x1xf32>
    %39 = vector.broadcast %38 : vector<4x16x1xf32> to vector<4x16x16xf32>
    %40 = arith.mulf %35, %39 : vector<4x16x16xf32>
    %41 = arith.truncf %40 : vector<4x16x16xf32> to vector<4x16x16xbf16>
    "tpu.trace_start"() <{level = 10 : i32, message = "bnm,bmd->bnd"}> : () -> ()
    %cst_21 = arith.constant dense<0.000000e+00> : vector<4x16x8xf32>
    %42 = tpu.matmul %41, %24, %cst_21 {dimension_numbers = #tpu.dot_dimension_numbers<[2], [1], [1], [2], [0, 0, 0, 1, 1, 2], [0], [0]>} : vector<4x16x16xbf16>, vector<4x16x8xbf16>, vector<4x16x8xf32> -> vector<4x16x8xf32>
    "tpu.trace_stop"() : () -> ()
    %43 = vector.extract_strided_slice %17 {offsets = [0, 0, 8], sizes = [4, 16, 8], strides = [1, 1, 1]} : vector<4x16x32xbf16> to vector<4x16x8xbf16>
    %44 = vector.extract_strided_slice %20 {offsets = [0, 0, 8], sizes = [4, 16, 8], strides = [1, 1, 1]} : vector<4x16x32xbf16> to vector<4x16x8xbf16>
    %45 = vector.extract_strided_slice %21 {offsets = [0, 0, 8], sizes = [4, 16, 8], strides = [1, 1, 1]} : vector<4x16x32xbf16> to vector<4x16x8xbf16>
    "tpu.trace_start"() <{level = 10 : i32, message = "bnd,bmd->bnm"}> : () -> ()
    %cst_22 = arith.constant dense<0.000000e+00> : vector<4x16x16xf32>
    %46 = tpu.matmul %43, %44, %cst_22 {dimension_numbers = #tpu.dot_dimension_numbers<[2], [2], [1], [1], [0, 0, 0, 1, 1, 1], [0], [0]>} : vector<4x16x8xbf16>, vector<4x16x8xbf16>, vector<4x16x16xf32> -> vector<4x16x16xf32>
    "tpu.trace_stop"() : () -> ()
    %c1 = arith.constant 1 : index
    %c0_23 = arith.constant 0 : index
    %c0_24 = arith.constant 0 : index
    %c0_25 = arith.constant 0 : index
    %47 = vector.load %arg9[%c1, %c0_23, %c0_24, %c0_25] : memref<4x1x16x16xf32, #tpu.memory_space<vmem>>, vector<1x1x16x16xf32>
    %48 = vector.shape_cast %47 : vector<1x1x16x16xf32> to vector<16x16xf32>
    %49 = vector.shape_cast %48 : vector<16x16xf32> to vector<1x16x16xf32>
    %50 = vector.broadcast %49 : vector<1x16x16xf32> to vector<4x16x16xf32>
    %51 = arith.addf %46, %50 : vector<4x16x16xf32>
    %cst_26 = arith.constant dense<0xFF800000> : vector<4x16xf32>
    %52 = vector.multi_reduction <maximumf>, %51, %cst_26 [2] : vector<4x16x16xf32> to vector<4x16xf32>
    %53 = vector.shape_cast %52 : vector<4x16xf32> to vector<4x16x1xf32>
    %54 = vector.broadcast %53 : vector<4x16x1xf32> to vector<4x16x16xf32>
    %55 = arith.subf %51, %54 : vector<4x16x16xf32>
    %56 = math.exp %55 : vector<4x16x16xf32>
    %cst_27 = arith.constant dense<0.000000e+00> : vector<4x16xf32>
    %57 = vector.multi_reduction <add>, %56, %cst_27 [2] : vector<4x16x16xf32> to vector<4x16xf32>
    %58 = vector.shape_cast %57 : vector<4x16xf32> to vector<4x16x1xf32>
    %59 = tpu.reciprocal %58 {approx = true} : vector<4x16x1xf32> -> vector<4x16x1xf32>
    %60 = vector.broadcast %59 : vector<4x16x1xf32> to vector<4x16x16xf32>
    %61 = arith.mulf %56, %60 : vector<4x16x16xf32>
    %62 = arith.truncf %61 : vector<4x16x16xf32> to vector<4x16x16xbf16>
    "tpu.trace_start"() <{level = 10 : i32, message = "bnm,bmd->bnd"}> : () -> ()
    %cst_28 = arith.constant dense<0.000000e+00> : vector<4x16x8xf32>
    %63 = tpu.matmul %62, %45, %cst_28 {dimension_numbers = #tpu.dot_dimension_numbers<[2], [1], [1], [2], [0, 0, 0, 1, 1, 2], [0], [0]>} : vector<4x16x16xbf16>, vector<4x16x8xbf16>, vector<4x16x8xf32> -> vector<4x16x8xf32>
    "tpu.trace_stop"() : () -> ()
    %64 = vector.extract_strided_slice %17 {offsets = [0, 0, 16], sizes = [4, 16, 8], strides = [1, 1, 1]} : vector<4x16x32xbf16> to vector<4x16x8xbf16>
    %65 = vector.extract_strided_slice %20 {offsets = [0, 0, 16], sizes = [4, 16, 8], strides = [1, 1, 1]} : vector<4x16x32xbf16> to vector<4x16x8xbf16>
    %66 = vector.extract_strided_slice %21 {offsets = [0, 0, 16], sizes = [4, 16, 8], strides = [1, 1, 1]} : vector<4x16x32xbf16> to vector<4x16x8xbf16>
    "tpu.trace_start"() <{level = 10 : i32, message = "bnd,bmd->bnm"}> : () -> ()
    %cst_29 = arith.constant dense<0.000000e+00> : vector<4x16x16xf32>
    %67 = tpu.matmul %64, %65, %cst_29 {dimension_numbers = #tpu.dot_dimension_numbers<[2], [2], [1], [1], [0, 0, 0, 1, 1, 1], [0], [0]>} : vector<4x16x8xbf16>, vector<4x16x8xbf16>, vector<4x16x16xf32> -> vector<4x16x16xf32>
    "tpu.trace_stop"() : () -> ()
    %c2 = arith.constant 2 : index
    %c0_30 = arith.constant 0 : index
    %c0_31 = arith.constant 0 : index
    %c0_32 = arith.constant 0 : index
    %68 = vector.load %arg9[%c2, %c0_30, %c0_31, %c0_32] : memref<4x1x16x16xf32, #tpu.memory_space<vmem>>, vector<1x1x16x16xf32>
    %69 = vector.shape_cast %68 : vector<1x1x16x16xf32> to vector<16x16xf32>
    %70 = vector.shape_cast %69 : vector<16x16xf32> to vector<1x16x16xf32>
    %71 = vector.broadcast %70 : vector<1x16x16xf32> to vector<4x16x16xf32>
    %72 = arith.addf %67, %71 : vector<4x16x16xf32>
    %cst_33 = arith.constant dense<0xFF800000> : vector<4x16xf32>
    %73 = vector.multi_reduction <maximumf>, %72, %cst_33 [2] : vector<4x16x16xf32> to vector<4x16xf32>
    %74 = vector.shape_cast %73 : vector<4x16xf32> to vector<4x16x1xf32>
    %75 = vector.broadcast %74 : vector<4x16x1xf32> to vector<4x16x16xf32>
    %76 = arith.subf %72, %75 : vector<4x16x16xf32>
    %77 = math.exp %76 : vector<4x16x16xf32>
    %cst_34 = arith.constant dense<0.000000e+00> : vector<4x16xf32>
    %78 = vector.multi_reduction <add>, %77, %cst_34 [2] : vector<4x16x16xf32> to vector<4x16xf32>
    %79 = vector.shape_cast %78 : vector<4x16xf32> to vector<4x16x1xf32>
    %80 = tpu.reciprocal %79 {approx = true} : vector<4x16x1xf32> -> vector<4x16x1xf32>
    %81 = vector.broadcast %80 : vector<4x16x1xf32> to vector<4x16x16xf32>
    %82 = arith.mulf %77, %81 : vector<4x16x16xf32>
    %83 = arith.truncf %82 : vector<4x16x16xf32> to vector<4x16x16xbf16>
    "tpu.trace_start"() <{level = 10 : i32, message = "bnm,bmd->bnd"}> : () -> ()
    %cst_35 = arith.constant dense<0.000000e+00> : vector<4x16x8xf32>
    %84 = tpu.matmul %83, %66, %cst_35 {dimension_numbers = #tpu.dot_dimension_numbers<[2], [1], [1], [2], [0, 0, 0, 1, 1, 2], [0], [0]>} : vector<4x16x16xbf16>, vector<4x16x8xbf16>, vector<4x16x8xf32> -> vector<4x16x8xf32>
    "tpu.trace_stop"() : () -> ()
    %85 = vector.extract_strided_slice %17 {offsets = [0, 0, 24], sizes = [4, 16, 8], strides = [1, 1, 1]} : vector<4x16x32xbf16> to vector<4x16x8xbf16>
    %86 = vector.extract_strided_slice %20 {offsets = [0, 0, 24], sizes = [4, 16, 8], strides = [1, 1, 1]} : vector<4x16x32xbf16> to vector<4x16x8xbf16>
    %87 = vector.extract_strided_slice %21 {offsets = [0, 0, 24], sizes = [4, 16, 8], strides = [1, 1, 1]} : vector<4x16x32xbf16> to vector<4x16x8xbf16>
    "tpu.trace_start"() <{level = 10 : i32, message = "bnd,bmd->bnm"}> : () -> ()
    %cst_36 = arith.constant dense<0.000000e+00> : vector<4x16x16xf32>
    %88 = tpu.matmul %85, %86, %cst_36 {dimension_numbers = #tpu.dot_dimension_numbers<[2], [2], [1], [1], [0, 0, 0, 1, 1, 1], [0], [0]>} : vector<4x16x8xbf16>, vector<4x16x8xbf16>, vector<4x16x16xf32> -> vector<4x16x16xf32>
    "tpu.trace_stop"() : () -> ()
    %c3 = arith.constant 3 : index
    %c0_37 = arith.constant 0 : index
    %c0_38 = arith.constant 0 : index
    %c0_39 = arith.constant 0 : index
    %89 = vector.load %arg9[%c3, %c0_37, %c0_38, %c0_39] : memref<4x1x16x16xf32, #tpu.memory_space<vmem>>, vector<1x1x16x16xf32>
    %90 = vector.shape_cast %89 : vector<1x1x16x16xf32> to vector<16x16xf32>
    %91 = vector.shape_cast %90 : vector<16x16xf32> to vector<1x16x16xf32>
    %92 = vector.broadcast %91 : vector<1x16x16xf32> to vector<4x16x16xf32>
    %93 = arith.addf %88, %92 : vector<4x16x16xf32>
    %cst_40 = arith.constant dense<0xFF800000> : vector<4x16xf32>
    %94 = vector.multi_reduction <maximumf>, %93, %cst_40 [2] : vector<4x16x16xf32> to vector<4x16xf32>
    %95 = vector.shape_cast %94 : vector<4x16xf32> to vector<4x16x1xf32>
    %96 = vector.broadcast %95 : vector<4x16x1xf32> to vector<4x16x16xf32>
    %97 = arith.subf %93, %96 : vector<4x16x16xf32>
    %98 = math.exp %97 : vector<4x16x16xf32>
    %cst_41 = arith.constant dense<0.000000e+00> : vector<4x16xf32>
    %99 = vector.multi_reduction <add>, %98, %cst_41 [2] : vector<4x16x16xf32> to vector<4x16xf32>
    %100 = vector.shape_cast %99 : vector<4x16xf32> to vector<4x16x1xf32>
    %101 = tpu.reciprocal %100 {approx = true} : vector<4x16x1xf32> -> vector<4x16x1xf32>
    %102 = vector.broadcast %101 : vector<4x16x1xf32> to vector<4x16x16xf32>
    %103 = arith.mulf %98, %102 : vector<4x16x16xf32>
    %104 = arith.truncf %103 : vector<4x16x16xf32> to vector<4x16x16xbf16>
    "tpu.trace_start"() <{level = 10 : i32, message = "bnm,bmd->bnd"}> : () -> ()
    %cst_42 = arith.constant dense<0.000000e+00> : vector<4x16x8xf32>
    %105 = tpu.matmul %104, %87, %cst_42 {dimension_numbers = #tpu.dot_dimension_numbers<[2], [1], [1], [2], [0, 0, 0, 1, 1, 2], [0], [0]>} : vector<4x16x16xbf16>, vector<4x16x8xbf16>, vector<4x16x8xf32> -> vector<4x16x8xf32>
    "tpu.trace_stop"() : () -> ()
    %106 = tpu.concatenate %42, %63, %84, %105 in 2 : vector<4x16x8xf32>, vector<4x16x8xf32>, vector<4x16x8xf32>, vector<4x16x8xf32> -> vector<4x16x32xf32>
    %107 = vector.shape_cast %106 : vector<4x16x32xf32> to vector<64x32xf32>
    %108 = arith.truncf %107 : vector<64x32xf32> to vector<64x32xbf16>
    %c0_43 = arith.constant 0 : index
    %c0_44 = arith.constant 0 : index
    %109 = vector.load %arg7[%c0_43, %c0_44] : memref<32x32xbf16, #tpu.memory_space<vmem>>, vector<32x32xbf16>
    %cst_45 = arith.constant dense<0.000000e+00> : vector<64x32xf32>
    %110 = tpu.matmul %108, %109, %cst_45 {dimension_numbers = #tpu.dot_dimension_numbers<[1], [0], [0], [1], [0, 0, 1, 1], [], []>} : vector<64x32xbf16>, vector<32x32xbf16>, vector<64x32xf32> -> vector<64x32xf32>
    %c0_46 = arith.constant 0 : index
    %c0_47 = arith.constant 0 : index
    %111 = vector.load %arg8[%c0_46, %c0_47] : memref<1x32xf32, #tpu.memory_space<vmem>>, vector<1x32xf32>
    %112 = vector.broadcast %111 : vector<1x32xf32> to vector<64x32xf32>
    %113 = arith.addf %110, %112 : vector<64x32xf32>
    %114 = vector.shape_cast %113 : vector<64x32xf32> to vector<4x16x32xf32>
    %c0_48 = arith.constant 0 : index
    %c0_49 = arith.constant 0 : index
    %c0_50 = arith.constant 0 : index
    %115 = vector.load %arg10[%c0_48, %c0_49, %c0_50] : memref<4x16x32xf32, #tpu.memory_space<vmem>>, vector<4x16x32xf32>
    tpu.vector_store %arg10[%c0_48, %c0_49, %c0_50], %114 {strides = array<i32>} : memref<4x16x32xf32, #tpu.memory_space<vmem>>, vector<4x16x32xf32>,
    return
  }
  func.func @transform_0(%arg0: i32) -> (i32, i32, i32) {
    %c0_i32 = arith.constant 0 : i32
    %c0_i32_0 = arith.constant 0 : i32
    %c0_i32_1 = arith.constant 0 : i32
    return %arg0, %c0_i32, %c0_i32_0 : i32, i32, i32
  }
  func.func @transform_1(%arg0: i32) -> (i32, i32, i32) {
    %c0_i32 = arith.constant 0 : i32
    %c0_i32_0 = arith.constant 0 : i32
    %c0_i32_1 = arith.constant 0 : i32
    return %arg0, %c0_i32, %c0_i32_0 : i32, i32, i32
  }
  func.func @transform_2(%arg0: i32) -> (i32, i32) {
    %c0_i32 = arith.constant 0 : i32
    %c0_i32_0 = arith.constant 0 : i32
    %c0_i32_1 = arith.constant 0 : i32
    return %c0_i32, %c0_i32_0 : i32, i32
  }
  func.func @transform_3(%arg0: i32) -> (i32, i32) {
    %c0_i32 = arith.constant 0 : i32
    %c0_i32_0 = arith.constant 0 : i32
    %c0_i32_1 = arith.constant 0 : i32
    return %c0_i32, %c0_i32_0 : i32, i32
  }
  func.func @transform_4(%arg0: i32) -> (i32, i32) {
    %c0_i32 = arith.constant 0 : i32
    %c0_i32_0 = arith.constant 0 : i32
    %c0_i32_1 = arith.constant 0 : i32
    return %c0_i32, %c0_i32_0 : i32, i32
  }
  func.func @transform_5(%arg0: i32) -> (i32, i32) {
    %c0_i32 = arith.constant 0 : i32
    %c0_i32_0 = arith.constant 0 : i32
    %c0_i32_1 = arith.constant 0 : i32
    return %c0_i32, %c0_i32_0 : i32, i32
  }
  func.func @transform_6(%arg0: i32) -> (i32, i32) {
    %c0_i32 = arith.constant 0 : i32
    %c0_i32_0 = arith.constant 0 : i32
    %c0_i32_1 = arith.constant 0 : i32
    return %c0_i32, %c0_i32_0 : i32, i32
  }
  func.func @transform_7(%arg0: i32) -> (i32, i32) {
    %c0_i32 = arith.constant 0 : i32
    %c0_i32_0 = arith.constant 0 : i32
    %c0_i32_1 = arith.constant 0 : i32
    return %c0_i32, %c0_i32_0 : i32, i32
  }
  func.func @transform_8(%arg0: i32) -> (i32, i32, i32, i32) {
    %c0_i32 = arith.constant 0 : i32
    %c0_i32_0 = arith.constant 0 : i32
    %c0_i32_1 = arith.constant 0 : i32
    %c0_i32_2 = arith.constant 0 : i32
    %c0_i32_3 = arith.constant 0 : i32
    return %c0_i32, %c0_i32_0, %c0_i32_1, %c0_i32_2 : i32, i32, i32, i32
  }
  func.func @transform_9(%arg0: i32) -> (i32, i32, i32) {
    %c0_i32 = arith.constant 0 : i32
    %c0_i32_0 = arith.constant 0 : i32
    %c0_i32_1 = arith.constant 0 : i32
    return %arg0, %c0_i32, %c0_i32_0 : i32, i32, i32
  }
}

module attributes {stable_mosaic.version = 11 : i64} {
  func.func @_window_attn_kernel(%arg0: i32, %arg1: memref<4x16x32xf32, #tpu.memory_space<vmem>>, %arg2: memref<4x16x32xf32, #tpu.memory_space<vmem>>, %arg3: memref<32x32xbf16, #tpu.memory_space<vmem>>, %arg4: memref<32x64xbf16, #tpu.memory_space<vmem>>, %arg5: memref<1x32xf32, #tpu.memory_space<vmem>>, %arg6: memref<1x64xf32, #tpu.memory_space<vmem>>, %arg7: memref<32x32xbf16, #tpu.memory_space<vmem>>, %arg8: memref<1x32xf32, #tpu.memory_space<vmem>>, %arg9: memref<4x1x16x16xf32, #tpu.memory_space<vmem>>, %arg10: memref<4x16x32xf32, #tpu.memory_space<vmem>>) attributes {dimension_semantics = [#tpu.dimension_semantics<parallel>], iteration_bounds = array<i64: 2>, scalar_prefetch = 0 : i64, scratch_operands = 0 : i64, tpu.core_type = #tpu.core_type<tc>, window_params = [{transform_indices = @transform_0, window_bounds = array<i64: 4, 16, 32>}, {transform_indices = @transform_1, window_bounds = array<i64: 4, 16, 32>}, {pipeline_mode = #tpu.pipeline_mode<synchronous>, transform_indices = @transform_2, window_bounds = array<i64: 32, 32>}, {pipeline_mode = #tpu.pipeline_mode<synchronous>, transform_indices = @transform_3, window_bounds = array<i64: 32, 64>}, {pipeline_mode = #tpu.pipeline_mode<synchronous>, transform_indices = @transform_4, window_bounds = array<i64: 1, 32>}, {pipeline_mode = #tpu.pipeline_mode<synchronous>, transform_indices = @transform_5, window_bounds = array<i64: 1, 64>}, {pipeline_mode = #tpu.pipeline_mode<synchronous>, transform_indices = @transform_6, window_bounds = array<i64: 32, 32>}, {pipeline_mode = #tpu.pipeline_mode<synchronous>, transform_indices = @transform_7, window_bounds = array<i64: 1, 32>}, {pipeline_mode = #tpu.pipeline_mode<synchronous>, transform_indices = @transform_8, window_bounds = array<i64: 4, 1, 16, 16>}, {transform_indices = @transform_9, window_bounds = array<i64: 4, 16, 32>}]} {
    %c0 = arith.constant 0 : index
    %c0_0 = arith.constant 0 : index
    %c0_1 = arith.constant 0 : index
    %0 = vector.load %arg1[%c0, %c0_0, %c0_1] : memref<4x16x32xf32, #tpu.memory_space<vmem>>, vector<4x16x32xf32>
    %1 = vector.shape_cast %0 : vector<4x16x32xf32> to vector<64x32xf32>
    %2 = arith.truncf %1 : vector<64x32xf32> to vector<64x32xbf16>
    %c0_2 = arith.constant 0 : index
    %c0_3 = arith.constant 0 : index
    %c0_4 = arith.constant 0 : index
    %3 = vector.load %arg2[%c0_2, %c0_3, %c0_4] : memref<4x16x32xf32, #tpu.memory_space<vmem>>, vector<4x16x32xf32>
    %4 = vector.shape_cast %3 : vector<4x16x32xf32> to vector<64x32xf32>
    %5 = arith.truncf %4 : vector<64x32xf32> to vector<64x32xbf16>
    %c0_5 = arith.constant 0 : index
    %c0_6 = arith.constant 0 : index
    %6 = vector.load %arg3[%c0_5, %c0_6] : memref<32x32xbf16, #tpu.memory_space<vmem>>, vector<32x32xbf16>
    %cst = arith.constant dense<0.000000e+00> : vector<64x32xf32>
    %7 = tpu.matmul %2, %6, %cst {dimension_numbers = #tpu.dot_dimension_numbers<[1], [0], [0], [1], [0, 0, 1, 1], [], []>} : vector<64x32xbf16>, vector<32x32xbf16>, vector<64x32xf32> -> vector<64x32xf32>
    %c0_7 = arith.constant 0 : index
    %c0_8 = arith.constant 0 : index
    %8 = vector.load %arg5[%c0_7, %c0_8] : memref<1x32xf32, #tpu.memory_space<vmem>>, vector<1x32xf32>
    %9 = vector.broadcast %8 : vector<1x32xf32> to vector<64x32xf32>
    %10 = arith.addf %7, %9 : vector<64x32xf32>
    %c0_9 = arith.constant 0 : index
    %c0_10 = arith.constant 0 : index
    %11 = vector.load %arg4[%c0_9, %c0_10] : memref<32x64xbf16, #tpu.memory_space<vmem>>, vector<32x64xbf16>
    %cst_11 = arith.constant dense<0.000000e+00> : vector<64x64xf32>
    %12 = tpu.matmul %5, %11, %cst_11 {dimension_numbers = #tpu.dot_dimension_numbers<[1], [0], [0], [1], [0, 0, 1, 1], [], []>} : vector<64x32xbf16>, vector<32x64xbf16>, vector<64x64xf32> -> vector<64x64xf32>
    %c0_12 = arith.constant 0 : index
    %c0_13 = arith.constant 0 : index
    %13 = vector.load %arg6[%c0_12, %c0_13] : memref<1x64xf32, #tpu.memory_space<vmem>>, vector<1x64xf32>
    %14 = vector.broadcast %13 : vector<1x64xf32> to vector<64x64xf32>
    %15 = arith.addf %12, %14 : vector<64x64xf32>
    %16 = arith.truncf %10 : vector<64x32xf32> to vector<64x32xbf16>
    %17 = vector.shape_cast %16 : vector<64x32xbf16> to vector<4x16x32xbf16>
    %18 = arith.truncf %15 : vector<64x64xf32> to vector<64x64xbf16>
    %19 = vector.shape_cast %18 : vector<64x64xbf16> to vector<4x16x64xbf16>
    %20 = vector.extract_strided_slice %19 {offsets = [0, 0, 0], sizes = [4, 16, 32], strides = [1, 1, 1]} : vector<4x16x64xbf16> to vector<4x16x32xbf16>
    %21 = vector.extract_strided_slice %19 {offsets = [0, 0, 32], sizes = [4, 16, 32], strides = [1, 1, 1]} : vector<4x16x64xbf16> to vector<4x16x32xbf16>
    %22 = vector.extract_strided_slice %17 {offsets = [0, 0, 0], sizes = [4, 16, 8], strides = [1, 1, 1]} : vector<4x16x32xbf16> to vector<4x16x8xbf16>
    %23 = vector.extract_strided_slice %20 {offsets = [0, 0, 0], sizes = [4, 16, 8], strides = [1, 1, 1]} : vector<4x16x32xbf16> to vector<4x16x8xbf16>
    %24 = vector.extract_strided_slice %21 {offsets = [0, 0, 0], sizes = [4, 16, 8], strides = [1, 1, 1]} : vector<4x16x32xbf16> to vector<4x16x8xbf16>
    "tpu.trace_start"() <{level = 10 : i32, message = "bnd,bmd->bnm"}> : () -> ()
    %cst_14 = arith.constant dense<0.000000e+00> : vector<4x16x16xf32>
    %25 = tpu.matmul %22, %23, %cst_14 {dimension_numbers = #tpu.dot_dimension_numbers<[2], [2], [1], [1], [0, 0, 0, 1, 1, 1], [0], [0]>} : vector<4x16x8xbf16>, vector<4x16x8xbf16>, vector<4x16x16xf32> -> vector<4x16x16xf32>
    "tpu.trace_stop"() : () -> ()
    %c0_15 = arith.constant 0 : index
    %c0_16 = arith.constant 0 : index
    %c0_17 = arith.constant 0 : index
    %c0_18 = arith.constant 0 : index
    %26 = vector.load %arg9[%c0_15, %c0_16, %c0_17, %c0_18] : memref<4x1x16x16xf32, #tpu.memory_space<vmem>>, vector<1x1x16x16xf32>
    %27 = vector.shape_cast %26 : vector<1x1x16x16xf32> to vector<16x16xf32>
    %28 = vector.shape_cast %27 : vector<16x16xf32> to vector<1x16x16xf32>
    %29 = vector.broadcast %28 : vector<1x16x16xf32> to vector<4x16x16xf32>
    %30 = arith.addf %25, %29 : vector<4x16x16xf32>
    %cst_19 = arith.constant dense<0xFF800000> : vector<4x16xf32>
    %31 = vector.multi_reduction <maximumf>, %30, %cst_19 [2] : vector<4x16x16xf32> to vector<4x16xf32>
    %32 = vector.shape_cast %31 : vector<4x16xf32> to vector<4x16x1xf32>
    %33 = vector.broadcast %32 : vector<4x16x1xf32> to vector<4x16x16xf32>
    %34 = arith.subf %30, %33 : vector<4x16x16xf32>
    %35 = math.exp %34 : vector<4x16x16xf32>
    %cst_20 = arith.constant dense<0.000000e+00> : vector<4x16xf32>
    %36 = vector.multi_reduction <add>, %35, %cst_20 [2] : vector<4x16x16xf32> to vector<4x16xf32>
    %37 = vector.shape_cast %36 : vector<4x16xf32> to vector<4x16x1xf32>
    %38 = tpu.reciprocal %37 {approx = true} : vector<4x16x1xf32> -> vector<4x16x1xf32>
    %39 = vector.broadcast %38 : vector<4x16x1xf32> to vector<4x16x16xf32>
    %40 = arith.mulf %35, %39 : vector<4x16x16xf32>
    %41 = arith.truncf %40 : vector<4x16x16xf32> to vector<4x16x16xbf16>
    "tpu.trace_start"() <{level = 10 : i32, message = "bnm,bmd->bnd"}> : () -> ()
    %cst_21 = arith.constant dense<0.000000e+00> : vector<4x16x8xf32>
    %42 = tpu.matmul %41, %24, %cst_21 {dimension_numbers = #tpu.dot_dimension_numbers<[2], [1], [1], [2], [0, 0, 0, 1, 1, 2], [0], [0]>} : vector<4x16x16xbf16>, vector<4x16x8xbf16>, vector<4x16x8xf32> -> vector<4x16x8xf32>
    "tpu.trace_stop"() : () -> ()
    %43 = vector.extract_strided_slice %17 {offsets = [0, 0, 8], sizes = [4, 16, 8], strides = [1, 1, 1]} : vector<4x16x32xbf16> to vector<4x16x8xbf16>
    %44 = vector.extract_strided_slice %20 {offsets = [0, 0, 8], sizes = [4, 16, 8], strides = [1, 1, 1]} : vector<4x16x32xbf16> to vector<4x16x8xbf16>
    %45 = vector.extract_strided_slice %21 {offsets = [0, 0, 8], sizes = [4, 16, 8], strides = [1, 1, 1]} : vector<4x16x32xbf16> to vector<4x16x8xbf16>
    "tpu.trace_start"() <{level = 10 : i32, message = "bnd,bmd->bnm"}> : () -> ()
    %cst_22 = arith.constant dense<0.000000e+00> : vector<4x16x16xf32>
    %46 = tpu.matmul %43, %44, %cst_22 {dimension_numbers = #tpu.dot_dimension_numbers<[2], [2], [1], [1], [0, 0, 0, 1, 1, 1], [0], [0]>} : vector<4x16x8xbf16>, vector<4x16x8xbf16>, vector<4x16x16xf32> -> vector<4x16x16xf32>
    "tpu.trace_stop"() : () -> ()
    %c1 = arith.constant 1 : index
    %c0_23 = arith.constant 0 : index
    %c0_24 = arith.constant 0 : index
    %c0_25 = arith.constant 0 : index
    %47 = vector.load %arg9[%c1, %c0_23, %c0_24, %c0_25] : memref<4x1x16x16xf32, #tpu.memory_space<vmem>>, vector<1x1x16x16xf32>
    %48 = vector.shape_cast %47 : vector<1x1x16x16xf32> to vector<16x16xf32>
    %49 = vector.shape_cast %48 : vector<16x16xf32> to vector<1x16x16xf32>
    %50 = vector.broadcast %49 : vector<1x16x16xf32> to vector<4x16x16xf32>
    %51 = arith.addf %46, %50 : vector<4x16x16xf32>
    %cst_26 = arith.constant dense<0xFF800000> : vector<4x16xf32>
    %52 = vector.multi_reduction <maximumf>, %51, %cst_26 [2] : vector<4x16x16xf32> to vector<4x16xf32>
    %53 = vector.shape_cast %52 : vector<4x16xf32> to vector<4x16x1xf32>
    %54 = vector.broadcast %53 : vector<4x16x1xf32> to vector<4x16x16xf32>
    %55 = arith.subf %51, %54 : vector<4x16x16xf32>
    %56 = math.exp %55 : vector<4x16x16xf32>
    %cst_27 = arith.constant dense<0.000000e+00> : vector<4x16xf32>
    %57 = vector.multi_reduction <add>, %56, %cst_27 [2] : vector<4x16x16xf32> to vector<4x16xf32>
    %58 = vector.shape_cast %57 : vector<4x16xf32> to vector<4x16x1xf32>
    %59 = tpu.reciprocal %58 {approx = true} : vector<4x16x1xf32> -> vector<4x16x1xf32>
    %60 = vector.broadcast %59 : vector<4x16x1xf32> to vector<4x16x16xf32>
    %61 = arith.mulf %56, %60 : vector<4x16x16xf32>
    %62 = arith.truncf %61 : vector<4x16x16xf32> to vector<4x16x16xbf16>
    "tpu.trace_start"() <{level = 10 : i32, message = "bnm,bmd->bnd"}> : () -> ()
    %cst_28 = arith.constant dense<0.000000e+00> : vector<4x16x8xf32>
    %63 = tpu.matmul %62, %45, %cst_28 {dimension_numbers = #tpu.dot_dimension_numbers<[2], [1], [1], [2], [0, 0, 0, 1, 1, 2], [0], [0]>} : vector<4x16x16xbf16>, vector<4x16x8xbf16>, vector<4x16x8xf32> -> vector<4x16x8xf32>
    "tpu.trace_stop"() : () -> ()
    %64 = vector.extract_strided_slice %17 {offsets = [0, 0, 16], sizes = [4, 16, 8], strides = [1, 1, 1]} : vector<4x16x32xbf16> to vector<4x16x8xbf16>
    %65 = vector.extract_strided_slice %20 {offsets = [0, 0, 16], sizes = [4, 16, 8], strides = [1, 1, 1]} : vector<4x16x32xbf16> to vector<4x16x8xbf16>
    %66 = vector.extract_strided_slice %21 {offsets = [0, 0, 16], sizes = [4, 16, 8], strides = [1, 1, 1]} : vector<4x16x32xbf16> to vector<4x16x8xbf16>
    "tpu.trace_start"() <{level = 10 : i32, message = "bnd,bmd->bnm"}> : () -> ()
    %cst_29 = arith.constant dense<0.000000e+00> : vector<4x16x16xf32>
    %67 = tpu.matmul %64, %65, %cst_29 {dimension_numbers = #tpu.dot_dimension_numbers<[2], [2], [1], [1], [0, 0, 0, 1, 1, 1], [0], [0]>} : vector<4x16x8xbf16>, vector<4x16x8xbf16>, vector<4x16x16xf32> -> vector<4x16x16xf32>
    "tpu.trace_stop"() : () -> ()
    %c2 = arith.constant 2 : index
    %c0_30 = arith.constant 0 : index
    %c0_31 = arith.constant 0 : index
    %c0_32 = arith.constant 0 : index
    %68 = vector.load %arg9[%c2, %c0_30, %c0_31, %c0_32] : memref<4x1x16x16xf32, #tpu.memory_space<vmem>>, vector<1x1x16x16xf32>
    %69 = vector.shape_cast %68 : vector<1x1x16x16xf32> to vector<16x16xf32>
    %70 = vector.shape_cast %69 : vector<16x16xf32> to vector<1x16x16xf32>
    %71 = vector.broadcast %70 : vector<1x16x16xf32> to vector<4x16x16xf32>
    %72 = arith.addf %67, %71 : vector<4x16x16xf32>
    %cst_33 = arith.constant dense<0xFF800000> : vector<4x16xf32>
    %73 = vector.multi_reduction <maximumf>, %72, %cst_33 [2] : vector<4x16x16xf32> to vector<4x16xf32>
    %74 = vector.shape_cast %73 : vector<4x16xf32> to vector<4x16x1xf32>
    %75 = vector.broadcast %74 : vector<4x16x1xf32> to vector<4x16x16xf32>
    %76 = arith.subf %72, %75 : vector<4x16x16xf32>
    %77 = math.exp %76 : vector<4x16x16xf32>
    %cst_34 = arith.constant dense<0.000000e+00> : vector<4x16xf32>
    %78 = vector.multi_reduction <add>, %77, %cst_34 [2] : vector<4x16x16xf32> to vector<4x16xf32>
    %79 = vector.shape_cast %78 : vector<4x16xf32> to vector<4x16x1xf32>
    %80 = tpu.reciprocal %79 {approx = true} : vector<4x16x1xf32> -> vector<4x16x1xf32>
    %81 = vector.broadcast %80 : vector<4x16x1xf32> to vector<4x16x16xf32>
    %82 = arith.mulf %77, %81 : vector<4x16x16xf32>
    %83 = arith.truncf %82 : vector<4x16x16xf32> to vector<4x16x16xbf16>
    "tpu.trace_start"() <{level = 10 : i32, message = "bnm,bmd->bnd"}> : () -> ()
    %cst_35 = arith.constant dense<0.000000e+00> : vector<4x16x8xf32>
    %84 = tpu.matmul %83, %66, %cst_35 {dimension_numbers = #tpu.dot_dimension_numbers<[2], [1], [1], [2], [0, 0, 0, 1, 1, 2], [0], [0]>} : vector<4x16x16xbf16>, vector<4x16x8xbf16>, vector<4x16x8xf32> -> vector<4x16x8xf32>
    "tpu.trace_stop"() : () -> ()
    %85 = vector.extract_strided_slice %17 {offsets = [0, 0, 24], sizes = [4, 16, 8], strides = [1, 1, 1]} : vector<4x16x32xbf16> to vector<4x16x8xbf16>
    %86 = vector.extract_strided_slice %20 {offsets = [0, 0, 24], sizes = [4, 16, 8], strides = [1, 1, 1]} : vector<4x16x32xbf16> to vector<4x16x8xbf16>
    %87 = vector.extract_strided_slice %21 {offsets = [0, 0, 24], sizes = [4, 16, 8], strides = [1, 1, 1]} : vector<4x16x32xbf16> to vector<4x16x8xbf16>
    "tpu.trace_start"() <{level = 10 : i32, message = "bnd,bmd->bnm"}> : () -> ()
    %cst_36 = arith.constant dense<0.000000e+00> : vector<4x16x16xf32>
    %88 = tpu.matmul %85, %86, %cst_36 {dimension_numbers = #tpu.dot_dimension_numbers<[2], [2], [1], [1], [0, 0, 0, 1, 1, 1], [0], [0]>} : vector<4x16x8xbf16>, vector<4x16x8xbf16>, vector<4x16x16xf32> -> vector<4x16x16xf32>
    "tpu.trace_stop"() : () -> ()
    %c3 = arith.constant 3 : index
    %c0_37 = arith.constant 0 : index
    %c0_38 = arith.constant 0 : index
    %c0_39 = arith.constant 0 : index
    %89 = vector.load %arg9[%c3, %c0_37, %c0_38, %c0_39] : memref<4x1x16x16xf32, #tpu.memory_space<vmem>>, vector<1x1x16x16xf32>
    %90 = vector.shape_cast %89 : vector<1x1x16x16xf32> to vector<16x16xf32>
    %91 = vector.shape_cast %90 : vector<16x16xf32> to vector<1x16x16xf32>
    %92 = vector.broadcast %91 : vector<1x16x16xf32> to vector<4x16x16xf32>
    %93 = arith.addf %88, %92 : vector<4x16x16xf32>
    %cst_40 = arith.constant dense<0xFF800000> : vector<4x16xf32>
    %94 = vector.multi_reduction <maximumf>, %93, %cst_40 [2] : vector<4x16x16xf32> to vector<4x16xf32>
    %95 = vector.shape_cast %94 : vector<4x16xf32> to vector<4x16x1xf32>
    %96 = vector.broadcast %95 : vector<4x16x1xf32> to vector<4x16x16xf32>
    %97 = arith.subf %93, %96 : vector<4x16x16xf32>
    %98 = math.exp %97 : vector<4x16x16xf32>
    %cst_41 = arith.constant dense<0.000000e+00> : vector<4x16xf32>
    %99 = vector.multi_reduction <add>, %98, %cst_41 [2] : vector<4x16x16xf32> to vector<4x16xf32>
    %100 = vector.shape_cast %99 : vector<4x16xf32> to vector<4x16x1xf32>
    %101 = tpu.reciprocal %100 {approx = true} : vector<4x16x1xf32> -> vector<4x16x1xf32>
    %102 = vector.broadcast %101 : vector<4x16x1xf32> to vector<4x16x16xf32>
    %103 = arith.mulf %98, %102 : vector<4x16x16xf32>
    %104 = arith.truncf %103 : vector<4x16x16xf32> to vector<4x16x16xbf16>
    "tpu.trace_start"() <{level = 10 : i32, message = "bnm,bmd->bnd"}> : () -> ()
    %cst_42 = arith.constant dense<0.000000e+00> : vector<4x16x8xf32>
    %105 = tpu.matmul %104, %87, %cst_42 {dimension_numbers = #tpu.dot_dimension_numbers<[2], [1], [1], [2], [0, 0, 0, 1, 1, 2], [0], [0]>} : vector<4x16x16xbf16>, vector<4x16x8xbf16>, vector<4x16x8xf32> -> vector<4x16x8xf32>
    "tpu.trace_stop"() : () -> ()
    %106 = tpu.concatenate %42, %63, %84, %105 in 2 : vector<4x16x8xf32>, vector<4x16x8xf32>, vector<4x16x8xf32>, vector<4x16x8xf32> -> vector<4x16x32xf32>
    %107 = vector.shape_cast %106 : vector<4x16x32xf32> to vector<64x32xf32>
    %108 = arith.truncf %107 : vector<64x32xf32> to vector<64x32xbf16>
    %c0_43 = arith.constant 0 : index
    %c0_44 = arith.constant 0 : index
    %109 = vector.load %arg7[%c0_43, %c0_44] : memref<32x32xbf16, #tpu.memory_space<vmem>>, vector<32x32xbf16>
    %cst_45 = arith.constant dense<0.000000e+00> : vector<64x32xf32>
    %110 = tpu.matmul %108, %109, %cst_45 {dimension_numbers = #tpu.dot_dimension_numbers<[1], [0], [0], [1], [0, 0, 1, 1], [], []>} : vector<64x32xbf16>, vector<32x32xbf16>, vector<64x32xf32> -> vector<64x32xf32>
    %c0_46 = arith.constant 0 : index
    %c0_47 = arith.constant 0 : index
    %111 = vector.load %arg8[%c0_46, %c0_47] : memref<1x32xf32, #tpu.memory_space<vmem>>, vector<1x32xf32>
    %112 = vector.broadcast %111 : vector<1x32xf32> to vector<64x32xf32>
    %113 = arith.addf %110, %112 : vector<64x32xf32>
    %114 = vector.shape_cast %113 : vector<64x32xf32> to vector<4x16x32xf32>
    %c0_48 = arith.constant 0 : index
    %c0_49 = arith.constant 0 : index
    %c0_50 = arith.constant 0 : index
    %115 = vector.load %arg10[%c0_48, %c0_49, %c0_50] : memref<4x16x32xf32, #tpu.memory_space<vmem>>, vector<4x16x32xf32>
    tpu.vector_store %arg10[%c0_48, %c0_49, %c0_50], %114 {strides = array<i32>} : memref<4x16x32xf32, #tpu.memory_space<vmem>>, vector<4x16x32xf32>,
    return
  }
  func.func @transform_0(%arg0: i32) -> (i32, i32, i32) {
    %c0_i32 = arith.constant 0 : i32
    %c0_i32_0 = arith.constant 0 : i32
    %c0_i32_1 = arith.constant 0 : i32
    return %arg0, %c0_i32, %c0_i32_0 : i32, i32, i32
  }
  func.func @transform_1(%arg0: i32) -> (i32, i32, i32) {
    %c0_i32 = arith.constant 0 : i32
    %c0_i32_0 = arith.constant 0 : i32
    %c0_i32_1 = arith.constant 0 : i32
    return %arg0, %c0_i32, %c0_i32_0 : i32, i32, i32
  }
  func.func @transform_2(%arg0: i32) -> (i32, i32) {
    %c0_i32 = arith.constant 0 : i32
    %c0_i32_0 = arith.constant 0 : i32
    %c0_i32_1 = arith.constant 0 : i32
    return %c0_i32, %c0_i32_0 : i32, i32
  }
  func.func @transform_3(%arg0: i32) -> (i32, i32) {
    %c0_i32 = arith.constant 0 : i32
    %c0_i32_0 = arith.constant 0 : i32
    %c0_i32_1 = arith.constant 0 : i32
    return %c0_i32, %c0_i32_0 : i32, i32
  }
  func.func @transform_4(%arg0: i32) -> (i32, i32) {
    %c0_i32 = arith.constant 0 : i32
    %c0_i32_0 = arith.constant 0 : i32
    %c0_i32_1 = arith.constant 0 : i32
    return %c0_i32, %c0_i32_0 : i32, i32
  }
  func.func @transform_5(%arg0: i32) -> (i32, i32) {
    %c0_i32 = arith.constant 0 : i32
    %c0_i32_0 = arith.constant 0 : i32
    %c0_i32_1 = arith.constant 0 : i32
    return %c0_i32, %c0_i32_0 : i32, i32
  }
  func.func @transform_6(%arg0: i32) -> (i32, i32) {
    %c0_i32 = arith.constant 0 : i32
    %c0_i32_0 = arith.constant 0 : i32
    %c0_i32_1 = arith.constant 0 : i32
    return %c0_i32, %c0_i32_0 : i32, i32
  }
  func.func @transform_7(%arg0: i32) -> (i32, i32) {
    %c0_i32 = arith.constant 0 : i32
    %c0_i32_0 = arith.constant 0 : i32
    %c0_i32_1 = arith.constant 0 : i32
    return %c0_i32, %c0_i32_0 : i32, i32
  }
  func.func @transform_8(%arg0: i32) -> (i32, i32, i32, i32) {
    %c0_i32 = arith.constant 0 : i32
    %c0_i32_0 = arith.constant 0 : i32
    %c0_i32_1 = arith.constant 0 : i32
    %c0_i32_2 = arith.constant 0 : i32
    %c0_i32_3 = arith.constant 0 : i32
    return %c0_i32, %c0_i32_0, %c0_i32_1, %c0_i32_2 : i32, i32, i32, i32
  }
  func.func @transform_9(%arg0: i32) -> (i32, i32, i32) {
    %c0_i32 = arith.constant 0 : i32
    %c0_i32_0 = arith.constant 0 : i32
    %c0_i32_1 = arith.constant 0 : i32
    return %arg0, %c0_i32, %c0_i32_0 : i32, i32, i32
  }
}

</mosaic_0001>

<bundles_post_ra>
// kernel: tpu_custom_call.1
= control target key start
LH: loop header
LB: loop body
LE: loop exit
PB: predicated region body
PF: predicated region fallthrough
CT: control target
= control target key end

     0   :  { %s4816_s0 = inlined_call_operand.hbm [shape: f32[8,16,32], index: 0, kind: input, shape index: {}]   ;;  %s4817_s1 = inlined_call_operand.hbm [shape: f32[8,16,32], index: 1, kind: input, shape index: {}]   ;;  %s4818_s2 = inlined_call_operand.hbm [shape: bf16[32,32], index: 2, kind: input, shape index: {}]   ;;  %s4819_s3 = inlined_call_operand.hbm [shape: bf16[32,64], index: 3, kind: input, shape index: {}]   ;;  %s4820_s4 = inlined_call_operand.vmem [shape: f32[1,32], index: 4, kind: input, shape index: {}]   ;;  %s4821_s5 = inlined_call_operand.vmem [shape: f32[1,64], index: 5, kind: input, shape index: {}]   ;;  %s4822_s6 = inlined_call_operand.vmem [shape: bf16[32,32], index: 6, kind: input, shape index: {}]   ;;  %s4823_s7 = inlined_call_operand.vmem [shape: f32[1,32], index: 7, kind: input, shape index: {}]   ;;  %s4824_s8 = inlined_call_operand.hbm [shape: f32[4,1,16,16], index: 8, kind: input, shape index: {}]   ;;  %s4825_s9 = inlined_call_operand.hbm [shape: f32[8,16,32], index: 9, kind: output, shape index: {}]  }
   0x1   :  { %4836 = sst [smem:[#allocation20_spill]] %s4816_s0 }
   0x2   :  { %4837 = sst [smem:[#allocation21_spill]] %s4818_s2 }
   0x3   :  { %4838 = sst [smem:[#allocation22_spill]] %s4819_s3 }
   0x4   :  { %4839 = sst [smem:[#allocation23_spill]] %s4824_s8 }
   0x5   :  { %4840 = sst [smem:[#allocation24_spill]] %s4825_s9 }
   0x6   :  { %14 = vsyncpa [#allocation3], 0 }
   0x7   :  { %16 = vsyncpa [#allocation3 + $0x1], 0 }
   0x8   :  { %17 = vsyncpa [#allocation6], 0 }
   0x9   :  { %19 = vsyncpa [#allocation6 + $0x1], 0 }
   0xa   :  { %20 = vsyncpa [#allocation9], 0 }
   0xb   :  { %21 = vsyncpa [#allocation4], 0 }
   0xc   :  { %23 = vsyncpa [#allocation4 + $0x1], 0  ;;  %s3976_s30 = smov 0   ;;  %s3978_s10 = smov 0  }
   0xd   :  { %s3980_s11 = smov 0   ;;  %s3982_s12 = smov 0  }
   0xe LB: > { %4841 = sst [smem:[#allocation17_spill]] %s3889_s30  ;;  %s3997_s13 = sadd.s32 4294967295, %s3901_s12   ;;  %s3901_s12 = sphi %s3982_s12, %s4873_s12   ;;  %s3897_s11 = sphi %s3980_s11, %s4872_s11   ;;  %s3893_s10 = sphi %s3978_s10, %s4871_s10   ;;  %s3889_s30 = sphi %s3976_s30, %s4870_s30  }
   0xf   : > { %s2986_s14 = sadd.s32 4294967294, %s3901_s12   ;;  %p49_p0 = scmp.ne.s32.totalorder %s3893_s10, %s3889_s30 }
  0x10   : > { %p4826_p1 = scmp.eq.s32.totalorder %s3997_s13, 0  ;;  %p252_p3 = scmp.eq.s32.totalorder %s2986_s14, 1 }
  0x11   : > { %p2987_p5 = scmp.ge.s32.totalorder %s3901_s12, 1  ;;  %p259_p7 = scmp.lt.s32.totalorder %s3901_s12, 3 }
  0x12   : > { %p4006_p4 = por %p4826_p1, %p49_p0  ;;  %p4011_p6 = por %p252_p3, %p49_p0 }
  0x13   : > { %p4016_p8 = pnand %p2987_p5, %p259_p7  ;;  %s3903_s18 = smov [#allocation7]  }
  0x14   : > { %s4842_s15 = scalar_select %p4006_p4, 1, 0 }
  0x15   : > { %s4843_s16 = scalar_select %p4011_p6, 1, 0 }
  0x16   : > { %s4845_s17 = scalar_select %p4016_p8, 1, 0 }
  0x17   : > { %4844 = sst [smem:[#allocation18_spill]] %s4843_s16  ;;  %s271_s19 = sshll.u32 %s3903_s18, 4  ;;  %s4020_s19 = int_to_ptr.vmem [resolvable:$true] %s271_s19 }
  0x18   : > { %p3404_p9 = pneg %p4016_p8  ;;  %s3904_s21 = smov [#allocation8]  }
  0x19   : > { %s284_s22 = sshll.u32 %s3904_s21, 4  ;;  %s3905_s23 = smov [#allocation10]   ;;  %s4031_s22 = int_to_ptr.vmem [resolvable:$true] %s284_s22 }
  0x1a   : > { %p4027_p11 = pnand %p3404_p9, %p4826_p1  ;;  %s4033_s24 = sshll.u32 %s3905_s23, 4  ;;  %s310_s24 = int_to_ptr.vmem [resolvable:$true] %s4033_s24 }
  0x1b   : > { %s4847_s2 = sld [smem:[#allocation21_spill]] }
  0x1c   : > { %p4043_p13 = pneg %p4027_p11 }
  0x21   : > { %s3679_s27 = scalar_lea.hbm %s4847_s2, 256 }
  0x22   : > { %p3680_p12 = scmp.ne.s32.totalorder %s4847_s2, %s3679_s27  ;;  %p3686_p5 = scmp.lt.u32.totalorder %s3679_s27, %s4847_s2 }
  0x24   : > { %p3682_p0 = pnand %p4043_p13, %p3680_p12 }
  0x26   : > { %p3683_p3 = pneg %p3682_p0 }
  0x28   : > { %p3688_p7 = pnand %p3686_p5, %p3683_p3 }
  0x2a   : > { %3691 = shalt.err (!%p3688_p7)
}
  0x2b   : > { %s3692_s23 = scalar_lea.vmem %s4020_s19, 256  ;;  %p3700_p2 = scmp.lt.s32.totalorder %s4020_s19, %s4020_s19 }
  0x2c   : > { %p3693_p9 = scmp.ne.s32.totalorder %s4020_s19, %s3692_s23  ;;  %p3701_p6 = scmp.lt.s32.totalorder %s3692_s23, %s3692_s23 }
  0x2e   : > { %p3695_p10 = pnand %p3693_p9, %p4043_p13  ;;  %p3702_p12 = por %p3701_p6, %p3700_p2 }
  0x30   : > { %p3696_p1 = pneg %p3695_p10 }
  0x32   : > { %p3703_p0 = pnand %p3702_p12, %p3696_p1 }
  0x34   : > { %3706 = shalt.err (!%p3703_p0)
}
  0x35   : > { %s3906_s25 = smov 64   ;;  %s3907_s26 = smov 4  }
  0x36   : > { %3407 = dma.hbm_to_vmem [thread:$0]  (!%p4027_p11), %s4847_s2, 256, %s4020_s19, [#allocation6], %s3906_s25, %s3906_s25, %s3907_s26  }
  0x37   : > { %s4849_s3 = sld [smem:[#allocation22_spill]] }
  0x3d   : > { %s3707_s21 = scalar_lea.hbm %s4849_s3, 256 }
  0x3e   : > { %p3708_p2 = scmp.ne.s32.totalorder %s4849_s3, %s3707_s21  ;;  %p3714_p10 = scmp.lt.u32.totalorder %s3707_s21, %s4849_s3 }
  0x40   : > { %p3710_p1 = pnand %p3708_p2, %p4043_p13 }
  0x42   : > { %p3711_p6 = pneg %p3710_p1 }
  0x44   : > { %p3716_p3 = pnand %p3714_p10, %p3711_p6 }
  0x46   : > { %3719 = shalt.err (!%p3716_p3)
}
  0x47   : > { %s3720_s19 = scalar_lea.vmem %s4031_s22, 256  ;;  %p3728_p12 = scmp.lt.s32.totalorder %s4031_s22, %s4031_s22 }
  0x48   : > { %p3721_p5 = scmp.ne.s32.totalorder %s4031_s22, %s3720_s19  ;;  %p3729_p0 = scmp.lt.s32.totalorder %s3720_s19, %s3720_s19 }
  0x4a   : > { %p3723_p7 = pnand %p3721_p5, %p4043_p13  ;;  %p3730_p2 = por %p3729_p0, %p3728_p12 }
  0x4c   : > { %p3724_p9 = pneg %p3723_p7 }
  0x4e   : > { %p3731_p1 = pnand %p3730_p2, %p3724_p9 }
  0x50   : > { %3734 = shalt.err (!%p3731_p1)
}
  0x51   : > { %3410 = dma.hbm_to_vmem [thread:$0]  (!%p4027_p11), %s4849_s3, 256, %s4031_s22, [#allocation9], %s3906_s25, %s3906_s25, %s3907_s26  }
  0x52   : > { %s4850_s8 = sld [smem:[#allocation23_spill]] }
  0x58   : > { %s3735_s28 = scalar_lea.hbm %s4850_s8, 1024 }
  0x59   : > { %p3736_p6 = scmp.ne.s32.totalorder %s4850_s8, %s3735_s28  ;;  %p3742_p5 = scmp.lt.u32.totalorder %s3735_s28, %s4850_s8 }
  0x5b   : > { %p3738_p10 = pnand %p3736_p6, %p4043_p13 }
  0x5d   : > { %p3739_p3 = pneg %p3738_p10 }
  0x5f   : > { %p3744_p7 = pnand %p3742_p5, %p3739_p3 }
  0x61   : > { %3747 = shalt.err (!%p3744_p7)
}
  0x62   : > { %s3748_s19 = scalar_lea.vmem %s310_s24, 1024  ;;  %p3756_p2 = scmp.lt.s32.totalorder %s310_s24, %s310_s24 }
  0x63   : > { %p3749_p9 = scmp.ne.s32.totalorder %s310_s24, %s3748_s19  ;;  %p3757_p1 = scmp.lt.s32.totalorder %s3748_s19, %s3748_s19 }
  0x65   : > { %p3751_p12 = pnand %p3749_p9, %p4043_p13  ;;  %p3758_p4 = por %p3757_p1, %p3756_p2 }
  0x67   : > { %p3752_p0 = pneg %p3751_p12 }
  0x69   : > { %p3759_p8 = pnand %p3758_p4, %p3752_p0 }
  0x6b   : > { %3762 = shalt.err (!%p3759_p8)
}
  0x6c   : > { %s4832_s22 = smov 128   ;;  %s4834_s14 = smov 8  }
  0x6d   : > { %3413 = dma.hbm_to_vmem [thread:$0]  (!%p4027_p11), %s4850_s8, 1024, %s310_s24, [#allocation9], %s4832_s22, %s4832_s22, %s4834_s14  }
  0x6e   : > { %s4110_s9 = sadd.s32 1, %s3901_s12   ;;  %s36_s16 = sadd.s32 1, %s3897_s11 }
  0x6f   : > { %s33_s30 = ssub.s32 %s3901_s12, %s4110_s9  ;;  %p43_p8 = scmp.ne.s32.totalorder %s3897_s11, %s3893_s10 }
  0x70   : > { %p34_p4 = scmp.eq.s32.totalorder %s33_s30, 0  ;;  %p44_p13 = scmp.eq.s32.totalorder %s3901_s12, 0 }
  0x71   : > { %p3428_p6 = scmp.lt.s32.totalorder %s3901_s12, 2  ;;  %p4852_p3 = scmp.eq.s32.totalorder %s3997_s13, 1 }
  0x72   : > { %s4120_s27 = scalar_select %p34_p4, %s3897_s11, %s36_s16  }
  0x73   : > { %p45_p10 = por %p44_p13, %p43_p8  ;;  %p4124_p5 = por %p4852_p3, %p43_p8 }
  0x74   : > { %4851 = sst [smem:[#allocation19_spill]] %s4120_s27  ;;  %s323_s28 = sand.u32 1, %s3897_s11  }
  0x75   : > { %s3067_s29 = sshll.u32 %s3901_s12, 10  ;;  %s4130_s24 = sshll.u32 %s323_s28, 6 }
  0x76   : > { %s4854_s0 = sld [smem:[#allocation20_spill]]  ;;  %s327_s19 = scalar_lea.vmem [#allocation2], %s4130_s24 }
  0x77   : > { %s335_s25 = sshll.u32 %s327_s19, 4  ;;  %p4138_p11 = pnand %p3428_p6, %p45_p10  ;;  %s4142_s25 = int_to_ptr.vmem [resolvable:$true] %s335_s25 }
  0x78   : > { %s4147_s18 = scalar_lea.hbm %s4817_s1, %s3067_s29  ;;  %s4149_s21 = scalar_lea.sflag [#allocation3], %s323_s28 }
  0x79   : > { %p3765_p9 = pneg %p4138_p11 }
  0x7c   : > { %s4135_s23 = scalar_lea.hbm %s4854_s0, %s3067_s29  ;;  %s3768_s2 = scalar_lea.hbm %s4854_s0, 2048 }
  0x7d   : > { %s3763_s22 = scalar_lea.hbm %s4135_s23, 1024  ;;  %p3769_p2 = scmp.lt.u32.totalorder %s4135_s23, %s4854_s0 }
  0x7e   : > { %p3764_p7 = scmp.ne.s32.totalorder %s4135_s23, %s3763_s22  ;;  %p3770_p1 = scmp.lt.u32.totalorder %s3768_s2, %s3763_s22 }
  0x7f   : > { %p3772_p8 = scmp.lt.u32.totalorder %s3763_s22, %s4135_s23 }
  0x80   : > { %p3766_p12 = pnand %p3765_p9, %p3764_p7  ;;  %p3771_p4 = por %p3770_p1, %p3769_p2 }
  0x82   : > { %p3767_p0 = pneg %p3766_p12  ;;  %p3773_p13 = por %p3772_p8, %p3771_p4 }
  0x84   : > { %p3774_p6 = pnand %p3773_p13, %p3767_p0 }
  0x86   : > { %3777 = shalt.err (!%p3774_p6)
}
  0x87   : > { %s3778_s28 = scalar_lea.vmem %s4142_s25, 1024  ;;  %s3910_s14 = smov [#allocation2]  }
  0x88   : > { %p3779_p10 = scmp.ne.s32.totalorder %s4142_s25, %s3778_s28  ;;  %s3783_s29 = sshll.u32 %s3910_s14, 4  ;;  %s3784_s29 = int_to_ptr.vmem [resolvable:$false] %s3783_s29 }
  0x89   : > { %s3785_s3 = scalar_lea.vmem %s3784_s29, 2048  ;;  %p3786_p12 = scmp.lt.s32.totalorder %s4142_s25, %s3784_s29 }
  0x8a   : > { %p3781_p3 = pnand %p3779_p10, %p3765_p9  ;;  %p3787_p2 = scmp.lt.s32.totalorder %s3785_s3, %s3778_s28 }
  0x8c   : > { %p3782_p7 = pneg %p3781_p3  ;;  %p3788_p1 = por %p3787_p2, %p3786_p12 }
  0x8e   : > { %p3789_p4 = pnand %p3788_p1, %p3782_p7 }
  0x90   : > { %3792 = shalt.err (!%p3789_p4)
}
  0x91   : > { %s4856_s2 = smov 8   ;;  %s4857_s8 = smov 128  }
  0x92   : > { %3417 = dma.hbm_to_vmem [thread:$0]  (!%p4138_p11), %s4135_s23, 1024, %s4142_s25, %s4149_s21, %s4857_s8, %s4857_s8, %s4856_s2  }
  0x93   : > { %s349_s22 = scalar_lea.vmem [#allocation5], %s4130_s24  ;;  %s345_s16 = sand.u32 1, %s3901_s12  }
  0x94   : > { %s357_s30 = sshll.u32 %s349_s22, 4  ;;  %s4184_s19 = scalar_lea.sflag [#allocation6], %s345_s16  ;;  %s4182_s30 = int_to_ptr.vmem [resolvable:$true] %s357_s30 }
  0x95   : > { %s3793_s28 = scalar_lea.hbm %s4147_s18, 1024  ;;  %s3798_s3 = scalar_lea.hbm %s4817_s1, 2048 }
  0x96   : > { %p3794_p0 = scmp.ne.s32.totalorder %s4147_s18, %s3793_s28  ;;  %p3799_p6 = scmp.lt.u32.totalorder %s4147_s18, %s4817_s1 }
  0x97   : > { %p3800_p10 = scmp.lt.u32.totalorder %s3798_s3, %s3793_s28  ;;  %p3802_p7 = scmp.lt.u32.totalorder %s3793_s28, %s4147_s18 }
  0x98   : > { %p3796_p8 = pnand %p3794_p0, %p3765_p9 }
  0x99   : > { %p3801_p3 = por %p3800_p10, %p3799_p6 }
  0x9a   : > { %p3797_p13 = pneg %p3796_p8 }
  0x9b   : > { %p3803_p12 = por %p3802_p7, %p3801_p3 }
  0x9d   : > { %p3804_p2 = pnand %p3803_p12, %p3797_p13 }
  0x9f   : > { %3807 = shalt.err (!%p3804_p2)
}
  0xa0   : > { %s3808_s24 = scalar_lea.vmem %s4182_s30, 1024  ;;  %s3911_s23 = smov [#allocation5]  }
  0xa1   : > { %p3809_p1 = scmp.ne.s32.totalorder %s4182_s30, %s3808_s24  ;;  %s3813_s25 = sshll.u32 %s3911_s23, 4  ;;  %s3814_s25 = int_to_ptr.vmem [resolvable:$false] %s3813_s25 }
  0xa2   : > { %s3815_s0 = scalar_lea.vmem %s3814_s25, 2048  ;;  %p3816_p8 = scmp.lt.s32.totalorder %s4182_s30, %s3814_s25 }
  0xa3   : > { %p3811_p4 = pnand %p3809_p1, %p3765_p9  ;;  %p3817_p6 = scmp.lt.s32.totalorder %s3815_s0, %s3808_s24 }
  0xa5   : > { %p3812_p0 = pneg %p3811_p4  ;;  %p3818_p10 = por %p3817_p6, %p3816_p8 }
  0xa7   : > { %p3819_p3 = pnand %p3818_p10, %p3812_p0 }
  0xa9   : > { %3822 = shalt.err (!%p3819_p3)
}
  0xaa   : > { %3420 = dma.hbm_to_vmem [thread:$0]  (!%p4138_p11), %s4147_s18, 1024, %s4182_s30, %s4184_s19, %s4857_s8, %s4857_s8, %s4856_s2  }
  0xab   : > { %p4858_p9 = scmp.ne.s32.totalorder %s4845_s17, 0 }
  0xac   : > { %s4216_s27 = sand.u32 (!%p4858_p9), 1, %s3893_s10   ;;  %p4859_p13 = scmp.ne.s32.totalorder (!%p4858_p9), %s4842_s15, 0 }
  0xad   : > { %369 = sbr.rel (%p4858_p9) target bundleno = 3415 (0xd57), region = 56  ;;  %s4219_s21 = sshll.u32 (!%p4858_p9), %s4216_s27, 6 }
  0xae   : > { %s372_s26 = scalar_lea.sflag (!%p4858_p9), [#allocation3], %s4216_s27  ;;  %s4223_s22 = scalar_lea.vmem (!%p4858_p9), [#allocation2], %s4219_s21 }
  0xb4   : > { %3868 = dma.done.wait (%p4859_p13), %s372_s26, 1024  }
  0xb5   : > { %3870 = vsyncadd (%p4859_p13), %s372_s26, 4294966272  ;;  %s380_s17 = sand.u32 1, %s3997_s13   ;;  %s4231_s2 = scalar_lea.vmem [#allocation5], %s4219_s21 }
  0xb6   : > { %s381_s18 = scalar_lea.sflag [#allocation6], %s380_s17 }
  0xb7   : > { %3872 = dma.done.wait (%p4859_p13), %s381_s18, 1024  }
  0xb8   : > { %3874 = vsyncadd (%p4859_p13), %s381_s18, 4294966272  ;;  %p4860_p11 = scmp.eq.s32.totalorder %s3997_s13, 0 }
  0xba   : > { %3876 = dma.done.wait (%p4860_p11), [#allocation6], 256   ;;  %p4861_p7 = pmov %p4860_p11 }
  0xbc   : > { %3878 = vsyncadd (%p4861_p7), [#allocation6], 4294967040  ;;  %p4862_p12 = pmov %p4861_p7 }
  0xbd   : > { %p4863_p2 = pmov %p4861_p7 }
  0xbe   : > { %3880 = dma.done.wait (%p4862_p12), [#allocation9], 1280  }
  0xbf   : > { %3882 = vsyncadd (%p4863_p2), [#allocation9], 4294966016  ;;  %v3545_v0 = vld [vmem:[#allocation7] sm:$0xff]   ;;  %v3546_v1 = vld [vmem:[#allocation7 + $0x8] sm:$0xff]   ;;  %vm487_vm0 = vcmask 261120   ;;  %v3912_v28 = vmov 0.0  }
  0xc0   : > { %3382 = vmatprep.subr.bf16.mxu1 %v3545_v0  ;;  %v444_v2 = vld [vmem:[%s4223_s22 + $0x20] sm:$0xff]  ;;  %v445_v3 = vld [vmem:[%s4223_s22 + $0x28] sm:$0xff]  ;;  %v446_v4 = vld [vmem:[%s4223_s22 + $0x30] sm:$0xff]  ;;  %3154 = vmatprep.subr.bf16.mxu0 %v3545_v0  ;;  %vm3913_vm1 = vmmov 0   ;;  %vm675_vm2 = vcmask 64512   ;;  %vm864_vm3 = vcmask 130048  }
  0xc1   : > { %3384 = vmatpush3.bf16.msra.mxu1 %v3545_v0  ;;  %v450_v5 = vpack.c.bf16 %v445_v3, %v444_v2  ;;  %v447_v6 = vld [vmem:[%s4223_s22 + $0x38] sm:$0xff]  ;;  %3155 = vmatpush3.bf16.msra.mxu0 %v3545_v0  ;;  %v3547_v7 = vld [vmem:[#allocation8] sm:$0xff]   ;;  %v452_v8 = vld [vmem:[%s4231_s2] sm:$0xff]  ;;  %s3914_s19 = smov 96   ;;  %s3915_s28 = smov 120   ;;  %vm2726_vm4 = vcmask 195584  }
  0xc2   : > { %3383 = vmatprep.subr.bf16.mxu1 %v3546_v1  ;;  %3156 = vmatprep.subr.bf16.mxu0 %v3546_v1  ;;  %v453_v9 = vld [vmem:[%s4231_s2 + $0x8] sm:$0xff]  ;;  %v451_v10 = vpack.c.bf16 %v447_v6, %v446_v4  ;;  %v440_v11 = vld [vmem:[%s4223_s22] sm:$0xff]  ;;  %v3548_v14 = vld [vmem:[#allocation8 + $0x8] sm:$0xff]   ;;  %s3916_s14 = smov 88   ;;  %s3917_s29 = smov 112  }
  0xc3   : > { %3162 = vmatprep.mubr.msk.bf16.mxu1 %vm487_vm0, %v450_v5  ;;  %v460_v12 = vpack.c.bf16 %v453_v9, %v452_v8  ;;  %v441_v13 = vld [vmem:[%s4223_s22 + $0x8] sm:$0xff]  ;;  %v442_v16 = vld [vmem:[%s4223_s22 + $0x10] sm:$0xff]  ;;  %v443_v17 = vld [vmem:[%s4223_s22 + $0x18] sm:$0xff]  ;;  %s3918_s3 = smov 80   ;;  %s3919_s24 = smov 104  }
  0xc4   : > { %v448_v15 = vpack.c.bf16 %v441_v13, %v440_v11  ;;  %v449_v18 = vpack.c.bf16 %v443_v17, %v442_v16  ;;  %v454_v19 = vld [vmem:[%s4231_s2 + $0x10] sm:$0xff]  ;;  %v455_v20 = vld [vmem:[%s4231_s2 + $0x18] sm:$0xff]  ;;  %v456_v21 = vld [vmem:[%s4231_s2 + $0x20] sm:$0xff]  ;;  %s3920_s23 = smov 72   ;;  %s3921_s25 = smov 8  }
  0xc5   : > { %3385 = vmatpush3.bf16.msra.mxu1 %v3546_v1  ;;  %3157 = vmatpush3.bf16.msra.mxu0 %v3546_v1  ;;  %v457_v22 = vld [vmem:[%s4231_s2 + $0x28] sm:$0xff]  ;;  %v461_v23 = vpack.c.bf16 %v455_v20, %v454_v19  ;;  %v458_v25 = vld [vmem:[%s4231_s2 + $0x30] sm:$0xff]  ;;  %v459_v26 = vld [vmem:[%s4231_s2 + $0x38] sm:$0xff]  ;;  %s3922_s0 = smov 16   ;;  %s3923_s2 = smov 24  }
  0xc6   : > { %3166 = vmatprep.subr.bf16.mxu1 %v3547_v7  ;;  %3158 = vmatprep.mubr.msk.bf16.mxu0 %vm487_vm0, %v448_v15  ;;  %v462_v24 = vpack.c.bf16 %v457_v22, %v456_v21  ;;  %v463_v27 = vpack.c.bf16 %v459_v26, %v458_v25  ;;  %v3007_v29 = vld [vmem:[%s4820_s4] ss:$0 sm:$0xff]  ;;  %v674_v13 = vld [vmem:[#allocation10 + $0x8] sm:$0xff]  ;;  %s435_s30 = scalar_lea.vmem [#allocation11], %s4219_s21  ;;  %s3071_s16 = sshll.u32 %s3997_s13, 10 }
  0xc7   : > { %3178 = vmatprep.subr.bf16.mxu0 %v3912_v28  ;;  %v3014_v50 = vld [vmem:[%s4821_s5] ss:$0 sm:$0xff]  ;;  %s2848_s13 = scalar_lea.sflag [#allocation4], %s4216_s27 }
  0xc8   : > { %3163 = vmatmul.mubr.msk.bf16.vlgmr.msra.gmra.mrb[0].mxu1 %vm487_vm0, %v451_v10  ;;  %3159 = vmatmul.mubr.msk.bf16.vlgmr.msra.gmra.mrb[0].mxu0 %vm487_vm0, %v449_v18  ;;  %v673_v11 = vld [vmem:[#allocation10] sm:$0xff] }
  0xc9   : > { %3167 = vmatpush3.bf16.msra.mxu1 %v3547_v7  ;;  %3170 = vmatprep.mubr.msk.bf16.mxu1 %vm487_vm0, %v460_v12 }
  0xca   : > { %3168 = vmatprep.subr.bf16.mxu1 %v3548_v14  ;;  %3180 = vmatprep.mubr.msk.bf16.mxu0 %vm3913_vm1, %v3912_v28 }
  0xcd   : > { %3169 = vmatpush3.bf16.msra.mxu1 %v3548_v14 }
  0xce   : > { %3184 = vmatprep.subr.bf16.mxu1 %v3912_v28 }
  0xd0   : > { %3171 = vmatmul.mubr.msk.bf16.vlgmr.msra.gmra.mrb[4].mxu1 %vm487_vm0, %v461_v23 }
  0xd1   : > { %3174 = vmatprep.mubr.msk.bf16.mxu1 %vm487_vm0, %v462_v24 }
  0xd8   : > { %3175 = vmatmul.mubr.msk.bf16.gmra.mrb[8].mxu1 %vm487_vm0, %v463_v27 }
  0xd9   : > { %3186 = vmatprep.mubr.msk.bf16.mxu1 %vm3913_vm1, %v3912_v28 }
 0x19b   : > { %v3164_v30 = vpop.f32.mrb[0].mxu1  ;;  %v3160_v33 = vpop.f32.mrb[0].mxu0 }
 0x19c   : > { %v550_v31 = vpop.f32.mrb[1].mxu1  ;;  %v559_v34 = vadd.f32 %v3164_v30, %v3007_v29  ;;  %v543_v37 = vadd.f32 %v3160_v33, %v3007_v29  ;;  %v534_v38 = vpop.f32.mrb[1].mxu0 }
 0x19d   : > { %v3165_v32 = vpop.f32.mrb[2].mxu1  ;;  %v551_v39 = vadd.f32 %v3007_v29, %v550_v31  ;;  %v535_v41 = vadd.f32 %v3007_v29, %v534_v38  ;;  %v3161_v42 = vpop.f32.mrb[2].mxu0 }
 0x19e   : > { %v562_v35 = vadd.f32 %v3165_v32, %v3007_v29  ;;  %v553_v36 = vpop.f32.mrb[3].mxu1  ;;  %v546_v44 = vadd.f32 %v3161_v42, %v3007_v29  ;;  %v537_v45 = vpop.f32.mrb[3].mxu0 }
 0x19f   : > { %v554_v40 = vadd.f32 %v3007_v29, %v553_v36  ;;  %v538_v47 = vadd.f32 %v3007_v29, %v537_v45 }
 0x1a0   : > { %v4278_v43 = vpack.c.bf16 %v562_v35, %v559_v34  ;;  %v4282_v48 = vpack.c.bf16 %v546_v44, %v543_v37 }
 0x1a1   : > { %v4280_v46 = vpack.c.bf16 %v554_v40, %v551_v39  ;;  %v4287_v51 = vpack.c.bf16 %v538_v47, %v535_v41 }
 0x1a3   : > { %v3172_v49 = vpop.f32.mrb[4].mxu1 }
 0x1a4   : > { %v634_v52 = vpop.f32.mrb[5].mxu1  ;;  %v643_v54 = vadd.f32 %v3172_v49, %v3014_v50 }
 0x1a5   : > { %v3173_v53 = vpop.f32.mrb[6].mxu1  ;;  %v635_v57 = vadd.f32 %v3014_v50, %v634_v52 }
 0x1a6   : > { %v646_v55 = vadd.f32 %v3173_v53, %v3014_v50  ;;  %v637_v56 = vpop.f32.mrb[7].mxu1 }
 0x1a7   : > { %v638_v58 = vadd.f32 %v3014_v50, %v637_v56 }
 0x1a8   : > { %v4289_v59 = vpack.c.bf16 %v646_v55, %v643_v54 }
 0x1a9   : > { %v4291_v60 = vpack.c.bf16 %v638_v58, %v635_v57 }
 0x1aa   : > { %v727_v61 = vsel %vm675_vm2, %v4289_v59, 0 }
 0x1ab   : > { %v3176_v62 = vpop.f32.mrb[8].mxu1  ;;  %3185 = vmatpush3.bf16.xpose.msra.mxu1 %v727_v61  ;;  %v680_v63 = vsel %vm675_vm2, %v4291_v60, 0 }
 0x1ac   : > { %v659_v0 = vadd.f32 %v3176_v62, %v3014_v50  ;;  %v650_v1 = vpop.f32.mrb[9].mxu1  ;;  %3179 = vmatpush3.bf16.xpose.msra.mxu0 %v680_v63  ;;  %3196 = vmatprep.subr.bf16.mxu1 %v3912_v28 }
 0x1ad   : > { %v651_v2 = vadd.f32 %v3014_v50, %v650_v1  ;;  %v3177_v3 = vpop.f32.mrb[10].mxu1  ;;  %3190 = vmatprep.subr.bf16.mxu0 %v3912_v28 }
 0x1ae   : > { %v662_v4 = vadd.f32 %v3177_v3, %v3014_v50  ;;  %v653_v5 = vpop.f32.mrb[11].mxu1 }
 0x1af   : > { %v654_v6 = vadd.f32 %v3014_v50, %v653_v5 }
 0x1b0   : > { %v4299_v7 = vpack.c.bf16 %v662_v4, %v659_v0 }
 0x1b1   : > { %v4301_v8 = vpack.c.bf16 %v654_v6, %v651_v2 }
 0x1b2   : > { %3187 = vmatmul.mubr.msk.bf16.vlgmr.msra.gmra.mrb[12].mxu1 %vm675_vm2, %v4282_v48  ;;  %v821_v9 = vsel %vm675_vm2, %v4299_v7, 0 }
 0x1b3   : > { %3181 = vmatmul.mubr.msk.bf16.vlgmr.msra.gmra.mrb[4].mxu0 %vm675_vm2, %v4287_v51  ;;  %3197 = vmatpush3.bf16.xpose.msra.mxu1 %v821_v9  ;;  %v774_v10 = vsel %vm675_vm2, %v4301_v8, 0 }
 0x1b4   : > { %3191 = vmatpush3.bf16.xpose.msra.mxu0 %v774_v10  ;;  %3198 = vmatprep.mubr.msk.bf16.mxu1 %vm3913_vm1, %v3912_v28 }
 0x1b5   : > { %3192 = vmatprep.mubr.msk.bf16.mxu0 %vm3913_vm1, %v3912_v28  ;;  %3208 = vmatprep.subr.bf16.mxu1 %v3912_v28 }
 0x1b6   : > { %3202 = vmatprep.subr.bf16.mxu0 %v3912_v28 }
 0x1ba   : > { %3199 = vmatmul.mubr.msk.bf16.vlgmr.msra.gmra.mrb[16].mxu1 %vm675_vm2, %v4278_v43 }
 0x1bb   : > { %3193 = vmatmul.mubr.msk.bf16.vlgmr.msra.gmra.mrb[8].mxu0 %vm675_vm2, %v4280_v46  ;;  %3210 = vmatprep.mubr.msk.bf16.mxu1 %vm3913_vm1, %v3912_v28 }
 0x1bc   : > { %3204 = vmatprep.mubr.msk.bf16.mxu0 %vm3913_vm1, %v3912_v28 }
 0x285   : > { %v763_v12 = vpop.f32.mrb[12].mxu1 }
 0x286   : > { %v764_v14 = vadd.f32 %v763_v12, %v673_v11  ;;  %v716_v15 = vpop.f32.mrb[4].mxu0  ;;  %v3188_v16 = vpop.f32.mrb[13].mxu1 }
 0x287   : > { %v717_v17 = vadd.f32 %v716_v15, %v673_v11  ;;  %v3182_v18 = vpop.f32.mrb[5].mxu0  ;;  %v766_v19 = vpop.f32.mrb[14].mxu1 }
 0x288   : > { %v871_v20 = vsel %vm864_vm3, %v764_v14, -inf  ;;  %v767_v21 = vadd.f32 %v766_v19, %v674_v13  ;;  %v719_v22 = vpop.f32.mrb[6].mxu0  ;;  %v3189_v23 = vpop.f32.mrb[15].mxu1 }
 0x289   : > { %872 = vmax.xlane.f32.xlu1 %v871_v20  ;;  %v865_v24 = vsel %vm864_vm3, %v717_v17, -inf  ;;  %v720_v25 = vadd.f32 %v719_v22, %v674_v13  ;;  %v3183_v26 = vpop.f32.mrb[7].mxu0 }
 0x28a   : > { %866 = vmax.xlane.f32.xlu0 %v865_v24  ;;  %v874_v27 = vsel %vm864_vm3, %v767_v21, -inf }
 0x28b   : > { %v868_v30 = vsel %vm864_vm3, %v720_v25, -inf }
 0x28d   : > { %875 = vmax.xlane.f32.xlu1 %v874_v27  ;;  %v857_v29 = vpop.f32.mrb[16].mxu1 }
 0x28e   : > { %v3200_v31 = vpop.f32.mrb[17].mxu1  ;;  %869 = vmax.xlane.f32.xlu0 %v868_v30  ;;  %v810_v32 = vpop.f32.mrb[8].mxu0  ;;  %v858_v38 = vadd.f32 %v857_v29, %v673_v11 }
 0x28f   : > { %v811_v33 = vadd.f32 %v810_v32, %v673_v11  ;;  %v3194_v34 = vpop.f32.mrb[9].mxu0  ;;  %v860_v35 = vpop.f32.mrb[18].mxu1 }
 0x290   : > { %v813_v36 = vpop.f32.mrb[10].mxu0  ;;  %v3201_v37 = vpop.f32.mrb[19].mxu1  ;;  %v883_v41 = vsel %vm864_vm3, %v858_v38, -inf  ;;  %v861_v42 = vadd.f32 %v860_v35, %v674_v13 }
 0x291   : > { %v3195_v39 = vpop.f32.mrb[11].mxu0  ;;  %v877_v40 = vsel %vm864_vm3, %v811_v33, -inf  ;;  %v4334_v44 = vadd.f32 %v813_v36, %v674_v13 }
 0x292   : > { %878 = vmax.xlane.f32.xlu0 %v877_v40  ;;  %v886_v45 = vsel %vm864_vm3, %v861_v42, -inf }
 0x293   : > { %v880_v47 = vsel %vm864_vm3, %v4334_v44, -inf }
 0x296   : > { %884 = vmax.xlane.f32.xlu0 %v883_v41 }
 0x29e   : > { %1006 = vrot.lane.b32.xlu1 %v4289_v59, %s3914_s19 }
 0x2a2   : > { %1054 = vrot.lane.b32.xlu1 %v4301_v8, %s3914_s19 }
 0x2ac   : > { %958 = vrot.lane.b32.xlu0 %v4291_v60, %s3914_s19 }
 0x2c6   : > { %887 = vmax.xlane.f32.xlu1 %v886_v45 }
 0x2ca   : > { %881 = vmax.xlane.f32.xlu1 %v880_v47 }
 0x2db   : > { %1102 = vrot.lane.b32.xlu1 %v4299_v7, %s3914_s19  ;;  %s2862_s19 = sshll.u32 %s435_s30, 4  ;;  %s4769_s19 = int_to_ptr.vmem [resolvable:$true] %s2862_s19 }
 0x316   : > { %v873_v49 = vpop.xlane.xlu1 %872 }
 0x317   : > { %v891_v50 = vsub.f32 %v764_v14, %v873_v49  ;;  %v867_v52 = vpop.xlane.xlu0 %866 }
 0x318   : > { %v889_v53 = vsub.f32 %v717_v17, %v867_v52 }
 0x319   : > { %v901_v54 = vmul.f32 1.442695, %v891_v50 }
 0x31a   : > { %v897_v55 = vmul.f32 1.442695, %v889_v53  ;;  %v876_v56 = vpop.xlane.xlu1 %875 }
 0x31b   : > { %3551 = vpow2.f32 %v901_v54  ;;  %v892_v57 = vsub.f32 %v767_v21, %v876_v56  ;;  %v870_v58 = vpop.xlane.xlu0 %869 }
 0x31c   : > { %v890_v61 = vsub.f32 %v720_v25, %v870_v58  ;;  %3553 = vpow2.f32 %v897_v55 }
 0x31d   : > { %v903_v62 = vmul.f32 1.442695, %v892_v57 }
 0x31e   : > { %v899_v63 = vmul.f32 1.442695, %v890_v61  ;;  %v1007_v0 = vpop.permute.xlu1 %1006 }
 0x31f   : > { %3555 = vpow2.f32 %v903_v62  ;;  %3209 = vmatpush3.bf16.msra.mxu1 %v1007_v0  ;;  %v879_v1 = vpop.xlane.xlu0 %878 }
 0x320   : > { %3220 = vmatprep.subr.bf16.mxu1 %v3912_v28  ;;  %3557 = vpow2.f32 %v899_v63  ;;  %v893_v2 = vsub.f32 %v811_v33, %v879_v1 }
 0x322   : > { %v905_v6 = vmul.f32 1.442695, %v893_v2  ;;  %v1055_v22 = vpop.permute.xlu1 %1054 }
 0x323   : > { %v885_v3 = vpop.xlane.xlu0 %884 }
 0x324   : > { %v895_v4 = vsub.f32 %v858_v38, %v885_v3 }
 0x325   : > { %v3552_v5 = vpop.eup %3551 }
 0x326   : > { %v909_v9 = vmul.f32 1.442695, %v895_v4  ;;  %v919_v10 = vsel %vm864_vm3, %v3552_v5, 0.0  ;;  %v3554_v11 = vpop.eup %3553 }
 0x327   : > { %920 = vadd.xlane.f32.xlu0 %v919_v10  ;;  %v959_v12 = vpop.permute.xlu0 %958  ;;  %v913_v14 = vsel %vm864_vm3, %v3554_v11, 0.0 }
 0x328   : > { %3559 = vpow2.f32 %v909_v9  ;;  %3203 = vmatpush3.bf16.msra.mxu0 %v959_v12 }
 0x329   : > { %v3556_v13 = vpop.eup %3555  ;;  %3214 = vmatprep.subr.bf16.mxu0 %v3912_v28  ;;  %3561 = vpow2.f32 %v905_v6 }
 0x32a   : > { %v922_v15 = vsel %vm864_vm3, %v3556_v13, 0.0  ;;  %v3558_v16 = vpop.eup %3557 }
 0x32b   : > { %914 = vadd.xlane.f32.xlu0 %v913_v14  ;;  %923 = vadd.xlane.f32.xlu1 %v922_v15  ;;  %v916_v17 = vsel %vm864_vm3, %v3558_v16, 0.0 }
 0x32f   : > { %917 = vadd.xlane.f32.xlu1 %v916_v17 }
 0x332   : > { %v4346_v18 = vpop.eup %3559 }
 0x333   : > { %v931_v19 = vsel %vm864_vm3, %v4346_v18, 0.0  ;;  %v4350_v20 = vpop.eup %3561 }
 0x334   : > { %932 = vadd.xlane.f32.xlu0 %v931_v19  ;;  %v925_v21 = vsel %vm864_vm3, %v4350_v20, 0.0 }
 0x338   : > { %926 = vadd.xlane.f32.xlu0 %v925_v21 }
 0x340   : > { %1207 = vrot.lane.b32.xlu1 %v4289_v59, %s3915_s28 }
 0x34e   : > { %1155 = vrot.lane.b32.xlu0 %v4291_v60, %s3915_s28 }
 0x352   : > { %1153 = vrot.lane.b32.xlu0 %v4287_v51, %s3915_s28 }
 0x353   : > { %v888_v23 = vpop.xlane.xlu1 %887 }
 0x354   : > { %v896_v24 = vsub.f32 %v861_v42, %v888_v23 }
 0x356   : > { %v911_v25 = vmul.f32 1.442695, %v896_v24  ;;  %1205 = vrot.lane.b32.xlu0 %v4282_v48, %s3915_s28 }
 0x357   : > { %v882_v26 = vpop.xlane.xlu1 %881 }
 0x358   : > { %3563 = vpow2.f32 %v911_v25  ;;  %v894_v27 = vsub.f32 %v4334_v44, %v882_v26 }
 0x35a   : > { %v907_v29 = vmul.f32 1.442695, %v894_v27  ;;  %1257 = vrot.lane.b32.xlu0 %v4280_v46, %s3915_s28 }
 0x35b   : > { %v1103_v34 = vpop.permute.xlu1 %1102 }
 0x35c   : > { %3565 = vpow2.f32 %v907_v29 }
 0x362   : > { %v3564_v30 = vpop.eup %3563 }
 0x363   : > { %v934_v31 = vsel %vm864_vm3, %v3564_v30, 0.0 }
 0x364   : > { %935 = vadd.xlane.f32.xlu1 %v934_v31 }
 0x366   : > { %v3566_v32 = vpop.eup %3565 }
 0x367   : > { %v928_v33 = vsel %vm864_vm3, %v3566_v32, 0.0 }
 0x368   : > { %929 = vadd.xlane.f32.xlu1 %v928_v33 }
 0x379   : > { %1259 = vrot.lane.b32.xlu1 %v4301_v8, %s3915_s28 }
 0x37d   : > { %1311 = vrot.lane.b32.xlu1 %v4299_v7, %s3915_s28 }
 0x381   : > { %1309 = vrot.lane.b32.xlu1 %v4278_v43, %s3915_s28 }
 0x3b4   : > { %v921_v35 = vpop.xlane.xlu0 %920 }
 0x3b5   : > { %3567 = vrcp.f32 %v921_v35  ;;  %v1150_v35 = vld [vmem:[#allocation10 + $0x10] sm:$0xff] }
 0x3b8   : > { %v915_v36 = vpop.xlane.xlu0 %914  ;;  %v924_v37 = vpop.xlane.xlu1 %923 }
 0x3b9   : > { %3569 = vrcp.f32 %v924_v37 }
 0x3ba   : > { %3571 = vrcp.f32 %v915_v36 }
 0x3bc   : > { %v918_v38 = vpop.xlane.xlu1 %917 }
 0x3bd   : > { %3573 = vrcp.f32 %v918_v38 }
 0x3bf   : > { %v3568_v39 = vpop.eup %3567 }
 0x3c0   : > { %v947_v42 = vmul.f32 %v3568_v39, %v3552_v5  ;;  %v1208_v54 = vpop.permute.xlu1 %1207 }
 0x3c1   : > { %v933_v53 = vpop.xlane.xlu0 %932  ;;  %v1213_v5 = vsel %vm675_vm2, %v1208_v54, 0 }
 0x3c2   : > { %3575 = vrcp.f32 %v933_v53 }
 0x3c3   : > { %v3570_v40 = vpop.eup %3569 }
 0x3c4   : > { %v3572_v41 = vpop.eup %3571  ;;  %v948_v44 = vmul.f32 %v3570_v40, %v3556_v13 }
 0x3c5   : > { %v945_v49 = vmul.f32 %v3572_v41, %v3554_v11  ;;  %v927_v55 = vpop.xlane.xlu0 %926 }
 0x3c6   : > { %v954_v47 = vpack.c.bf16 %v948_v44, %v947_v42  ;;  %v1151_v44 = vld [vmem:[#allocation10 + $0x18] sm:$0xff] }
 0x3c7   : > { %v3574_v45 = vpop.eup %3573 }
 0x3c8   : > { %v946_v50 = vmul.f32 %v3574_v45, %v3558_v16  ;;  %3211 = vmatmul.mubr.msk.bf16.vlgmr.msra.gmra.mrb[20].mxu1 %vm864_vm3, %v954_v47 }
 0x3c9   : > { %3221 = vmatpush3.bf16.msra.mxu1 %v1103_v34  ;;  %3222 = vmatprep.mubr.msk.bf16.mxu1 %vm3913_vm1, %v3912_v28  ;;  %v1156_v62 = vpop.permute.xlu0 %1155 }
 0x3ca   : > { %v953_v52 = vpack.c.bf16 %v946_v50, %v945_v49  ;;  %3232 = vmatprep.subr.bf16.mxu1 %v3912_v28  ;;  %v1161_v12 = vsel %vm675_vm2, %v1156_v62, 0 }
 0x3cc   : > { %3205 = vmatmul.mubr.msk.bf16.vlgmr.msra.gmra.mrb[12].mxu0 %vm864_vm3, %v953_v52  ;;  %v3576_v58 = vpop.eup %3575 }
 0x3cd   : > { %3215 = vmatpush3.bf16.msra.mxu0 %v1055_v22  ;;  %3216 = vmatprep.mubr.msk.bf16.mxu0 %vm3913_vm1, %v3912_v28  ;;  %v951_v63 = vmul.f32 %v3576_v58, %v4346_v18  ;;  %v1154_v10 = vpop.permute.xlu0 %1153 }
 0x3ce   : > { %3226 = vmatprep.subr.bf16.mxu0 %v3912_v28 }
 0x3d1   : > { %v1206_v14 = vpop.permute.xlu0 %1205 }
 0x3d5   : > { %v1258_v18 = vpop.permute.xlu0 %1257 }
 0x3f1   : > { %v936_v56 = vpop.xlane.xlu1 %935 }
 0x3f2   : > { %3577 = vrcp.f32 %v936_v56 }
 0x3f3   : > { %3579 = vrcp.f32 %v927_v55 }
 0x3f5   : > { %v930_v57 = vpop.xlane.xlu1 %929 }
 0x3f6   : > { %3581 = vrcp.f32 %v930_v57 }
 0x3f9   : > { %v1260_v4 = vpop.permute.xlu1 %1259 }
 0x3fa   : > { %v1265_v16 = vsel %vm675_vm2, %v1260_v4, 0 }
 0x3fc   : > { %v3578_v61 = vpop.eup %3577 }
 0x3fd   : > { %v952_v0 = vmul.f32 %v3578_v61, %v3564_v30  ;;  %v3580_v1 = vpop.eup %3579  ;;  %v1312_v13 = vpop.permute.xlu1 %1311 }
 0x3fe   : > { %v949_v6 = vmul.f32 %v3580_v1, %v4350_v20  ;;  %v1317_v15 = vsel %vm675_vm2, %v1312_v13, 0 }
 0x3ff   : > { %v956_v2 = vpack.c.bf16 %v952_v0, %v951_v63 }
 0x400   : > { %v3582_v3 = vpop.eup %3581 }
 0x401   : > { %v950_v9 = vmul.f32 %v3582_v3, %v3566_v32  ;;  %3223 = vmatmul.mubr.msk.bf16.vlgmr.msra.gmra.mrb[24].mxu1 %vm864_vm3, %v956_v2  ;;  %v1310_v17 = vpop.permute.xlu1 %1309 }
 0x402   : > { %3233 = vmatpush3.bf16.xpose.msra.mxu1 %v1213_v5  ;;  %3234 = vmatprep.mubr.msk.bf16.mxu1 %vm3913_vm1, %v3912_v28 }
 0x403   : > { %v955_v11 = vpack.c.bf16 %v950_v9, %v949_v6  ;;  %3244 = vmatprep.subr.bf16.mxu1 %v3912_v28 }
 0x405   : > { %3217 = vmatmul.mubr.msk.bf16.vlgmr.msra.gmra.mrb[16].mxu0 %vm864_vm3, %v955_v11 }
 0x406   : > { %3227 = vmatpush3.bf16.xpose.msra.mxu0 %v1161_v12  ;;  %3228 = vmatprep.mubr.msk.bf16.mxu0 %vm3913_vm1, %v3912_v28 }
 0x407   : > { %3238 = vmatprep.subr.bf16.mxu0 %v3912_v28 }
 0x409   : > { %3235 = vmatmul.mubr.msk.bf16.vlgmr.msra.gmra.mrb[28].mxu1 %vm675_vm2, %v1206_v14 }
 0x40a   : > { %3245 = vmatpush3.bf16.xpose.msra.mxu1 %v1317_v15  ;;  %3246 = vmatprep.mubr.msk.bf16.mxu1 %vm3913_vm1, %v3912_v28 }
 0x40b   : > { %3256 = vmatprep.subr.bf16.mxu1 %v3912_v28 }
 0x40d   : > { %3229 = vmatmul.mubr.msk.bf16.vlgmr.msra.gmra.mrb[20].mxu0 %vm675_vm2, %v1154_v10 }
 0x40e   : > { %3239 = vmatpush3.bf16.xpose.msra.mxu0 %v1265_v16  ;;  %3240 = vmatprep.mubr.msk.bf16.mxu0 %vm3913_vm1, %v3912_v28 }
 0x40f   : > { %3250 = vmatprep.subr.bf16.mxu0 %v3912_v28 }
 0x411   : > { %3247 = vmatmul.mubr.msk.bf16.vlgmr.msra.gmra.mrb[32].mxu1 %vm675_vm2, %v1310_v17 }
 0x412   : > { %3258 = vmatprep.mubr.msk.bf16.mxu1 %vm3913_vm1, %v3912_v28 }
 0x415   : > { %3241 = vmatmul.mubr.msk.bf16.vlgmr.msra.gmra.mrb[24].mxu0 %vm675_vm2, %v1258_v18 }
 0x416   : > { %3252 = vmatprep.mubr.msk.bf16.mxu0 %vm3913_vm1, %v3912_v28 }
 0x49b   : > { %v4401_v19 = vpop.f32.mrb[20].mxu1 }
 0x49c   : > { %v3212_v20 = vpop.f32.mrb[21].mxu1 }
 0x49d   : > { %v4403_v21 = vpop.f32.mrb[22].mxu1 }
 0x49e   : > { %v3213_v22 = vpop.f32.mrb[23].mxu1 }
 0x49f   : > { %v4405_v23 = vpop.f32.mrb[12].mxu0 }
 0x4a0   : > { %v3206_v24 = vpop.f32.mrb[13].mxu0 }
 0x4a1   : > { %v4407_v25 = vpop.f32.mrb[14].mxu0 }
 0x4a2   : > { %v3207_v26 = vpop.f32.mrb[15].mxu0 }
 0x4d4   : > { %v4409_v27 = vpop.f32.mrb[24].mxu1 }
 0x4d5   : > { %v3224_v29 = vpop.f32.mrb[25].mxu1 }
 0x4d6   : > { %v4411_v30 = vpop.f32.mrb[26].mxu1 }
 0x4d7   : > { %v3225_v31 = vpop.f32.mrb[27].mxu1 }
 0x4d8   : > { %v4413_v32 = vpop.f32.mrb[16].mxu0 }
 0x4d9   : > { %v3218_v33 = vpop.f32.mrb[17].mxu0 }
 0x4da   : > { %v4415_v34 = vpop.f32.mrb[18].mxu0 }
 0x4db   : > { %v3219_v36 = vpop.f32.mrb[19].mxu0 }
 0x4dc   : > { %v1249_v37 = vpop.f32.mrb[28].mxu1 }
 0x4dd   : > { %v1250_v38 = vadd.f32 %v1249_v37, %v1150_v35  ;;  %v3236_v39 = vpop.f32.mrb[29].mxu1 }
 0x4de   : > { %v1252_v40 = vpop.f32.mrb[30].mxu1 }
 0x4df   : > { %v3237_v41 = vpop.f32.mrb[31].mxu1  ;;  %v1366_v42 = vsel %vm864_vm3, %v1250_v38, -inf  ;;  %v1253_v52 = vadd.f32 %v1252_v40, %v1151_v44 }
 0x4e0   : > { %1367 = vmax.xlane.f32.xlu0 %v1366_v42  ;;  %v1197_v45 = vpop.f32.mrb[20].mxu0 }
 0x4e1   : > { %v1198_v47 = vadd.f32 %v1197_v45, %v1150_v35  ;;  %v3230_v49 = vpop.f32.mrb[21].mxu0  ;;  %v1369_v63 = vsel %vm864_vm3, %v1253_v52, -inf }
 0x4e2   : > { %v1200_v50 = vpop.f32.mrb[22].mxu0 }
 0x4e3   : > { %v1201_v53 = vadd.f32 %v1200_v50, %v1151_v44  ;;  %v3231_v54 = vpop.f32.mrb[23].mxu0  ;;  %v1360_v55 = vsel %vm864_vm3, %v1198_v47, -inf }
 0x4e4   : > { %v1353_v56 = vpop.f32.mrb[32].mxu1  ;;  %1361 = vmax.xlane.f32.xlu0 %v1360_v55 }
 0x4e5   : > { %v3248_v57 = vpop.f32.mrb[33].mxu1  ;;  %v1363_v58 = vsel %vm864_vm3, %v1201_v53, -inf  ;;  %v1354_v4 = vadd.f32 %v1353_v56, %v1150_v35 }
 0x4e6   : > { %v1356_v61 = vpop.f32.mrb[34].mxu1  ;;  %1364 = vmax.xlane.f32.xlu1 %v1363_v58 }
 0x4e7   : > { %v3249_v62 = vpop.f32.mrb[35].mxu1  ;;  %v1378_v9 = vsel %vm864_vm3, %v1354_v4, -inf  ;;  %v1357_v10 = vadd.f32 %v1356_v61, %v1151_v44 }
 0x4e8   : > { %1370 = vmax.xlane.f32.xlu0 %v1369_v63  ;;  %v1301_v0 = vpop.f32.mrb[24].mxu0 }
 0x4e9   : > { %v1302_v1 = vadd.f32 %v1301_v0, %v1150_v35  ;;  %v3242_v2 = vpop.f32.mrb[25].mxu0  ;;  %v1381_v12 = vsel %vm864_vm3, %v1357_v10, -inf }
 0x4ea   : > { %v1304_v3 = vpop.f32.mrb[26].mxu0 }
 0x4eb   : > { %v3243_v5 = vpop.f32.mrb[27].mxu0  ;;  %v1372_v6 = vsel %vm864_vm3, %v1302_v1, -inf  ;;  %v4426_v11 = vadd.f32 %v1304_v3, %v1151_v44 }
 0x4ec   : > { %1373 = vmax.xlane.f32.xlu0 %v1372_v6 }
 0x4ed   : > { %v1375_v13 = vsel %vm864_vm3, %v4426_v11, -inf }
 0x4f0   : > { %1379 = vmax.xlane.f32.xlu0 %v1378_v9 }
 0x4f7   : > { %1499 = vrot.lane.b32.xlu1 %v4289_v59, %s3916_s14 }
 0x4fb   : > { %1546 = vrot.lane.b32.xlu1 %v4301_v8, %s3916_s14 }
 0x506   : > { %1452 = vrot.lane.b32.xlu0 %v4291_v60, %s3916_s14 }
 0x51f   : > { %1382 = vmax.xlane.f32.xlu1 %v1381_v12 }
 0x523   : > { %1376 = vmax.xlane.f32.xlu1 %v1375_v13 }
 0x534   : > { %1593 = vrot.lane.b32.xlu1 %v4299_v7, %s3916_s14  ;;  %s4864_s14 = sld [smem:[#allocation24_spill]] }
 0x56d   : > { %v1368_v14 = vpop.xlane.xlu0 %1367 }
 0x56e   : > { %v1386_v15 = vsub.f32 %v1250_v38, %v1368_v14 }
 0x570   : > { %v1396_v16 = vmul.f32 1.442695, %v1386_v15 }
 0x571   : > { %v1362_v17 = vpop.xlane.xlu0 %1361 }
 0x572   : > { %3583 = vpow2.f32 %v1396_v16  ;;  %v1384_v18 = vsub.f32 %v1198_v47, %v1362_v17 }
 0x573   : > { %v1365_v20 = vpop.xlane.xlu1 %1364 }
 0x574   : > { %v1392_v22 = vmul.f32 1.442695, %v1384_v18  ;;  %v1385_v24 = vsub.f32 %v1201_v53, %v1365_v20 }
 0x575   : > { %v1371_v26 = vpop.xlane.xlu0 %1370 }
 0x576   : > { %3585 = vpow2.f32 %v1392_v22  ;;  %v1387_v29 = vsub.f32 %v1253_v52, %v1371_v26  ;;  %v1394_v33 = vmul.f32 1.442695, %v1385_v24 }
 0x577   : > { %v1500_v31 = vpop.permute.xlu1 %1499 }
 0x578   : > { %v1398_v35 = vmul.f32 1.442695, %v1387_v29  ;;  %3257 = vmatpush3.bf16.msra.mxu1 %v1500_v31 }
 0x579   : > { %v1374_v36 = vpop.xlane.xlu0 %1373  ;;  %3268 = vmatprep.subr.bf16.mxu1 %v3912_v28 }
 0x57a   : > { %3587 = vpow2.f32 %v1398_v35  ;;  %v1388_v38 = vsub.f32 %v1302_v1, %v1374_v36 }
 0x57b   : > { %3589 = vpow2.f32 %v1394_v33  ;;  %v1547_v61 = vpop.permute.xlu1 %1546 }
 0x57c   : > { %v4433_v37 = vpop.eup %3583  ;;  %v1400_v44 = vmul.f32 1.442695, %v1388_v38 }
 0x57d   : > { %v1380_v39 = vpop.xlane.xlu0 %1379  ;;  %v1414_v40 = vsel %vm864_vm3, %v4433_v37, 0.0 }
 0x57e   : > { %v1390_v41 = vsub.f32 %v1354_v4, %v1380_v39  ;;  %1415 = vadd.xlane.f32.xlu0 %v1414_v40 }
 0x580   : > { %v3586_v42 = vpop.eup %3585  ;;  %v1404_v45 = vmul.f32 1.442695, %v1390_v41 }
 0x581   : > { %v1453_v47 = vpop.permute.xlu0 %1452  ;;  %v1408_v49 = vsel %vm864_vm3, %v3586_v42, 0.0 }
 0x582   : > { %3591 = vpow2.f32 %v1404_v45  ;;  %1409 = vadd.xlane.f32.xlu0 %v1408_v49  ;;  %3251 = vmatpush3.bf16.msra.mxu0 %v1453_v47 }
 0x583   : > { %3262 = vmatprep.subr.bf16.mxu0 %v3912_v28  ;;  %3593 = vpow2.f32 %v1400_v44 }
 0x584   : > { %v3588_v50 = vpop.eup %3587 }
 0x585   : > { %v1417_v52 = vsel %vm864_vm3, %v3588_v50, 0.0  ;;  %v3590_v53 = vpop.eup %3589 }
 0x586   : > { %1418 = vadd.xlane.f32.xlu1 %v1417_v52  ;;  %v1411_v54 = vsel %vm864_vm3, %v3590_v53, 0.0 }
 0x58a   : > { %1412 = vadd.xlane.f32.xlu1 %v1411_v54 }
 0x58c   : > { %v4441_v55 = vpop.eup %3591 }
 0x58d   : > { %v1426_v56 = vsel %vm864_vm3, %v4441_v55, 0.0  ;;  %v4445_v57 = vpop.eup %3593 }
 0x58e   : > { %1427 = vadd.xlane.f32.xlu0 %v1426_v56  ;;  %v1420_v58 = vsel %vm864_vm3, %v4445_v57, 0.0 }
 0x592   : > { %1421 = vadd.xlane.f32.xlu0 %v1420_v58 }
 0x59b   : > { %1696 = vrot.lane.b32.xlu1 %v4289_v59, %s3917_s29 }
 0x5a8   : > { %1645 = vrot.lane.b32.xlu0 %v4291_v60, %s3917_s29 }
 0x5ac   : > { %v1383_v62 = vpop.xlane.xlu1 %1382  ;;  %1643 = vrot.lane.b32.xlu0 %v4287_v51, %s3917_s29 }
 0x5ad   : > { %v1391_v63 = vsub.f32 %v1357_v10, %v1383_v62 }
 0x5af   : > { %v1406_v0 = vmul.f32 1.442695, %v1391_v63 }
 0x5b0   : > { %1694 = vrot.lane.b32.xlu0 %v4282_v48, %s3917_s29  ;;  %v1377_v1 = vpop.xlane.xlu1 %1376 }
 0x5b1   : > { %3595 = vpow2.f32 %v1406_v0  ;;  %v1389_v2 = vsub.f32 %v4426_v11, %v1377_v1 }
 0x5b3   : > { %v1402_v3 = vmul.f32 1.442695, %v1389_v2 }
 0x5b4   : > { %1745 = vrot.lane.b32.xlu0 %v4280_v46, %s3917_s29  ;;  %v1594_v11 = vpop.permute.xlu1 %1593 }
 0x5b5   : > { %3597 = vpow2.f32 %v1402_v3 }
 0x5bb   : > { %v3596_v4 = vpop.eup %3595 }
 0x5bc   : > { %v1429_v5 = vsel %vm864_vm3, %v3596_v4, 0.0 }
 0x5bf   : > { %v3598_v6 = vpop.eup %3597  ;;  %1430 = vadd.xlane.f32.xlu1 %v1429_v5 }
 0x5c0   : > { %v1423_v9 = vsel %vm864_vm3, %v3598_v6, 0.0 }
 0x5c3   : > { %1424 = vadd.xlane.f32.xlu1 %v1423_v9 }
 0x5d4   : > { %1747 = vrot.lane.b32.xlu1 %v4301_v8, %s3917_s29 }
 0x5d8   : > { %1798 = vrot.lane.b32.xlu1 %v4299_v7, %s3917_s29 }
 0x5dc   : > { %1796 = vrot.lane.b32.xlu1 %v4278_v43, %s3917_s29  ;;  %s4766_s29 = scalar_lea.hbm %s4864_s14, %s3071_s16 }
 0x60b   : > { %v1416_v10 = vpop.xlane.xlu0 %1415 }
 0x60c   : > { %3599 = vrcp.f32 %v1416_v10 }
 0x60f   : > { %v1410_v12 = vpop.xlane.xlu0 %1409 }
 0x613   : > { %v1419_v13 = vpop.xlane.xlu1 %1418 }
 0x614   : > { %3601 = vrcp.f32 %v1419_v13 }
 0x615   : > { %3603 = vrcp.f32 %v1410_v12 }
 0x616   : > { %v3600_v15 = vpop.eup %3599 }
 0x617   : > { %v1413_v14 = vpop.xlane.xlu1 %1412  ;;  %v1442_v17 = vmul.f32 %v3600_v15, %v4433_v37 }
 0x618   : > { %3605 = vrcp.f32 %v1413_v14 }
 0x61b   : > { %v1428_v33 = vpop.xlane.xlu0 %1427  ;;  %v1697_v35 = vpop.permute.xlu1 %1696 }
 0x61c   : > { %3607 = vrcp.f32 %v1428_v33  ;;  %v1702_v52 = vsel %vm675_vm2, %v1697_v35, 0 }
 0x61e   : > { %v3602_v16 = vpop.eup %3601 }
 0x61f   : > { %v1443_v18 = vmul.f32 %v3602_v16, %v3588_v50  ;;  %v3604_v20 = vpop.eup %3603  ;;  %v1422_v36 = vpop.xlane.xlu0 %1421 }
 0x620   : > { %v1440_v26 = vmul.f32 %v3604_v20, %v3586_v42 }
 0x621   : > { %v1449_v22 = vpack.c.bf16 %v1443_v18, %v1442_v17 }
 0x622   : > { %v3606_v24 = vpop.eup %3605 }
 0x623   : > { %v1441_v29 = vmul.f32 %v3606_v24, %v3590_v53  ;;  %3259 = vmatmul.mubr.msk.bf16.vlgmr.msra.gmra.mrb[36].mxu1 %vm864_vm3, %v1449_v22  ;;  %v1646_v41 = vpop.permute.xlu0 %1645 }
 0x624   : > { %3269 = vmatpush3.bf16.msra.mxu1 %v1594_v11  ;;  %3270 = vmatprep.mubr.msk.bf16.mxu1 %vm3913_vm1, %v3912_v28 }
 0x625   : > { %v1448_v31 = vpack.c.bf16 %v1441_v29, %v1440_v26  ;;  %3280 = vmatprep.subr.bf16.mxu1 %v3912_v28  ;;  %v1641_v26 = vld [vmem:[#allocation10 + $0x20] sm:$0xff] }
 0x626   : > { %v3608_v39 = vpop.eup %3607 }
 0x627   : > { %3253 = vmatmul.mubr.msk.bf16.vlgmr.msra.gmra.mrb[28].mxu0 %vm864_vm3, %v1448_v31  ;;  %v1446_v42 = vmul.f32 %v3608_v39, %v4441_v55  ;;  %v1644_v56 = vpop.permute.xlu0 %1643  ;;  %v1651_v55 = vsel %vm675_vm2, %v1646_v41, 0 }
 0x628   : > { %3263 = vmatpush3.bf16.msra.mxu0 %v1547_v61  ;;  %3264 = vmatprep.mubr.msk.bf16.mxu0 %vm3913_vm1, %v3912_v28 }
 0x629   : > { %3274 = vmatprep.subr.bf16.mxu0 %v3912_v28 }
 0x64c   : > { %v1431_v37 = vpop.xlane.xlu1 %1430 }
 0x64d   : > { %3609 = vrcp.f32 %v1431_v37 }
 0x64e   : > { %3611 = vrcp.f32 %v1422_v36 }
 0x650   : > { %v1425_v38 = vpop.xlane.xlu1 %1424 }
 0x651   : > { %3613 = vrcp.f32 %v1425_v38 }
 0x654   : > { %v1748_v50 = vpop.permute.xlu1 %1747 }
 0x655   : > { %v1753_v63 = vsel %vm675_vm2, %v1748_v50, 0 }
 0x657   : > { %v3610_v40 = vpop.eup %3609 }
 0x658   : > { %v1447_v44 = vmul.f32 %v3610_v40, %v3596_v4  ;;  %v3612_v45 = vpop.eup %3611  ;;  %v1799_v61 = vpop.permute.xlu1 %1798  ;;  %v1642_v40 = vld [vmem:[#allocation10 + $0x28] sm:$0xff] }
 0x659   : > { %v1444_v53 = vmul.f32 %v3612_v45, %v4445_v57  ;;  %v1695_v57 = vpop.permute.xlu0 %1694  ;;  %v1804_v62 = vsel %vm675_vm2, %v1799_v61, 0 }
 0x65a   : > { %v1451_v47 = vpack.c.bf16 %v1447_v44, %v1446_v42 }
 0x65b   : > { %v3614_v49 = vpop.eup %3613 }
 0x65c   : > { %v1445_v54 = vmul.f32 %v3614_v49, %v3598_v6  ;;  %3271 = vmatmul.mubr.msk.bf16.vlgmr.msra.gmra.mrb[40].mxu1 %vm864_vm3, %v1451_v47  ;;  %v1797_v0 = vpop.permute.xlu1 %1796 }
 0x65d   : > { %3281 = vmatpush3.bf16.xpose.msra.mxu1 %v1702_v52  ;;  %3282 = vmatprep.mubr.msk.bf16.mxu1 %vm3913_vm1, %v3912_v28  ;;  %v1746_v1 = vpop.permute.xlu0 %1745 }
 0x65e   : > { %v1450_v58 = vpack.c.bf16 %v1445_v54, %v1444_v53  ;;  %3292 = vmatprep.subr.bf16.mxu1 %v3912_v28 }
 0x660   : > { %3265 = vmatmul.mubr.msk.bf16.vlgmr.msra.gmra.mrb[32].mxu0 %vm864_vm3, %v1450_v58 }
 0x661   : > { %3275 = vmatpush3.bf16.xpose.msra.mxu0 %v1651_v55  ;;  %3276 = vmatprep.mubr.msk.bf16.mxu0 %vm3913_vm1, %v3912_v28 }
 0x662   : > { %3286 = vmatprep.subr.bf16.mxu0 %v3912_v28 }
 0x664   : > { %3283 = vmatmul.mubr.msk.bf16.vlgmr.msra.gmra.mrb[44].mxu1 %vm675_vm2, %v1695_v57 }
 0x665   : > { %3293 = vmatpush3.bf16.xpose.msra.mxu1 %v1804_v62  ;;  %3294 = vmatprep.mubr.msk.bf16.mxu1 %vm3913_vm1, %v3912_v28 }
 0x666   : > { %3304 = vmatprep.subr.bf16.mxu1 %v3912_v28 }
 0x668   : > { %3277 = vmatmul.mubr.msk.bf16.vlgmr.msra.gmra.mrb[36].mxu0 %vm675_vm2, %v1644_v56 }
 0x669   : > { %3287 = vmatpush3.bf16.xpose.msra.mxu0 %v1753_v63  ;;  %3288 = vmatprep.mubr.msk.bf16.mxu0 %vm3913_vm1, %v3912_v28 }
 0x66a   : > { %3298 = vmatprep.subr.bf16.mxu0 %v3912_v28 }
 0x66c   : > { %3295 = vmatmul.mubr.msk.bf16.vlgmr.msra.gmra.mrb[48].mxu1 %vm675_vm2, %v1797_v0 }
 0x66d   : > { %3306 = vmatprep.mubr.msk.bf16.mxu1 %vm3913_vm1, %v3912_v28 }
 0x670   : > { %3289 = vmatmul.mubr.msk.bf16.vlgmr.msra.gmra.mrb[40].mxu0 %vm675_vm2, %v1746_v1 }
 0x671   : > { %3300 = vmatprep.mubr.msk.bf16.mxu0 %vm3913_vm1, %v3912_v28 }
 0x6f6   : > { %v4497_v2 = vpop.f32.mrb[36].mxu1 }
 0x6f7   : > { %v3260_v3 = vpop.f32.mrb[37].mxu1 }
 0x6f8   : > { %v4499_v4 = vpop.f32.mrb[38].mxu1 }
 0x6f9   : > { %v3490_v5 = vpack.i.bf16 %v4499_v4, %v4497_v2  ;;  %v3261_v6 = vpop.f32.mrb[39].mxu1 }
 0x6fa   : > { %v4503_v9 = vpop.f32.mrb[28].mxu0 }
 0x6fb   : > { %v3254_v10 = vpop.f32.mrb[29].mxu0 }
 0x6fc   : > { %v4505_v11 = vpop.f32.mrb[30].mxu0 }
 0x6fd   : > { %v3485_v12 = vpack.i.bf16 %v4505_v11, %v4503_v9  ;;  %v3255_v13 = vpop.f32.mrb[31].mxu0 }
 0x72f   : > { %v4509_v14 = vpop.f32.mrb[40].mxu1 }
 0x730   : > { %v3272_v15 = vpop.f32.mrb[41].mxu1 }
 0x731   : > { %v4511_v16 = vpop.f32.mrb[42].mxu1 }
 0x732   : > { %v3510_v17 = vpack.i.bf16 %v4511_v16, %v4509_v14  ;;  %v3273_v18 = vpop.f32.mrb[43].mxu1 }
 0x733   : > { %v4515_v20 = vpop.f32.mrb[32].mxu0 }
 0x734   : > { %v3266_v22 = vpop.f32.mrb[33].mxu0 }
 0x735   : > { %v4517_v24 = vpop.f32.mrb[34].mxu0 }
 0x736   : > { %v3505_v29 = vpack.i.bf16 %v4517_v24, %v4515_v20  ;;  %v3267_v31 = vpop.f32.mrb[35].mxu0 }
 0x737   : > { %v1738_v33 = vpop.f32.mrb[44].mxu1 }
 0x738   : > { %v1739_v35 = vadd.f32 %v1738_v33, %v1641_v26  ;;  %v3284_v36 = vpop.f32.mrb[45].mxu1 }
 0x739   : > { %v1741_v37 = vpop.f32.mrb[46].mxu1 }
 0x73a   : > { %v3285_v38 = vpop.f32.mrb[47].mxu1  ;;  %v1853_v39 = vsel %vm864_vm3, %v1739_v35, -inf  ;;  %v1742_v47 = vadd.f32 %v1741_v37, %v1642_v40 }
 0x73b   : > { %1854 = vmax.xlane.f32.xlu0 %v1853_v39  ;;  %v1687_v41 = vpop.f32.mrb[36].mxu0 }
 0x73c   : > { %v1688_v42 = vadd.f32 %v1687_v41, %v1641_v26  ;;  %v3278_v44 = vpop.f32.mrb[37].mxu0  ;;  %v1856_v61 = vsel %vm864_vm3, %v1742_v47, -inf }
 0x73d   : > { %v1690_v45 = vpop.f32.mrb[38].mxu0 }
 0x73e   : > { %v1691_v49 = vadd.f32 %v1690_v45, %v1642_v40  ;;  %v3279_v50 = vpop.f32.mrb[39].mxu0  ;;  %v1847_v52 = vsel %vm864_vm3, %v1688_v42, -inf }
 0x73f   : > { %v1840_v53 = vpop.f32.mrb[48].mxu1  ;;  %1848 = vmax.xlane.f32.xlu0 %v1847_v52 }
 0x740   : > { %v3296_v54 = vpop.f32.mrb[49].mxu1  ;;  %v1850_v56 = vsel %vm864_vm3, %v1691_v49, -inf  ;;  %v1841_v1 = vadd.f32 %v1840_v53, %v1641_v26 }
 0x741   : > { %v1843_v58 = vpop.f32.mrb[50].mxu1  ;;  %1851 = vmax.xlane.f32.xlu1 %v1850_v56 }
 0x742   : > { %v3297_v55 = vpop.f32.mrb[51].mxu1  ;;  %v1865_v10 = vsel %vm864_vm3, %v1841_v1, -inf  ;;  %v1844_v13 = vadd.f32 %v1843_v58, %v1642_v40 }
 0x743   : > { %1857 = vmax.xlane.f32.xlu0 %v1856_v61  ;;  %v1789_v57 = vpop.f32.mrb[40].mxu0 }
 0x744   : > { %v1790_v62 = vadd.f32 %v1789_v57, %v1641_v26  ;;  %v3290_v63 = vpop.f32.mrb[41].mxu0  ;;  %v1868_v18 = vsel %vm864_vm3, %v1844_v13, -inf }
 0x745   : > { %v1792_v0 = vpop.f32.mrb[42].mxu0 }
 0x746   : > { %v3291_v3 = vpop.f32.mrb[43].mxu0  ;;  %v1859_v6 = vsel %vm864_vm3, %v1790_v62, -inf  ;;  %v4530_v15 = vadd.f32 %v1792_v0, %v1642_v40 }
 0x747   : > { %1860 = vmax.xlane.f32.xlu0 %v1859_v6 }
 0x748   : > { %v1862_v22 = vsel %vm864_vm3, %v4530_v15, -inf }
 0x74b   : > { %1866 = vmax.xlane.f32.xlu0 %v1865_v10 }
 0x752   : > { %1986 = vrot.lane.b32.xlu1 %v4289_v59, %s3918_s3 }
 0x756   : > { %2033 = vrot.lane.b32.xlu1 %v4301_v8, %s3918_s3 }
 0x761   : > { %1939 = vrot.lane.b32.xlu0 %v4291_v60, %s3918_s3 }
 0x77a   : > { %1869 = vmax.xlane.f32.xlu1 %v1868_v18 }
 0x77e   : > { %1863 = vmax.xlane.f32.xlu1 %v1862_v22 }
 0x78f   : > { %2080 = vrot.lane.b32.xlu1 %v4299_v7, %s3918_s3  ;;  %s3823_s3 = scalar_lea.vmem %s4769_s19, 1024 }
 0x790   : > { %p3824_p1 = scmp.ne.s32.totalorder %s4769_s19, %s3823_s3 }
 0x792   : > { %p3825_p4 = pnand %p3824_p1, %p4124_p5 }
 0x794   : > { %p3826_p0 = pneg %p3825_p4 }
 0x7c8   : > { %v1855_v26 = vpop.xlane.xlu0 %1854 }
 0x7c9   : > { %v1873_v31 = vsub.f32 %v1739_v35, %v1855_v26 }
 0x7cb   : > { %v1883_v33 = vmul.f32 1.442695, %v1873_v31 }
 0x7cc   : > { %v1849_v36 = vpop.xlane.xlu0 %1848 }
 0x7cd   : > { %3615 = vpow2.f32 %v1883_v33  ;;  %v1871_v37 = vsub.f32 %v1688_v42, %v1849_v36 }
 0x7ce   : > { %v1852_v38 = vpop.xlane.xlu1 %1851 }
 0x7cf   : > { %v1879_v39 = vmul.f32 1.442695, %v1871_v37  ;;  %v1872_v41 = vsub.f32 %v1691_v49, %v1852_v38 }
 0x7d0   : > { %v1858_v40 = vpop.xlane.xlu0 %1857 }
 0x7d1   : > { %3617 = vpow2.f32 %v1879_v39  ;;  %v1874_v44 = vsub.f32 %v1742_v47, %v1858_v40  ;;  %v1881_v50 = vmul.f32 1.442695, %v1872_v41 }
 0x7d2   : > { %v1987_v45 = vpop.permute.xlu1 %1986 }
 0x7d3   : > { %v1885_v52 = vmul.f32 1.442695, %v1874_v44  ;;  %3305 = vmatpush3.bf16.msra.mxu1 %v1987_v45 }
 0x7d4   : > { %v1861_v53 = vpop.xlane.xlu0 %1860  ;;  %3316 = vmatprep.subr.bf16.mxu1 %v3912_v28 }
 0x7d5   : > { %3619 = vpow2.f32 %v1885_v52  ;;  %v1875_v35 = vsub.f32 %v1790_v62, %v1861_v53 }
 0x7d6   : > { %3621 = vpow2.f32 %v1881_v50  ;;  %v2034_v22 = vpop.permute.xlu1 %2033 }
 0x7d7   : > { %v4537_v54 = vpop.eup %3615  ;;  %v1887_v47 = vmul.f32 1.442695, %v1875_v35 }
 0x7d8   : > { %v1867_v56 = vpop.xlane.xlu0 %1866  ;;  %v1901_v42 = vsel %vm864_vm3, %v4537_v54, 0.0 }
 0x7d9   : > { %v1877_v49 = vsub.f32 %v1841_v1, %v1867_v56  ;;  %1902 = vadd.xlane.f32.xlu0 %v1901_v42 }
 0x7db   : > { %v3618_v58 = vpop.eup %3617  ;;  %v1891_v55 = vmul.f32 1.442695, %v1877_v49 }
 0x7dc   : > { %v1940_v61 = vpop.permute.xlu0 %1939  ;;  %v1895_v57 = vsel %vm864_vm3, %v3618_v58, 0.0 }
 0x7dd   : > { %3623 = vpow2.f32 %v1891_v55  ;;  %1896 = vadd.xlane.f32.xlu0 %v1895_v57  ;;  %3299 = vmatpush3.bf16.msra.mxu0 %v1940_v61 }
 0x7de   : > { %3310 = vmatprep.subr.bf16.mxu0 %v3912_v28  ;;  %3625 = vpow2.f32 %v1887_v47 }
 0x7df   : > { %v3620_v63 = vpop.eup %3619 }
 0x7e0   : > { %v1904_v62 = vsel %vm864_vm3, %v3620_v63, 0.0  ;;  %v3622_v0 = vpop.eup %3621 }
 0x7e1   : > { %1905 = vadd.xlane.f32.xlu1 %v1904_v62  ;;  %v1898_v1 = vsel %vm864_vm3, %v3622_v0, 0.0 }
 0x7e5   : > { %1899 = vadd.xlane.f32.xlu1 %v1898_v1 }
 0x7e7   : > { %v4545_v3 = vpop.eup %3623 }
 0x7e8   : > { %v1913_v6 = vsel %vm864_vm3, %v4545_v3, 0.0  ;;  %v4549_v10 = vpop.eup %3625 }
 0x7e9   : > { %1914 = vadd.xlane.f32.xlu0 %v1913_v6  ;;  %v1907_v18 = vsel %vm864_vm3, %v4549_v10, 0.0 }
 0x7ed   : > { %1908 = vadd.xlane.f32.xlu0 %v1907_v18 }
 0x7f6   : > { %2183 = vrot.lane.b32.xlu1 %v4289_v59, %s3919_s24 }
 0x803   : > { %2132 = vrot.lane.b32.xlu0 %v4291_v60, %s3919_s24 }
 0x807   : > { %v1870_v26 = vpop.xlane.xlu1 %1869  ;;  %2130 = vrot.lane.b32.xlu0 %v4287_v51, %s3919_s24 }
 0x808   : > { %v1878_v31 = vsub.f32 %v1844_v13, %v1870_v26 }
 0x80a   : > { %v1893_v33 = vmul.f32 1.442695, %v1878_v31 }
 0x80b   : > { %2181 = vrot.lane.b32.xlu0 %v4282_v48, %s3919_s24  ;;  %v1864_v36 = vpop.xlane.xlu1 %1863 }
 0x80c   : > { %3627 = vpow2.f32 %v1893_v33  ;;  %v1876_v37 = vsub.f32 %v4530_v15, %v1864_v36 }
 0x80e   : > { %v1889_v38 = vmul.f32 1.442695, %v1876_v37 }
 0x80f   : > { %2232 = vrot.lane.b32.xlu0 %v4280_v46, %s3919_s24  ;;  %v2081_v51 = vpop.permute.xlu1 %2080 }
 0x810   : > { %3629 = vpow2.f32 %v1889_v38 }
 0x816   : > { %v3628_v39 = vpop.eup %3627 }
 0x817   : > { %v1916_v41 = vsel %vm864_vm3, %v3628_v39, 0.0 }
 0x81a   : > { %v3630_v40 = vpop.eup %3629  ;;  %1917 = vadd.xlane.f32.xlu1 %v1916_v41 }
 0x81b   : > { %v1910_v44 = vsel %vm864_vm3, %v3630_v40, 0.0 }
 0x81e   : > { %1911 = vadd.xlane.f32.xlu1 %v1910_v44 }
 0x82f   : > { %2234 = vrot.lane.b32.xlu1 %v4301_v8, %s3919_s24 }
 0x833   : > { %2285 = vrot.lane.b32.xlu1 %v4299_v7, %s3919_s24 }
 0x837   : > { %2283 = vrot.lane.b32.xlu1 %v4278_v43, %s3919_s24  ;;  %s3924_s24 = smov [#allocation11]  }
 0x866   : > { %v1903_v48 = vpop.xlane.xlu0 %1902 }
 0x867   : > { %3631 = vrcp.f32 %v1903_v48 }
 0x86a   : > { %v1897_v13 = vpop.xlane.xlu0 %1896 }
 0x86e   : > { %v1906_v46 = vpop.xlane.xlu1 %1905 }
 0x86f   : > { %3633 = vrcp.f32 %v1906_v46 }
 0x870   : > { %3635 = vrcp.f32 %v1897_v13 }
 0x871   : > { %v3632_v45 = vpop.eup %3631 }
 0x872   : > { %v1900_v15 = vpop.xlane.xlu1 %1899  ;;  %v1929_v52 = vmul.f32 %v3632_v45, %v4537_v54 }
 0x873   : > { %3637 = vrcp.f32 %v1900_v15 }
 0x876   : > { %v1915_v54 = vpop.xlane.xlu0 %1914 }
 0x877   : > { %3639 = vrcp.f32 %v1915_v54 }
 0x879   : > { %v3634_v50 = vpop.eup %3633 }
 0x87a   : > { %v1930_v53 = vmul.f32 %v3634_v50, %v3620_v63  ;;  %v3636_v35 = vpop.eup %3635  ;;  %v1909_v55 = vpop.xlane.xlu0 %1908 }
 0x87b   : > { %v1927_v49 = vmul.f32 %v3636_v35, %v3618_v58  ;;  %v2184_v58 = vpop.permute.xlu1 %2183 }
 0x87c   : > { %v1936_v56 = vpack.c.bf16 %v1930_v53, %v1929_v52  ;;  %v2189_v33 = vsel %vm675_vm2, %v2184_v58, 0 }
 0x87d   : > { %v3638_v42 = vpop.eup %3637 }
 0x87e   : > { %v1928_v47 = vmul.f32 %v3638_v42, %v3622_v0  ;;  %3307 = vmatmul.mubr.msk.bf16.vlgmr.msra.gmra.mrb[52].mxu1 %vm864_vm3, %v1936_v56  ;;  %v2133_v0 = vpop.permute.xlu0 %2132 }
 0x87f   : > { %3317 = vmatpush3.bf16.msra.mxu1 %v2081_v51  ;;  %3318 = vmatprep.mubr.msk.bf16.mxu1 %vm3913_vm1, %v3912_v28 }
 0x880   : > { %v1935_v43 = vpack.c.bf16 %v1928_v47, %v1927_v49  ;;  %3328 = vmatprep.subr.bf16.mxu1 %v3912_v28 }
 0x881   : > { %v3640_v63 = vpop.eup %3639 }
 0x882   : > { %3301 = vmatmul.mubr.msk.bf16.vlgmr.msra.gmra.mrb[44].mxu0 %vm864_vm3, %v1935_v43  ;;  %v1933_v1 = vmul.f32 %v3640_v63, %v4545_v3  ;;  %v2131_v38 = vpop.permute.xlu0 %2130  ;;  %v2138_v3 = vsel %vm675_vm2, %v2133_v0, 0 }
 0x883   : > { %3311 = vmatpush3.bf16.msra.mxu0 %v2034_v22  ;;  %3312 = vmatprep.mubr.msk.bf16.mxu0 %vm3913_vm1, %v3912_v28 }
 0x884   : > { %3322 = vmatprep.subr.bf16.mxu0 %v3912_v28 }
 0x8a7   : > { %v1918_v61 = vpop.xlane.xlu1 %1917 }
 0x8a8   : > { %3641 = vrcp.f32 %v1918_v61 }
 0x8a9   : > { %3643 = vrcp.f32 %v1909_v55 }
 0x8ab   : > { %v1912_v57 = vpop.xlane.xlu1 %1911 }
 0x8ac   : > { %3645 = vrcp.f32 %v1912_v57 }
 0x8af   : > { %v2235_v31 = vpop.permute.xlu1 %2234 }
 0x8b0   : > { %v2240_v44 = vsel %vm675_vm2, %v2235_v31, 0 }
 0x8b2   : > { %v3642_v62 = vpop.eup %3641 }
 0x8b3   : > { %v1934_v6 = vmul.f32 %v3642_v62, %v3628_v39  ;;  %v3644_v18 = vpop.eup %3643  ;;  %v2286_v39 = vpop.permute.xlu1 %2285 }
 0x8b4   : > { %v1931_v36 = vmul.f32 %v3644_v18, %v4549_v10  ;;  %v2182_v10 = vpop.permute.xlu0 %2181 }
 0x8b5   : > { %v1938_v22 = vpack.c.bf16 %v1934_v6, %v1933_v1 }
 0x8b6   : > { %v3646_v26 = vpop.eup %3645 }
 0x8b7   : > { %v1932_v37 = vmul.f32 %v3646_v26, %v3630_v40  ;;  %3319 = vmatmul.mubr.msk.bf16.vlgmr.msra.gmra.mrb[56].mxu1 %vm864_vm3, %v1938_v22  ;;  %v2291_v40 = vsel %vm675_vm2, %v2286_v39, 0  ;;  %v2284_v48 = vpop.permute.xlu1 %2283  ;;  %v2128_v22 = vld [vmem:[#allocation10 + $0x30] sm:$0xff] }
 0x8b8   : > { %3329 = vmatpush3.bf16.xpose.msra.mxu1 %v2189_v33  ;;  %3330 = vmatprep.mubr.msk.bf16.mxu1 %vm3913_vm1, %v3912_v28  ;;  %v2233_v51 = vpop.permute.xlu0 %2232 }
 0x8b9   : > { %v1937_v41 = vpack.c.bf16 %v1932_v37, %v1931_v36  ;;  %3340 = vmatprep.subr.bf16.mxu1 %v3912_v28  ;;  %v2129_v36 = vld [vmem:[#allocation10 + $0x38] sm:$0xff] }
 0x8bb   : > { %3313 = vmatmul.mubr.msk.bf16.vlgmr.msra.gmra.mrb[48].mxu0 %vm864_vm3, %v1937_v41 }
 0x8bc   : > { %3323 = vmatpush3.bf16.xpose.msra.mxu0 %v2138_v3  ;;  %3324 = vmatprep.mubr.msk.bf16.mxu0 %vm3913_vm1, %v3912_v28 }
 0x8bd   : > { %3334 = vmatprep.subr.bf16.mxu0 %v3912_v28 }
 0x8bf   : > { %3331 = vmatmul.mubr.msk.bf16.vlgmr.msra.gmra.mrb[60].mxu1 %vm675_vm2, %v2182_v10 }
 0x8c0   : > { %3341 = vmatpush3.bf16.xpose.msra.mxu1 %v2291_v40  ;;  %3342 = vmatprep.mubr.msk.bf16.mxu1 %vm3913_vm1, %v3912_v28 }
 0x8c1   : > { %3352 = vmatprep.subr.bf16.mxu1 %v3912_v28 }
 0x8c3   : > { %3325 = vmatmul.mubr.msk.bf16.vlgmr.msra.gmra.mrb[52].mxu0 %vm675_vm2, %v2131_v38 }
 0x8c4   : > { %3335 = vmatpush3.bf16.xpose.msra.mxu0 %v2240_v44  ;;  %3336 = vmatprep.mubr.msk.bf16.mxu0 %vm3913_vm1, %v3912_v28 }
 0x8c5   : > { %3346 = vmatprep.subr.bf16.mxu0 %v3912_v28 }
 0x8c7   : > { %3343 = vmatmul.mubr.msk.bf16.vlgmr.msra.gmra.mrb[64].mxu1 %vm675_vm2, %v2284_v48 }
 0x8c8   : > { %3354 = vmatprep.mubr.msk.bf16.mxu1 %vm3913_vm1, %v3912_v28 }
 0x8cb   : > { %3337 = vmatmul.mubr.msk.bf16.vlgmr.msra.gmra.mrb[56].mxu0 %vm675_vm2, %v2233_v51 }
 0x8cc   : > { %3348 = vmatprep.mubr.msk.bf16.mxu0 %vm3913_vm1, %v3912_v28 }
 0x951   : > { %v4601_v13 = vpop.f32.mrb[52].mxu1 }
 0x952   : > { %v3308_v46 = vpop.f32.mrb[53].mxu1 }
 0x953   : > { %v4603_v15 = vpop.f32.mrb[54].mxu1 }
 0x954   : > { %v3500_v45 = vpack.i.bf16 %v4603_v15, %v4601_v13  ;;  %v3309_v50 = vpop.f32.mrb[55].mxu1 }
 0x955   : > { %v4607_v52 = vpop.f32.mrb[44].mxu0 }
 0x956   : > { %v3302_v53 = vpop.f32.mrb[45].mxu0 }
 0x957   : > { %v4609_v35 = vpop.f32.mrb[46].mxu0 }
 0x958   : > { %v3495_v56 = vpack.i.bf16 %v4609_v35, %v4607_v52  ;;  %v3303_v42 = vpop.f32.mrb[47].mxu0 }
 0x98a   : > { %v4613_v49 = vpop.f32.mrb[56].mxu1 }
 0x98b   : > { %v3320_v47 = vpop.f32.mrb[57].mxu1 }
 0x98c   : > { %v4615_v43 = vpop.f32.mrb[58].mxu1 }
 0x98d   : > { %v3530_v54 = vpack.i.bf16 %v4615_v43, %v4613_v49  ;;  %v3321_v58 = vpop.f32.mrb[59].mxu1 }
 0x98e   : > { %v4619_v55 = vpop.f32.mrb[48].mxu0 }
 0x98f   : > { %v3314_v61 = vpop.f32.mrb[49].mxu0 }
 0x990   : > { %v4621_v57 = vpop.f32.mrb[50].mxu0 }
 0x991   : > { %v3525_v63 = vpack.i.bf16 %v4621_v57, %v4619_v55  ;;  %v3315_v62 = vpop.f32.mrb[51].mxu0 }
 0x992   : > { %v2225_v0 = vpop.f32.mrb[60].mxu1 }
 0x993   : > { %v3332_v1 = vpop.f32.mrb[61].mxu1  ;;  %v2226_v38 = vadd.f32 %v2225_v0, %v2128_v22 }
 0x994   : > { %v2228_v6 = vpop.f32.mrb[62].mxu1 }
 0x995   : > { %v3333_v18 = vpop.f32.mrb[63].mxu1  ;;  %v2229_v51 = vadd.f32 %v2228_v6, %v2129_v36  ;;  %v2340_v50 = vsel %vm864_vm3, %v2226_v38, -inf }
 0x996   : > { %v2174_v26 = vpop.f32.mrb[52].mxu0 }
 0x997   : > { %v2175_v31 = vadd.f32 %v2174_v26, %v2128_v22  ;;  %v3326_v33 = vpop.f32.mrb[53].mxu0  ;;  %v2343_v0 = vsel %vm864_vm3, %v2229_v51, -inf }
 0x998   : > { %v2177_v37 = vpop.f32.mrb[54].mxu0 }
 0x999   : > { %v2178_v41 = vadd.f32 %v2177_v37, %v2129_v36  ;;  %v3327_v3 = vpop.f32.mrb[55].mxu0  ;;  %v2334_v39 = vsel %vm864_vm3, %v2175_v31, -inf }
 0x99a   : > { %v2327_v10 = vpop.f32.mrb[64].mxu1  ;;  %2335 = vmax.xlane.f32.xlu0 %v2334_v39 }
 0x99b   : > { %v3344_v40 = vpop.f32.mrb[65].mxu1  ;;  %v2337_v44 = vsel %vm864_vm3, %v2178_v41, -inf  ;;  %v2328_v6 = vadd.f32 %v2327_v10, %v2128_v22 }
 0x99c   : > { %v2330_v48 = vpop.f32.mrb[66].mxu1  ;;  %2338 = vmax.xlane.f32.xlu1 %v2337_v44 }
 0x99d   : > { %v3345_v46 = vpop.f32.mrb[67].mxu1  ;;  %v4631_v1 = vadd.f32 %v2330_v48, %v2129_v36  ;;  %v2352_v37 = vsel %vm864_vm3, %v2328_v6, -inf }
 0x99e   : > { %2341 = vmax.xlane.f32.xlu0 %v2340_v50  ;;  %v2276_v53 = vpop.f32.mrb[56].mxu0 }
 0x99f   : > { %v3338_v42 = vpop.f32.mrb[57].mxu0  ;;  %v2277_v58 = vadd.f32 %v2276_v53, %v2128_v22  ;;  %v2355_v33 = vsel %vm864_vm3, %v4631_v1, -inf }
 0x9a0   : > { %v2279_v47 = vpop.f32.mrb[58].mxu0 }
 0x9a1   : > { %v4628_v61 = vadd.f32 %v2279_v47, %v2129_v36  ;;  %v3339_v62 = vpop.f32.mrb[59].mxu0  ;;  %v2346_v26 = vsel %vm864_vm3, %v2277_v58, -inf }
 0x9a2   : > { %2344 = vmax.xlane.f32.xlu0 %v2343_v0 }
 0x9a3   : > { %v2349_v18 = vsel %vm864_vm3, %v4628_v61, -inf }
 0x9a4   : > { %2350 = vmax.xlane.f32.xlu1 %v2349_v18 }
 0x9a6   : > { %2347 = vmax.xlane.f32.xlu0 %v2346_v26 }
 0x9a8   : > { %2356 = vmax.xlane.f32.xlu1 %v2355_v33 }
 0x9aa   : > { %2353 = vmax.xlane.f32.xlu0 %v2352_v37 }
 0xa27   : > { %v2336_v3 = vpop.xlane.xlu0 %2335 }
 0xa28   : > { %v2358_v39 = vsub.f32 %v2175_v31, %v2336_v3 }
 0xa29   : > { %v2339_v40 = vpop.xlane.xlu1 %2338 }
 0xa2a   : > { %v2366_v48 = vmul.f32 1.442695, %v2358_v39  ;;  %v2359_v46 = vsub.f32 %v2178_v41, %v2339_v40 }
 0xa2b   : > { %v2342_v36 = vpop.xlane.xlu0 %2341 }
 0xa2c   : > { %v2360_v44 = vsub.f32 %v2226_v38, %v2342_v36  ;;  %v2368_v10 = vmul.f32 1.442695, %v2359_v46 }
 0xa2e   : > { %v2370_v50 = vmul.f32 1.442695, %v2360_v44 }
 0xa2f   : > { %v2345_v53 = vpop.xlane.xlu0 %2344 }
 0xa30   : > { %3647 = vpow2.f32 %v2370_v50  ;;  %v2361_v22 = vsub.f32 %v2229_v51, %v2345_v53 }
 0xa31   : > { %3649 = vpow2.f32 %v2366_v48  ;;  %v2351_v48 = vpop.xlane.xlu1 %2350 }
 0xa32   : > { %v2372_v42 = vmul.f32 1.442695, %v2361_v22 }
 0xa33   : > { %v2348_v47 = vpop.xlane.xlu0 %2347 }
 0xa34   : > { %3651 = vpow2.f32 %v2372_v42  ;;  %v2362_v62 = vsub.f32 %v2277_v58, %v2348_v47 }
 0xa35   : > { %3653 = vpow2.f32 %v2368_v10  ;;  %v2357_v46 = vpop.xlane.xlu1 %2356 }
 0xa36   : > { %v2374_v31 = vmul.f32 1.442695, %v2362_v62  ;;  %v2365_v50 = vsub.f32 %v4631_v1, %v2357_v46 }
 0xa37   : > { %v2354_v0 = vpop.xlane.xlu0 %2353 }
 0xa38   : > { %v2364_v18 = vsub.f32 %v2328_v6, %v2354_v0 }
 0xa3a   : > { %v4639_v26 = vpop.eup %3647  ;;  %v2378_v33 = vmul.f32 1.442695, %v2364_v18 }
 0xa3b   : > { %v2388_v38 = vsel %vm864_vm3, %v4639_v26, 0.0  ;;  %v4643_v41 = vpop.eup %3649 }
 0xa3c   : > { %3655 = vpow2.f32 %v2378_v33  ;;  %2389 = vadd.xlane.f32.xlu0 %v2388_v38  ;;  %v2382_v37 = vsel %vm864_vm3, %v4643_v41, 0.0 }
 0xa3d   : > { %3657 = vpow2.f32 %v2374_v31 }
 0xa3e   : > { %v3652_v51 = vpop.eup %3651 }
 0xa3f   : > { %v2391_v58 = vsel %vm864_vm3, %v3652_v51, 0.0  ;;  %v3654_v3 = vpop.eup %3653 }
 0xa40   : > { %2383 = vadd.xlane.f32.xlu0 %v2382_v37  ;;  %2392 = vadd.xlane.f32.xlu1 %v2391_v58  ;;  %v2385_v6 = vsel %vm864_vm3, %v3654_v3, 0.0  ;;  %v3549_v37 = vld [vmem:[%s4822_s6] sm:$0xff]   ;;  %v3550_v58 = vld [vmem:[%s4822_s6 + $0x8] sm:$0xff]  }
 0xa44   : > { %2386 = vadd.xlane.f32.xlu1 %v2385_v6 }
 0xa46   : > { %v4649_v39 = vpop.eup %3655 }
 0xa47   : > { %v2400_v40 = vsel %vm864_vm3, %v4649_v39, 0.0  ;;  %v4653_v36 = vpop.eup %3657 }
 0xa48   : > { %2401 = vadd.xlane.f32.xlu0 %v2400_v40  ;;  %v2394_v44 = vsel %vm864_vm3, %v4653_v36, 0.0 }
 0xa4c   : > { %2395 = vadd.xlane.f32.xlu0 %v2394_v44 }
 0xa55   : > { %2473 = vrot.lane.b32.xlu1 %v4289_v59, %s3920_s23  ;;  %v2363_v59 = vsub.f32 %v4628_v61, %v2351_v48 }
 0xa59   : > { %2520 = vrot.lane.b32.xlu1 %v4301_v8, %s3920_s23  ;;  %v2380_v8 = vmul.f32 1.442695, %v2365_v50 }
 0xa5b   : > { %3659 = vpow2.f32 %v2380_v8 }
 0xa62   : > { %2426 = vrot.lane.b32.xlu0 %v4291_v60, %s3920_s23  ;;  %v2376_v60 = vmul.f32 1.442695, %v2363_v59 }
 0xa64   : > { %3661 = vpow2.f32 %v2376_v60 }
 0xa65   : > { %v3660_v9 = vpop.eup %3659 }
 0xa66   : > { %3486 = vrot.lane.b32.xlu0 %v3485_v12, %s3921_s25  ;;  %v2403_v11 = vsel %vm864_vm3, %v3660_v9, 0.0 }
 0xa6a   : > { %3496 = vrot.lane.b32.xlu0 %v3495_v56, %s3922_s0 }
 0xa6e   : > { %3506 = vrot.lane.b32.xlu0 %v3505_v29, %s3921_s25  ;;  %v3662_v12 = vpop.eup %3661 }
 0xa6f   : > { %v2397_v1 = vsel %vm864_vm3, %v3662_v12, 0.0 }
 0xa7d   : > { %2404 = vadd.xlane.f32.xlu1 %v2403_v11 }
 0xa81   : > { %2398 = vadd.xlane.f32.xlu1 %v2397_v1 }
 0xa92   : > { %2567 = vrot.lane.b32.xlu1 %v4299_v7, %s3920_s23  ;;  %s3827_s23 = sshll.u32 %s3924_s24, 4  ;;  %s3828_s23 = int_to_ptr.vmem [resolvable:$false] %s3827_s23 }
 0xa93   : > { %p3830_p8 = scmp.lt.s32.totalorder %s4769_s19, %s3828_s23 }
 0xa96   : > { %3491 = vrot.lane.b32.xlu1 %v3490_v5, %s3921_s25 }
 0xa9a   : > { %3501 = vrot.lane.b32.xlu1 %v3500_v45, %s3922_s0 }
 0xa9e   : > { %3511 = vrot.lane.b32.xlu1 %v3510_v17, %s3921_s25 }
 0xac9   : > { %v2390_v20 = vpop.xlane.xlu0 %2389 }
 0xaca   : > { %3663 = vrcp.f32 %v2390_v20 }
 0xacd   : > { %v2384_v24 = vpop.xlane.xlu0 %2383  ;;  %v2393_v29 = vpop.xlane.xlu1 %2392 }
 0xace   : > { %3665 = vrcp.f32 %v2393_v29 }
 0xacf   : > { %3667 = vrcp.f32 %v2384_v24 }
 0xad1   : > { %v2387_v7 = vpop.xlane.xlu1 %2386 }
 0xad2   : > { %3669 = vrcp.f32 %v2387_v7 }
 0xad4   : > { %v3664_v5 = vpop.eup %3663 }
 0xad5   : > { %v2402_v2 = vpop.xlane.xlu0 %2401  ;;  %v2474_v4 = vpop.permute.xlu1 %2473  ;;  %v2416_v14 = vmul.f32 %v3664_v5, %v4639_v26 }
 0xad6   : > { %3353 = vmatpush3.bf16.msra.mxu1 %v2474_v4  ;;  %3671 = vrcp.f32 %v2402_v2 }
 0xad7   : > { %3364 = vmatprep.subr.bf16.mxu1 %v3912_v28 }
 0xad8   : > { %v3666_v13 = vpop.eup %3665 }
 0xad9   : > { %v2396_v15 = vpop.xlane.xlu0 %2395  ;;  %v3668_v45 = vpop.eup %3667  ;;  %v2417_v16 = vmul.f32 %v3666_v13, %v3652_v51 }
 0xada   : > { %v2414_v35 = vmul.f32 %v3668_v45, %v4643_v41  ;;  %v2521_v22 = vpop.permute.xlu1 %2520 }
 0xadb   : > { %v2423_v52 = vpack.c.bf16 %v2417_v16, %v2416_v14 }
 0xadc   : > { %v3670_v17 = vpop.eup %3669 }
 0xadd   : > { %v2415_v56 = vmul.f32 %v3670_v17, %v3654_v3  ;;  %v2427_v61 = vpop.permute.xlu0 %2426  ;;  %3355 = vmatmul.mubr.msk.bf16.vlgmr.msra.gmra.mrb[68].mxu1 %vm864_vm3, %v2423_v52 }
 0xade   : > { %3347 = vmatpush3.bf16.msra.mxu0 %v2427_v61  ;;  %3366 = vmatprep.mubr.msk.bf16.mxu1 %vm3913_vm1, %v3912_v28 }
 0xadf   : > { %3358 = vmatprep.subr.bf16.mxu0 %v3912_v28  ;;  %v2422_v53 = vpack.c.bf16 %v2415_v56, %v2414_v35 }
 0xae0   : > { %v3672_v62 = vpop.eup %3671 }
 0xae1   : > { %3349 = vmatmul.mubr.msk.bf16.vlgmr.msra.gmra.mrb[60].mxu0 %vm864_vm3, %v2422_v53  ;;  %v2420_v18 = vmul.f32 %v3672_v62, %v4649_v39  ;;  %v3487_v49 = vpop.permute.xlu0 %3486 }
 0xae2   : > { %3359 = vmatpush3.bf16.msra.mxu0 %v2521_v22  ;;  %3360 = vmatprep.mubr.msk.bf16.mxu0 %vm3913_vm1, %v3912_v28  ;;  %v3489_v13 = vunpack.i.h.bf16 %v3487_v49  ;;  %v3488_v45 = vunpack.i.l.bf16 %v3487_v49 }
 0xae3   : > { %3370 = vmatprep.subr.bf16.mxu0 %v3549_v37 }
 0xb0a   : > { %v2405_v10 = vpop.xlane.xlu1 %2404 }
 0xb0b   : > { %3673 = vrcp.f32 %v2405_v10  ;;  %v2711_v10 = vsel %vm675_vm2, %v4407_v25, %v3489_v13 }
 0xb0c   : > { %3675 = vrcp.f32 %v2396_v15 }
 0xb0e   : > { %v2399_v42 = vpop.xlane.xlu1 %2398 }
 0xb0f   : > { %3677 = vrcp.f32 %v2399_v42 }
 0xb12   : > { %v2568_v47 = vpop.permute.xlu1 %2567 }
 0xb13   : > { %3365 = vmatpush3.bf16.msra.mxu1 %v2568_v47 }
 0xb15   : > { %v3674_v0 = vpop.eup %3673 }
 0xb16   : > { %v2421_v26 = vmul.f32 %v3674_v0, %v3660_v9  ;;  %v3676_v31 = vpop.eup %3675  ;;  %v3492_v2 = vpop.permute.xlu1 %3491 }
 0xb17   : > { %v2418_v41 = vmul.f32 %v3676_v31, %v4653_v36  ;;  %v3494_v5 = vunpack.i.h.bf16 %v3492_v2  ;;  %v3493_v55 = vunpack.i.l.bf16 %v3492_v2 }
 0xb18   : > { %v2425_v33 = vpack.c.bf16 %v2421_v26, %v2420_v18 }
 0xb19   : > { %v3678_v38 = vpop.eup %3677  ;;  %v2713_v52 = vsel %vm675_vm2, %v4403_v21, %v3494_v5  ;;  %v2712_v35 = vsel %vm675_vm2, %v4401_v19, %v3493_v55  ;;  %v2710_v21 = vsel %vm675_vm2, %v4405_v23, %v3488_v45 }
 0xb1a   : > { %v2419_v51 = vmul.f32 %v3678_v38, %v3662_v12  ;;  %3367 = vmatmul.mubr.msk.bf16.vlgmr.msra.gmra.mrb[72].mxu1 %vm864_vm3, %v2425_v33  ;;  %v3502_v43 = vpop.permute.xlu1 %3501 }
 0xb1b   : > { %v3504_v57 = vunpack.i.h.bf16 %v3502_v43 }
 0xb1c   : > { %v2424_v28 = vpack.c.bf16 %v2419_v51, %v2418_v41 }
 0xb1d   : > { %v2721_v22 = vsel %vm864_vm3, %v2713_v52, %v3504_v57 }
 0xb1e   : > { %3361 = vmatmul.mubr.msk.bf16.vlgmr.msra.gmra.mrb[64].mxu0 %vm864_vm3, %v2424_v28  ;;  %v3512_v4 = vpop.permute.xlu1 %3511 }
 0xb1f   : > { %3371 = vmatpush3.bf16.msra.mxu0 %v3549_v37  ;;  %v3514_v51 = vunpack.i.h.bf16 %v3512_v4  ;;  %v3513_v28 = vunpack.i.l.bf16 %v3512_v4 }
 0xb20   : > { %3372 = vmatprep.subr.bf16.mxu0 %v3550_v58 }
 0xb23   : > { %3373 = vmatpush3.bf16.msra.mxu0 %v3550_v58 }
 0xbb0   : > { %v2513_v3 = vpop.f32.mrb[68].mxu1 }
 0xbb1   : > { %v3356_v6 = vpop.f32.mrb[69].mxu1 }
 0xbb2   : > { %v2516_v39 = vpop.f32.mrb[70].mxu1 }
 0xbb3   : > { %v3515_v40 = vpack.i.bf16 %v2516_v39, %v2513_v3  ;;  %v3357_v36 = vpop.f32.mrb[71].mxu1 }
 0xbb4   : > { %v2466_v44 = vpop.f32.mrb[60].mxu0  ;;  %v2716_v36 = vsel %vm675_vm2, %v4409_v27, %v3513_v28 }
 0xbb5   : > { %v3350_v48 = vpop.f32.mrb[61].mxu0  ;;  %3516 = vrot.lane.b32.xlu1 %v3515_v40, %s3923_s2  ;;  %v2717_v40 = vsel %vm675_vm2, %v4411_v30, %v3514_v51 }
 0xbb6   : > { %v2469_v46 = vpop.f32.mrb[62].mxu0 }
 0xbb7   : > { %v3520_v50 = vpack.i.bf16 %v2469_v46, %v2466_v44  ;;  %v3351_v59 = vpop.f32.mrb[63].mxu0 }
 0xbb9   : > { %3521 = vrot.lane.b32.xlu0 %v3520_v50, %s3923_s2  ;;  %3531 = vrot.lane.b32.xlu1 %v3530_v54, %s3922_s0  ;;  %v3497_v54 = vpop.permute.xlu0 %3496 }
 0xbba   : > { %v3499_v14 = vunpack.i.h.bf16 %v3497_v54  ;;  %v3498_v16 = vunpack.i.l.bf16 %v3497_v54 }
 0xbbc   : > { %v2718_v26 = vsel %vm864_vm3, %v2710_v21, %v3498_v16  ;;  %v2719_v31 = vsel %vm864_vm3, %v2711_v10, %v3499_v14 }
 0xbbd   : > { %3526 = vrot.lane.b32.xlu0 %v3525_v63, %s3922_s0  ;;  %v3503_v63 = vunpack.i.l.bf16 %v3502_v43  ;;  %v3507_v15 = vpop.permute.xlu0 %3506  ;;  %s3829_s0 = scalar_lea.vmem %s3828_s23, 2048 }
 0xbbe   : > { %v3509_v3 = vunpack.i.h.bf16 %v3507_v15  ;;  %v3508_v6 = vunpack.i.l.bf16 %v3507_v15  ;;  %p3831_p6 = scmp.lt.s32.totalorder %s3829_s0, %s3823_s3 }
 0xbbf   : > { %v2720_v53 = vsel %vm864_vm3, %v2712_v35, %v3503_v63 }
 0xbc0   : > { %v2715_v30 = vsel %vm675_vm2, %v4415_v34, %v3509_v3  ;;  %v2714_v27 = vsel %vm675_vm2, %v4413_v32, %v3508_v6  ;;  %v3053_v32 = vld [vmem:[%s4823_s7] ss:$0 sm:$0xff]  ;;  %p3832_p10 = por %p3831_p6, %p3830_p8 }
 0xbc2   : > { %p3833_p3 = pnand %p3832_p10, %p3826_p0 }
 0xbed   : > { %v2607_v8 = vpop.f32.mrb[72].mxu1 }
 0xbee   : > { %v3368_v60 = vpop.f32.mrb[73].mxu1 }
 0xbef   : > { %v2610_v9 = vpop.f32.mrb[74].mxu1 }
 0xbf0   : > { %v3540_v11 = vpack.i.bf16 %v2610_v9, %v2607_v8  ;;  %v3369_v12 = vpop.f32.mrb[75].mxu1 }
 0xbf1   : > { %v2560_v1 = vpop.f32.mrb[64].mxu0 }
 0xbf2   : > { %3541 = vrot.lane.b32.xlu1 %v3540_v11, %s3923_s2  ;;  %v3362_v20 = vpop.f32.mrb[65].mxu0 }
 0xbf3   : > { %v2563_v24 = vpop.f32.mrb[66].mxu0 }
 0xbf4   : > { %v3535_v29 = vpack.i.bf16 %v2563_v24, %v2560_v1  ;;  %v3363_v7 = vpop.f32.mrb[67].mxu0 }
 0xbf6   : > { %3536 = vrot.lane.b32.xlu0 %v3535_v29, %s3923_s2 }
 0xc27   : > { %v3517_v17 = vpop.permute.xlu1 %3516 }
 0xc28   : > { %v3519_v56 = vunpack.i.h.bf16 %v3517_v17  ;;  %v3518_v61 = vunpack.i.l.bf16 %v3517_v17 }
 0xc2a   : > { %v2729_v42 = vsel %vm2726_vm4, %v2720_v53, %v3518_v61  ;;  %v2730_v47 = vsel %vm2726_vm4, %v2721_v22, %v3519_v56 }
 0xc2b   : > { %v3522_v62 = vpop.permute.xlu0 %3521  ;;  %v2736_v0 = vpack.c.bf16 %v2730_v47, %v2729_v42  ;;  %v3532_v41 = vpop.permute.xlu1 %3531 }
 0xc2c   : > { %v3524_v18 = vunpack.i.h.bf16 %v3522_v62  ;;  %v3523_v19 = vunpack.i.l.bf16 %v3522_v62  ;;  %v3534_v23 = vunpack.i.h.bf16 %v3532_v41  ;;  %v3533_v37 = vunpack.i.l.bf16 %v3532_v41 }
 0xc2e   : > { %v2728_v33 = vsel %vm2726_vm4, %v2719_v31, %v3524_v18  ;;  %v2727_v38 = vsel %vm2726_vm4, %v2718_v26, %v3523_v19  ;;  %v2724_v46 = vsel %vm864_vm3, %v2716_v36, %v3533_v37  ;;  %v2725_v50 = vsel %vm864_vm3, %v2717_v40, %v3534_v23 }
 0xc2f   : > { %v2735_v25 = vpack.c.bf16 %v2728_v33, %v2727_v38  ;;  %v3527_v58 = vpop.permute.xlu0 %3526 }
 0xc30   : > { %v3529_v59 = vunpack.i.h.bf16 %v3527_v58  ;;  %v3528_v8 = vunpack.i.l.bf16 %v3527_v58 }
 0xc31   : > { %3374 = vmatprep.mubr.msk.bf16.mxu0 %vm487_vm0, %v2735_v25 }
 0xc32   : > { %3375 = vmatmul.mubr.msk.bf16.vlgmr.msra.gmra.mrb[68].mxu0 %vm487_vm0, %v2736_v0  ;;  %v2723_v24 = vsel %vm864_vm3, %v2715_v30, %v3529_v59  ;;  %v2722_v29 = vsel %vm864_vm3, %v2714_v27, %v3528_v8 }
 0xc64   : > { %v3542_v39 = vpop.permute.xlu1 %3541 }
 0xc65   : > { %v3544_v44 = vunpack.i.h.bf16 %v3542_v39  ;;  %v3543_v48 = vunpack.i.l.bf16 %v3542_v39 }
 0xc67   : > { %v2733_v60 = vsel %vm2726_vm4, %v2724_v46, %v3543_v48  ;;  %v2734_v9 = vsel %vm2726_vm4, %v2725_v50, %v3544_v44 }
 0xc68   : > { %v2738_v11 = vpack.c.bf16 %v2734_v9, %v2733_v60  ;;  %v3537_v12 = vpop.permute.xlu0 %3536 }
 0xc69   : > { %v3539_v1 = vunpack.i.h.bf16 %v3537_v12  ;;  %v3538_v20 = vunpack.i.l.bf16 %v3537_v12 }
 0xc6b   : > { %v2732_v7 = vsel %vm2726_vm4, %v2723_v24, %v3539_v1  ;;  %v2731_v2 = vsel %vm2726_vm4, %v2722_v29, %v3538_v20 }
 0xc6c   : > { %v2737_v49 = vpack.c.bf16 %v2732_v7, %v2731_v2 }
 0xc6e   : > { %3378 = vmatprep.mubr.msk.bf16.mxu0 %vm487_vm0, %v2737_v49 }
 0xc6f   : > { %3379 = vmatmul.mubr.msk.bf16.gmra.mrb[72].mxu0 %vm487_vm0, %v2738_v11 }
 0xd05   : > { %v3376_v34 = vpop.f32.mrb[68].mxu0 }
 0xd06   : > { %v2817_v43 = vadd.f32 %v3376_v34, %v3053_v32  ;;  %v2808_v54 = vpop.f32.mrb[69].mxu0 }
 0xd07   : > { %v2809_v4 = vadd.f32 %v3053_v32, %v2808_v54  ;;  %v3377_v5 = vpop.f32.mrb[70].mxu0 }
 0xd08   : > { %2841 = vst.msk [vmem:[%s435_s30 + $0x10] sm:$0xff] %vm487_vm0, %v2817_v43  ;;  %v2820_v55 = vadd.f32 %v3377_v5, %v3053_v32  ;;  %v2811_v57 = vpop.f32.mrb[71].mxu0 }
 0xd09   : > { %2839 = vst.msk [vmem:[%s435_s30] sm:$0xff] %vm487_vm0, %v2809_v4  ;;  %v2812_v63 = vadd.f32 %v3053_v32, %v2811_v57 }
 0xd0a   : > { %2842 = vst.msk [vmem:[%s435_s30 + $0x18] sm:$0xff] %vm487_vm0, %v2820_v55 }
 0xd0b   : > { %2840 = vst.msk [vmem:[%s435_s30 + $0x8] sm:$0xff] %vm487_vm0, %v2812_v63 }
 0xd42   : > { %v3380_v13 = vpop.f32.mrb[72].mxu0 }
 0xd43   : > { %v2833_v15 = vadd.f32 %v3380_v13, %v3053_v32  ;;  %v2824_v45 = vpop.f32.mrb[73].mxu0 }
 0xd44   : > { %v2825_v14 = vadd.f32 %v3053_v32, %v2824_v45  ;;  %v3381_v16 = vpop.f32.mrb[74].mxu0 }
 0xd45   : > { %2845 = vst.msk [vmem:[%s435_s30 + $0x30] sm:$0xff] %vm487_vm0, %v2833_v15  ;;  %v2836_v17 = vadd.f32 %v3381_v16, %v3053_v32  ;;  %v2827_v52 = vpop.f32.mrb[75].mxu0 }
 0xd46   : > { %2843 = vst.msk [vmem:[%s435_s30 + $0x20] sm:$0xff] %vm487_vm0, %v2825_v14  ;;  %v2828_v35 = vadd.f32 %v3053_v32, %v2827_v52 }
 0xd47   : > { %2846 = vst.msk [vmem:[%s435_s30 + $0x38] sm:$0xff] %vm487_vm0, %v2836_v17 }
 0xd48   : > { %2844 = vst.msk [vmem:[%s435_s30 + $0x28] sm:$0xff] %vm487_vm0, %v2828_v35 }
 0xd49   : > { %3836 = shalt.err (!%p3833_p3)
}
 0xd4a   : > { %s3837_s26 = scalar_lea.hbm %s4766_s29, 1024  ;;  %s3841_s18 = scalar_lea.hbm %s4864_s14, 2048 }
 0xd4b   : > { %p3838_p9 = scmp.ne.s32.totalorder %s4766_s29, %s3837_s26  ;;  %p3842_p7 = scmp.lt.u32.totalorder %s4766_s29, %s4864_s14 }
 0xd4c   : > { %p3843_p12 = scmp.lt.u32.totalorder %s3841_s18, %s3837_s26  ;;  %p3845_p1 = scmp.lt.u32.totalorder %s3837_s26, %s4766_s29 }
 0xd4d   : > { %p3839_p13 = pnand %p3838_p9, %p4124_p5 }
 0xd4e   : > { %p3844_p2 = por %p3843_p12, %p3842_p7 }
 0xd4f   : > { %p3840_p11 = pneg %p3839_p13 }
 0xd50   : > { %p3846_p4 = por %p3845_p1, %p3844_p2 }
 0xd52   : > { %p3847_p0 = pnand %p3846_p4, %p3840_p11 }
 0xd54   : > { %3850 = shalt.err (!%p3847_p0)
}
 0xd55   : > { %s3925_s8 = smov 128  }
 0xd56   : > { %3402 = dma.vmem_to_hbm [thread:$0]  (%p4124_p5), %s4769_s19, 1024, %s4766_s29, %s2848_s13, %s3925_s8, %s3925_s8, %s3921_s25  }
 0xd57 PF: > { %s4865_s30 = sld [smem:[#allocation17_spill]]  ;;  %s4866_s16 = sld [smem:[#allocation18_spill]] }
 0xd58   : > { %p4868_p6 = scmp.ge.s32.totalorder %s3901_s12, 2 }
 0xd5d   : > { %s2877_s21 = sand.u32 1, %s4865_s30   ;;  %p4867_p8 = scmp.ne.s32.totalorder %s4866_s16, 0 }
 0xd5e   : > { %s2878_s28 = scalar_lea.sflag [#allocation4], %s2877_s21 }
 0xd5f   : > { %p3422_p10 = pnand %p4868_p6, %p4867_p8 }
 0xd61   : > { %3884 = dma.done.wait (!%p3422_p10), %s2878_s28, 1024  }
 0xd62   : > { %3886 = vsyncadd (!%p3422_p10), %s2878_s28, 4294966272  ;;  %s4869_s20 = sld [smem:[#allocation19_spill]]  ;;  %p26_p3 = scmp.ge.s32.totalorder %s4110_s9, 4  }
 0xd63   : > { %s4870_s30 = smov %s3893_s10  ;;  %s4871_s10 = smov %s3897_s11 }
 0xd64   : > { %s4873_s12 = smov %s4110_s9  ;;  %28 = sbr.rel (!%p26_p3) target bundleno = 14 (0xe), region = 129 }
 0xd68   : > { %s4872_s11 = smov %s4869_s20 }
 0xd6b   :  { %2883 = vsyncpa [#allocation3], 1 }
 0xd6c   :  { %2885 = vsyncpa [#allocation3 + $0x1], 1 }
 0xd6d   :  { %2886 = vsyncpa [#allocation6], 1 }
 0xd6e   :  { %2888 = vsyncpa [#allocation6 + $0x1], 1 }
 0xd6f   :  { %2889 = vsyncpa [#allocation9], 1 }
 0xd70   :  { %2890 = vsyncpa [#allocation4], 1 }
 0xd71   :  { %2892 = vsyncpa [#allocation4 + $0x1], 1 }

// kernel: tpu_custom_call.1
= control target key start
LH: loop header
LB: loop body
LE: loop exit
PB: predicated region body
PF: predicated region fallthrough
CT: control target
= control target key end

     0   :  { %s4816_s0 = inlined_call_operand.hbm [shape: f32[8,16,32], index: 0, kind: input, shape index: {}]   ;;  %s4817_s1 = inlined_call_operand.hbm [shape: f32[8,16,32], index: 1, kind: input, shape index: {}]   ;;  %s4818_s2 = inlined_call_operand.hbm [shape: bf16[32,32], index: 2, kind: input, shape index: {}]   ;;  %s4819_s3 = inlined_call_operand.hbm [shape: bf16[32,64], index: 3, kind: input, shape index: {}]   ;;  %s4820_s4 = inlined_call_operand.vmem [shape: f32[1,32], index: 4, kind: input, shape index: {}]   ;;  %s4821_s5 = inlined_call_operand.vmem [shape: f32[1,64], index: 5, kind: input, shape index: {}]   ;;  %s4822_s6 = inlined_call_operand.vmem [shape: bf16[32,32], index: 6, kind: input, shape index: {}]   ;;  %s4823_s7 = inlined_call_operand.vmem [shape: f32[1,32], index: 7, kind: input, shape index: {}]   ;;  %s4824_s8 = inlined_call_operand.hbm [shape: f32[4,1,16,16], index: 8, kind: input, shape index: {}]   ;;  %s4825_s9 = inlined_call_operand.hbm [shape: f32[8,16,32], index: 9, kind: output, shape index: {}]  }
   0x1   :  { %4836 = sst [smem:[#allocation20_spill]] %s4816_s0 }
   0x2   :  { %4837 = sst [smem:[#allocation21_spill]] %s4818_s2 }
   0x3   :  { %4838 = sst [smem:[#allocation22_spill]] %s4819_s3 }
   0x4   :  { %4839 = sst [smem:[#allocation23_spill]] %s4824_s8 }
   0x5   :  { %4840 = sst [smem:[#allocation24_spill]] %s4825_s9 }
   0x6   :  { %14 = vsyncpa [#allocation3], 0 }
   0x7   :  { %16 = vsyncpa [#allocation3 + $0x1], 0 }
   0x8   :  { %17 = vsyncpa [#allocation6], 0 }
   0x9   :  { %19 = vsyncpa [#allocation6 + $0x1], 0 }
   0xa   :  { %20 = vsyncpa [#allocation9], 0 }
   0xb   :  { %21 = vsyncpa [#allocation4], 0 }
   0xc   :  { %23 = vsyncpa [#allocation4 + $0x1], 0  ;;  %s3976_s30 = smov 0   ;;  %s3978_s10 = smov 0  }
   0xd   :  { %s3980_s11 = smov 0   ;;  %s3982_s12 = smov 0  }
   0xe LB: > { %4841 = sst [smem:[#allocation17_spill]] %s3889_s30  ;;  %s3997_s13 = sadd.s32 4294967295, %s3901_s12   ;;  %s3901_s12 = sphi %s3982_s12, %s4873_s12   ;;  %s3897_s11 = sphi %s3980_s11, %s4872_s11   ;;  %s3893_s10 = sphi %s3978_s10, %s4871_s10   ;;  %s3889_s30 = sphi %s3976_s30, %s4870_s30  }
   0xf   : > { %s2986_s14 = sadd.s32 4294967294, %s3901_s12   ;;  %p49_p0 = scmp.ne.s32.totalorder %s3893_s10, %s3889_s30 }
  0x10   : > { %p4826_p1 = scmp.eq.s32.totalorder %s3997_s13, 0  ;;  %p252_p3 = scmp.eq.s32.totalorder %s2986_s14, 1 }
  0x11   : > { %p2987_p5 = scmp.ge.s32.totalorder %s3901_s12, 1  ;;  %p259_p7 = scmp.lt.s32.totalorder %s3901_s12, 3 }
  0x12   : > { %p4006_p4 = por %p4826_p1, %p49_p0  ;;  %p4011_p6 = por %p252_p3, %p49_p0 }
  0x13   : > { %p4016_p8 = pnand %p2987_p5, %p259_p7  ;;  %s3903_s18 = smov [#allocation7]  }
  0x14   : > { %s4842_s15 = scalar_select %p4006_p4, 1, 0 }
  0x15   : > { %s4843_s16 = scalar_select %p4011_p6, 1, 0 }
  0x16   : > { %s4845_s17 = scalar_select %p4016_p8, 1, 0 }
  0x17   : > { %4844 = sst [smem:[#allocation18_spill]] %s4843_s16  ;;  %s271_s19 = sshll.u32 %s3903_s18, 4  ;;  %s4020_s19 = int_to_ptr.vmem [resolvable:$true] %s271_s19 }
  0x18   : > { %p3404_p9 = pneg %p4016_p8  ;;  %s3904_s21 = smov [#allocation8]  }
  0x19   : > { %s284_s22 = sshll.u32 %s3904_s21, 4  ;;  %s3905_s23 = smov [#allocation10]   ;;  %s4031_s22 = int_to_ptr.vmem [resolvable:$true] %s284_s22 }
  0x1a   : > { %p4027_p11 = pnand %p3404_p9, %p4826_p1  ;;  %s4033_s24 = sshll.u32 %s3905_s23, 4  ;;  %s310_s24 = int_to_ptr.vmem [resolvable:$true] %s4033_s24 }
  0x1b   : > { %s4847_s2 = sld [smem:[#allocation21_spill]] }
  0x1c   : > { %p4043_p13 = pneg %p4027_p11 }
  0x21   : > { %s3679_s27 = scalar_lea.hbm %s4847_s2, 256 }
  0x22   : > { %p3680_p12 = scmp.ne.s32.totalorder %s4847_s2, %s3679_s27  ;;  %p3686_p5 = scmp.lt.u32.totalorder %s3679_s27, %s4847_s2 }
  0x24   : > { %p3682_p0 = pnand %p4043_p13, %p3680_p12 }
  0x26   : > { %p3683_p3 = pneg %p3682_p0 }
  0x28   : > { %p3688_p7 = pnand %p3686_p5, %p3683_p3 }
  0x2a   : > { %3691 = shalt.err (!%p3688_p7)
}
  0x2b   : > { %s3692_s23 = scalar_lea.vmem %s4020_s19, 256  ;;  %p3700_p2 = scmp.lt.s32.totalorder %s4020_s19, %s4020_s19 }
  0x2c   : > { %p3693_p9 = scmp.ne.s32.totalorder %s4020_s19, %s3692_s23  ;;  %p3701_p6 = scmp.lt.s32.totalorder %s3692_s23, %s3692_s23 }
  0x2e   : > { %p3695_p10 = pnand %p3693_p9, %p4043_p13  ;;  %p3702_p12 = por %p3701_p6, %p3700_p2 }
  0x30   : > { %p3696_p1 = pneg %p3695_p10 }
  0x32   : > { %p3703_p0 = pnand %p3702_p12, %p3696_p1 }
  0x34   : > { %3706 = shalt.err (!%p3703_p0)
}
  0x35   : > { %s3906_s25 = smov 64   ;;  %s3907_s26 = smov 4  }
  0x36   : > { %3407 = dma.hbm_to_vmem [thread:$0]  (!%p4027_p11), %s4847_s2, 256, %s4020_s19, [#allocation6], %s3906_s25, %s3906_s25, %s3907_s26  }
  0x37   : > { %s4849_s3 = sld [smem:[#allocation22_spill]] }
  0x3d   : > { %s3707_s21 = scalar_lea.hbm %s4849_s3, 256 }
  0x3e   : > { %p3708_p2 = scmp.ne.s32.totalorder %s4849_s3, %s3707_s21  ;;  %p3714_p10 = scmp.lt.u32.totalorder %s3707_s21, %s4849_s3 }
  0x40   : > { %p3710_p1 = pnand %p3708_p2, %p4043_p13 }
  0x42   : > { %p3711_p6 = pneg %p3710_p1 }
  0x44   : > { %p3716_p3 = pnand %p3714_p10, %p3711_p6 }
  0x46   : > { %3719 = shalt.err (!%p3716_p3)
}
  0x47   : > { %s3720_s19 = scalar_lea.vmem %s4031_s22, 256  ;;  %p3728_p12 = scmp.lt.s32.totalorder %s4031_s22, %s4031_s22 }
  0x48   : > { %p3721_p5 = scmp.ne.s32.totalorder %s4031_s22, %s3720_s19  ;;  %p3729_p0 = scmp.lt.s32.totalorder %s3720_s19, %s3720_s19 }
  0x4a   : > { %p3723_p7 = pnand %p3721_p5, %p4043_p13  ;;  %p3730_p2 = por %p3729_p0, %p3728_p12 }
  0x4c   : > { %p3724_p9 = pneg %p3723_p7 }
  0x4e   : > { %p3731_p1 = pnand %p3730_p2, %p3724_p9 }
  0x50   : > { %3734 = shalt.err (!%p3731_p1)
}
  0x51   : > { %3410 = dma.hbm_to_vmem [thread:$0]  (!%p4027_p11), %s4849_s3, 256, %s4031_s22, [#allocation9], %s3906_s25, %s3906_s25, %s3907_s26  }
  0x52   : > { %s4850_s8 = sld [smem:[#allocation23_spill]] }
  0x58   : > { %s3735_s28 = scalar_lea.hbm %s4850_s8, 1024 }
  0x59   : > { %p3736_p6 = scmp.ne.s32.totalorder %s4850_s8, %s3735_s28  ;;  %p3742_p5 = scmp.lt.u32.totalorder %s3735_s28, %s4850_s8 }
  0x5b   : > { %p3738_p10 = pnand %p3736_p6, %p4043_p13 }
  0x5d   : > { %p3739_p3 = pneg %p3738_p10 }
  0x5f   : > { %p3744_p7 = pnand %p3742_p5, %p3739_p3 }
  0x61   : > { %3747 = shalt.err (!%p3744_p7)
}
  0x62   : > { %s3748_s19 = scalar_lea.vmem %s310_s24, 1024  ;;  %p3756_p2 = scmp.lt.s32.totalorder %s310_s24, %s310_s24 }
  0x63   : > { %p3749_p9 = scmp.ne.s32.totalorder %s310_s24, %s3748_s19  ;;  %p3757_p1 = scmp.lt.s32.totalorder %s3748_s19, %s3748_s19 }
  0x65   : > { %p3751_p12 = pnand %p3749_p9, %p4043_p13  ;;  %p3758_p4 = por %p3757_p1, %p3756_p2 }
  0x67   : > { %p3752_p0 = pneg %p3751_p12 }
  0x69   : > { %p3759_p8 = pnand %p3758_p4, %p3752_p0 }
  0x6b   : > { %3762 = shalt.err (!%p3759_p8)
}
  0x6c   : > { %s4832_s22 = smov 128   ;;  %s4834_s14 = smov 8  }
  0x6d   : > { %3413 = dma.hbm_to_vmem [thread:$0]  (!%p4027_p11), %s4850_s8, 1024, %s310_s24, [#allocation9], %s4832_s22, %s4832_s22, %s4834_s14  }
  0x6e   : > { %s4110_s9 = sadd.s32 1, %s3901_s12   ;;  %s36_s16 = sadd.s32 1, %s3897_s11 }
  0x6f   : > { %s33_s30 = ssub.s32 %s3901_s12, %s4110_s9  ;;  %p43_p8 = scmp.ne.s32.totalorder %s3897_s11, %s3893_s10 }
  0x70   : > { %p34_p4 = scmp.eq.s32.totalorder %s33_s30, 0  ;;  %p44_p13 = scmp.eq.s32.totalorder %s3901_s12, 0 }
  0x71   : > { %p3428_p6 = scmp.lt.s32.totalorder %s3901_s12, 2  ;;  %p4852_p3 = scmp.eq.s32.totalorder %s3997_s13, 1 }
  0x72   : > { %s4120_s27 = scalar_select %p34_p4, %s3897_s11, %s36_s16  }
  0x73   : > { %p45_p10 = por %p44_p13, %p43_p8  ;;  %p4124_p5 = por %p4852_p3, %p43_p8 }
  0x74   : > { %4851 = sst [smem:[#allocation19_spill]] %s4120_s27  ;;  %s323_s28 = sand.u32 1, %s3897_s11  }
  0x75   : > { %s3067_s29 = sshll.u32 %s3901_s12, 10  ;;  %s4130_s24 = sshll.u32 %s323_s28, 6 }
  0x76   : > { %s4854_s0 = sld [smem:[#allocation20_spill]]  ;;  %s327_s19 = scalar_lea.vmem [#allocation2], %s4130_s24 }
  0x77   : > { %s335_s25 = sshll.u32 %s327_s19, 4  ;;  %p4138_p11 = pnand %p3428_p6, %p45_p10  ;;  %s4142_s25 = int_to_ptr.vmem [resolvable:$true] %s335_s25 }
  0x78   : > { %s4147_s18 = scalar_lea.hbm %s4817_s1, %s3067_s29  ;;  %s4149_s21 = scalar_lea.sflag [#allocation3], %s323_s28 }
  0x79   : > { %p3765_p9 = pneg %p4138_p11 }
  0x7c   : > { %s4135_s23 = scalar_lea.hbm %s4854_s0, %s3067_s29  ;;  %s3768_s2 = scalar_lea.hbm %s4854_s0, 2048 }
  0x7d   : > { %s3763_s22 = scalar_lea.hbm %s4135_s23, 1024  ;;  %p3769_p2 = scmp.lt.u32.totalorder %s4135_s23, %s4854_s0 }
  0x7e   : > { %p3764_p7 = scmp.ne.s32.totalorder %s4135_s23, %s3763_s22  ;;  %p3770_p1 = scmp.lt.u32.totalorder %s3768_s2, %s3763_s22 }
  0x7f   : > { %p3772_p8 = scmp.lt.u32.totalorder %s3763_s22, %s4135_s23 }
  0x80   : > { %p3766_p12 = pnand %p3765_p9, %p3764_p7  ;;  %p3771_p4 = por %p3770_p1, %p3769_p2 }
  0x82   : > { %p3767_p0 = pneg %p3766_p12  ;;  %p3773_p13 = por %p3772_p8, %p3771_p4 }
  0x84   : > { %p3774_p6 = pnand %p3773_p13, %p3767_p0 }
  0x86   : > { %3777 = shalt.err (!%p3774_p6)
}
  0x87   : > { %s3778_s28 = scalar_lea.vmem %s4142_s25, 1024  ;;  %s3910_s14 = smov [#allocation2]  }
  0x88   : > { %p3779_p10 = scmp.ne.s32.totalorder %s4142_s25, %s3778_s28  ;;  %s3783_s29 = sshll.u32 %s3910_s14, 4  ;;  %s3784_s29 = int_to_ptr.vmem [resolvable:$false] %s3783_s29 }
  0x89   : > { %s3785_s3 = scalar_lea.vmem %s3784_s29, 2048  ;;  %p3786_p12 = scmp.lt.s32.totalorder %s4142_s25, %s3784_s29 }
  0x8a   : > { %p3781_p3 = pnand %p3779_p10, %p3765_p9  ;;  %p3787_p2 = scmp.lt.s32.totalorder %s3785_s3, %s3778_s28 }
  0x8c   : > { %p3782_p7 = pneg %p3781_p3  ;;  %p3788_p1 = por %p3787_p2, %p3786_p12 }
  0x8e   : > { %p3789_p4 = pnand %p3788_p1, %p3782_p7 }
  0x90   : > { %3792 = shalt.err (!%p3789_p4)
}
  0x91   : > { %s4856_s2 = smov 8   ;;  %s4857_s8 = smov 128  }
  0x92   : > { %3417 = dma.hbm_to_vmem [thread:$0]  (!%p4138_p11), %s4135_s23, 1024, %s4142_s25, %s4149_s21, %s4857_s8, %s4857_s8, %s4856_s2  }
  0x93   : > { %s349_s22 = scalar_lea.vmem [#allocation5], %s4130_s24  ;;  %s345_s16 = sand.u32 1, %s3901_s12  }
  0x94   : > { %s357_s30 = sshll.u32 %s349_s22, 4  ;;  %s4184_s19 = scalar_lea.sflag [#allocation6], %s345_s16  ;;  %s4182_s30 = int_to_ptr.vmem [resolvable:$true] %s357_s30 }
  0x95   : > { %s3793_s28 = scalar_lea.hbm %s4147_s18, 1024  ;;  %s3798_s3 = scalar_lea.hbm %s4817_s1, 2048 }
  0x96   : > { %p3794_p0 = scmp.ne.s32.totalorder %s4147_s18, %s3793_s28  ;;  %p3799_p6 = scmp.lt.u32.totalorder %s4147_s18, %s4817_s1 }
  0x97   : > { %p3800_p10 = scmp.lt.u32.totalorder %s3798_s3, %s3793_s28  ;;  %p3802_p7 = scmp.lt.u32.totalorder %s3793_s28, %s4147_s18 }
  0x98   : > { %p3796_p8 = pnand %p3794_p0, %p3765_p9 }
  0x99   : > { %p3801_p3 = por %p3800_p10, %p3799_p6 }
  0x9a   : > { %p3797_p13 = pneg %p3796_p8 }
  0x9b   : > { %p3803_p12 = por %p3802_p7, %p3801_p3 }
  0x9d   : > { %p3804_p2 = pnand %p3803_p12, %p3797_p13 }
  0x9f   : > { %3807 = shalt.err (!%p3804_p2)
}
  0xa0   : > { %s3808_s24 = scalar_lea.vmem %s4182_s30, 1024  ;;  %s3911_s23 = smov [#allocation5]  }
  0xa1   : > { %p3809_p1 = scmp.ne.s32.totalorder %s4182_s30, %s3808_s24  ;;  %s3813_s25 = sshll.u32 %s3911_s23, 4  ;;  %s3814_s25 = int_to_ptr.vmem [resolvable:$false] %s3813_s25 }
  0xa2   : > { %s3815_s0 = scalar_lea.vmem %s3814_s25, 2048  ;;  %p3816_p8 = scmp.lt.s32.totalorder %s4182_s30, %s3814_s25 }
  0xa3   : > { %p3811_p4 = pnand %p3809_p1, %p3765_p9  ;;  %p3817_p6 = scmp.lt.s32.totalorder %s3815_s0, %s3808_s24 }
  0xa5   : > { %p3812_p0 = pneg %p3811_p4  ;;  %p3818_p10 = por %p3817_p6, %p3816_p8 }
  0xa7   : > { %p3819_p3 = pnand %p3818_p10, %p3812_p0 }
  0xa9   : > { %3822 = shalt.err (!%p3819_p3)
}
  0xaa   : > { %3420 = dma.hbm_to_vmem [thread:$0]  (!%p4138_p11), %s4147_s18, 1024, %s4182_s30, %s4184_s19, %s4857_s8, %s4857_s8, %s4856_s2  }
  0xab   : > { %p4858_p9 = scmp.ne.s32.totalorder %s4845_s17, 0 }
  0xac   : > { %s4216_s27 = sand.u32 (!%p4858_p9), 1, %s3893_s10   ;;  %p4859_p13 = scmp.ne.s32.totalorder (!%p4858_p9), %s4842_s15, 0 }
  0xad   : > { %369 = sbr.rel (%p4858_p9) target bundleno = 3415 (0xd57), region = 56  ;;  %s4219_s21 = sshll.u32 (!%p4858_p9), %s4216_s27, 6 }
  0xae   : > { %s372_s26 = scalar_lea.sflag (!%p4858_p9), [#allocation3], %s4216_s27  ;;  %s4223_s22 = scalar_lea.vmem (!%p4858_p9), [#allocation2], %s4219_s21 }
  0xb4   : > { %3868 = dma.done.wait (%p4859_p13), %s372_s26, 1024  }
  0xb5   : > { %3870 = vsyncadd (%p4859_p13), %s372_s26, 4294966272  ;;  %s380_s17 = sand.u32 1, %s3997_s13   ;;  %s4231_s2 = scalar_lea.vmem [#allocation5], %s4219_s21 }
  0xb6   : > { %s381_s18 = scalar_lea.sflag [#allocation6], %s380_s17 }
  0xb7   : > { %3872 = dma.done.wait (%p4859_p13), %s381_s18, 1024  }
  0xb8   : > { %3874 = vsyncadd (%p4859_p13), %s381_s18, 4294966272  ;;  %p4860_p11 = scmp.eq.s32.totalorder %s3997_s13, 0 }
  0xba   : > { %3876 = dma.done.wait (%p4860_p11), [#allocation6], 256   ;;  %p4861_p7 = pmov %p4860_p11 }
  0xbc   : > { %3878 = vsyncadd (%p4861_p7), [#allocation6], 4294967040  ;;  %p4862_p12 = pmov %p4861_p7 }
  0xbd   : > { %p4863_p2 = pmov %p4861_p7 }
  0xbe   : > { %3880 = dma.done.wait (%p4862_p12), [#allocation9], 1280  }
  0xbf   : > { %3882 = vsyncadd (%p4863_p2), [#allocation9], 4294966016  ;;  %v3545_v0 = vld [vmem:[#allocation7] sm:$0xff]   ;;  %v3546_v1 = vld [vmem:[#allocation7 + $0x8] sm:$0xff]   ;;  %vm487_vm0 = vcmask 261120   ;;  %v3912_v28 = vmov 0.0  }
  0xc0   : > { %3382 = vmatprep.subr.bf16.mxu1 %v3545_v0  ;;  %v444_v2 = vld [vmem:[%s4223_s22 + $0x20] sm:$0xff]  ;;  %v445_v3 = vld [vmem:[%s4223_s22 + $0x28] sm:$0xff]  ;;  %v446_v4 = vld [vmem:[%s4223_s22 + $0x30] sm:$0xff]  ;;  %3154 = vmatprep.subr.bf16.mxu0 %v3545_v0  ;;  %vm3913_vm1 = vmmov 0   ;;  %vm675_vm2 = vcmask 64512   ;;  %vm864_vm3 = vcmask 130048  }
  0xc1   : > { %3384 = vmatpush3.bf16.msra.mxu1 %v3545_v0  ;;  %v450_v5 = vpack.c.bf16 %v445_v3, %v444_v2  ;;  %v447_v6 = vld [vmem:[%s4223_s22 + $0x38] sm:$0xff]  ;;  %3155 = vmatpush3.bf16.msra.mxu0 %v3545_v0  ;;  %v3547_v7 = vld [vmem:[#allocation8] sm:$0xff]   ;;  %v452_v8 = vld [vmem:[%s4231_s2] sm:$0xff]  ;;  %s3914_s19 = smov 96   ;;  %s3915_s28 = smov 120   ;;  %vm2726_vm4 = vcmask 195584  }
  0xc2   : > { %3383 = vmatprep.subr.bf16.mxu1 %v3546_v1  ;;  %3156 = vmatprep.subr.bf16.mxu0 %v3546_v1  ;;  %v453_v9 = vld [vmem:[%s4231_s2 + $0x8] sm:$0xff]  ;;  %v451_v10 = vpack.c.bf16 %v447_v6, %v446_v4  ;;  %v440_v11 = vld [vmem:[%s4223_s22] sm:$0xff]  ;;  %v3548_v14 = vld [vmem:[#allocation8 + $0x8] sm:$0xff]   ;;  %s3916_s14 = smov 88   ;;  %s3917_s29 = smov 112  }
  0xc3   : > { %3162 = vmatprep.mubr.msk.bf16.mxu1 %vm487_vm0, %v450_v5  ;;  %v460_v12 = vpack.c.bf16 %v453_v9, %v452_v8  ;;  %v441_v13 = vld [vmem:[%s4223_s22 + $0x8] sm:$0xff]  ;;  %v442_v16 = vld [vmem:[%s4223_s22 + $0x10] sm:$0xff]  ;;  %v443_v17 = vld [vmem:[%s4223_s22 + $0x18] sm:$0xff]  ;;  %s3918_s3 = smov 80   ;;  %s3919_s24 = smov 104  }
  0xc4   : > { %v448_v15 = vpack.c.bf16 %v441_v13, %v440_v11  ;;  %v449_v18 = vpack.c.bf16 %v443_v17, %v442_v16  ;;  %v454_v19 = vld [vmem:[%s4231_s2 + $0x10] sm:$0xff]  ;;  %v455_v20 = vld [vmem:[%s4231_s2 + $0x18] sm:$0xff]  ;;  %v456_v21 = vld [vmem:[%s4231_s2 + $0x20] sm:$0xff]  ;;  %s3920_s23 = smov 72   ;;  %s3921_s25 = smov 8  }
  0xc5   : > { %3385 = vmatpush3.bf16.msra.mxu1 %v3546_v1  ;;  %3157 = vmatpush3.bf16.msra.mxu0 %v3546_v1  ;;  %v457_v22 = vld [vmem:[%s4231_s2 + $0x28] sm:$0xff]  ;;  %v461_v23 = vpack.c.bf16 %v455_v20, %v454_v19  ;;  %v458_v25 = vld [vmem:[%s4231_s2 + $0x30] sm:$0xff]  ;;  %v459_v26 = vld [vmem:[%s4231_s2 + $0x38] sm:$0xff]  ;;  %s3922_s0 = smov 16   ;;  %s3923_s2 = smov 24  }
  0xc6   : > { %3166 = vmatprep.subr.bf16.mxu1 %v3547_v7  ;;  %3158 = vmatprep.mubr.msk.bf16.mxu0 %vm487_vm0, %v448_v15  ;;  %v462_v24 = vpack.c.bf16 %v457_v22, %v456_v21  ;;  %v463_v27 = vpack.c.bf16 %v459_v26, %v458_v25  ;;  %v3007_v29 = vld [vmem:[%s4820_s4] ss:$0 sm:$0xff]  ;;  %v674_v13 = vld [vmem:[#allocation10 + $0x8] sm:$0xff]  ;;  %s435_s30 = scalar_lea.vmem [#allocation11], %s4219_s21  ;;  %s3071_s16 = sshll.u32 %s3997_s13, 10 }
  0xc7   : > { %3178 = vmatprep.subr.bf16.mxu0 %v3912_v28  ;;  %v3014_v50 = vld [vmem:[%s4821_s5] ss:$0 sm:$0xff]  ;;  %s2848_s13 = scalar_lea.sflag [#allocation4], %s4216_s27 }
  0xc8   : > { %3163 = vmatmul.mubr.msk.bf16.vlgmr.msra.gmra.mrb[0].mxu1 %vm487_vm0, %v451_v10  ;;  %3159 = vmatmul.mubr.msk.bf16.vlgmr.msra.gmra.mrb[0].mxu0 %vm487_vm0, %v449_v18  ;;  %v673_v11 = vld [vmem:[#allocation10] sm:$0xff] }
  0xc9   : > { %3167 = vmatpush3.bf16.msra.mxu1 %v3547_v7  ;;  %3170 = vmatprep.mubr.msk.bf16.mxu1 %vm487_vm0, %v460_v12 }
  0xca   : > { %3168 = vmatprep.subr.bf16.mxu1 %v3548_v14  ;;  %3180 = vmatprep.mubr.msk.bf16.mxu0 %vm3913_vm1, %v3912_v28 }
  0xcd   : > { %3169 = vmatpush3.bf16.msra.mxu1 %v3548_v14 }
  0xce   : > { %3184 = vmatprep.subr.bf16.mxu1 %v3912_v28 }
  0xd0   : > { %3171 = vmatmul.mubr.msk.bf16.vlgmr.msra.gmra.mrb[4].mxu1 %vm487_vm0, %v461_v23 }
  0xd1   : > { %3174 = vmatprep.mubr.msk.bf16.mxu1 %vm487_vm0, %v462_v24 }
  0xd8   : > { %3175 = vmatmul.mubr.msk.bf16.gmra.mrb[8].mxu1 %vm487_vm0, %v463_v27 }
  0xd9   : > { %3186 = vmatprep.mubr.msk.bf16.mxu1 %vm3913_vm1, %v3912_v28 }
 0x19b   : > { %v3164_v30 = vpop.f32.mrb[0].mxu1  ;;  %v3160_v33 = vpop.f32.mrb[0].mxu0 }
 0x19c   : > { %v550_v31 = vpop.f32.mrb[1].mxu1  ;;  %v559_v34 = vadd.f32 %v3164_v30, %v3007_v29  ;;  %v543_v37 = vadd.f32 %v3160_v33, %v3007_v29  ;;  %v534_v38 = vpop.f32.mrb[1].mxu0 }
 0x19d   : > { %v3165_v32 = vpop.f32.mrb[2].mxu1  ;;  %v551_v39 = vadd.f32 %v3007_v29, %v550_v31  ;;  %v535_v41 = vadd.f32 %v3007_v29, %v534_v38  ;;  %v3161_v42 = vpop.f32.mrb[2].mxu0 }
 0x19e   : > { %v562_v35 = vadd.f32 %v3165_v32, %v3007_v29  ;;  %v553_v36 = vpop.f32.mrb[3].mxu1  ;;  %v546_v44 = vadd.f32 %v3161_v42, %v3007_v29  ;;  %v537_v45 = vpop.f32.mrb[3].mxu0 }
 0x19f   : > { %v554_v40 = vadd.f32 %v3007_v29, %v553_v36  ;;  %v538_v47 = vadd.f32 %v3007_v29, %v537_v45 }
 0x1a0   : > { %v4278_v43 = vpack.c.bf16 %v562_v35, %v559_v34  ;;  %v4282_v48 = vpack.c.bf16 %v546_v44, %v543_v37 }
 0x1a1   : > { %v4280_v46 = vpack.c.bf16 %v554_v40, %v551_v39  ;;  %v4287_v51 = vpack.c.bf16 %v538_v47, %v535_v41 }
 0x1a3   : > { %v3172_v49 = vpop.f32.mrb[4].mxu1 }
 0x1a4   : > { %v634_v52 = vpop.f32.mrb[5].mxu1  ;;  %v643_v54 = vadd.f32 %v3172_v49, %v3014_v50 }
 0x1a5   : > { %v3173_v53 = vpop.f32.mrb[6].mxu1  ;;  %v635_v57 = vadd.f32 %v3014_v50, %v634_v52 }
 0x1a6   : > { %v646_v55 = vadd.f32 %v3173_v53, %v3014_v50  ;;  %v637_v56 = vpop.f32.mrb[7].mxu1 }
 0x1a7   : > { %v638_v58 = vadd.f32 %v3014_v50, %v637_v56 }
 0x1a8   : > { %v4289_v59 = vpack.c.bf16 %v646_v55, %v643_v54 }
 0x1a9   : > { %v4291_v60 = vpack.c.bf16 %v638_v58, %v635_v57 }
 0x1aa   : > { %v727_v61 = vsel %vm675_vm2, %v4289_v59, 0 }
 0x1ab   : > { %v3176_v62 = vpop.f32.mrb[8].mxu1  ;;  %3185 = vmatpush3.bf16.xpose.msra.mxu1 %v727_v61  ;;  %v680_v63 = vsel %vm675_vm2, %v4291_v60, 0 }
 0x1ac   : > { %v659_v0 = vadd.f32 %v3176_v62, %v3014_v50  ;;  %v650_v1 = vpop.f32.mrb[9].mxu1  ;;  %3179 = vmatpush3.bf16.xpose.msra.mxu0 %v680_v63  ;;  %3196 = vmatprep.subr.bf16.mxu1 %v3912_v28 }
 0x1ad   : > { %v651_v2 = vadd.f32 %v3014_v50, %v650_v1  ;;  %v3177_v3 = vpop.f32.mrb[10].mxu1  ;;  %3190 = vmatprep.subr.bf16.mxu0 %v3912_v28 }
 0x1ae   : > { %v662_v4 = vadd.f32 %v3177_v3, %v3014_v50  ;;  %v653_v5 = vpop.f32.mrb[11].mxu1 }
 0x1af   : > { %v654_v6 = vadd.f32 %v3014_v50, %v653_v5 }
 0x1b0   : > { %v4299_v7 = vpack.c.bf16 %v662_v4, %v659_v0 }
 0x1b1   : > { %v4301_v8 = vpack.c.bf16 %v654_v6, %v651_v2 }
 0x1b2   : > { %3187 = vmatmul.mubr.msk.bf16.vlgmr.msra.gmra.mrb[12].mxu1 %vm675_vm2, %v4282_v48  ;;  %v821_v9 = vsel %vm675_vm2, %v4299_v7, 0 }
 0x1b3   : > { %3181 = vmatmul.mubr.msk.bf16.vlgmr.msra.gmra.mrb[4].mxu0 %vm675_vm2, %v4287_v51  ;;  %3197 = vmatpush3.bf16.xpose.msra.mxu1 %v821_v9  ;;  %v774_v10 = vsel %vm675_vm2, %v4301_v8, 0 }
 0x1b4   : > { %3191 = vmatpush3.bf16.xpose.msra.mxu0 %v774_v10  ;;  %3198 = vmatprep.mubr.msk.bf16.mxu1 %vm3913_vm1, %v3912_v28 }
 0x1b5   : > { %3192 = vmatprep.mubr.msk.bf16.mxu0 %vm3913_vm1, %v3912_v28  ;;  %3208 = vmatprep.subr.bf16.mxu1 %v3912_v28 }
 0x1b6   : > { %3202 = vmatprep.subr.bf16.mxu0 %v3912_v28 }
 0x1ba   : > { %3199 = vmatmul.mubr.msk.bf16.vlgmr.msra.gmra.mrb[16].mxu1 %vm675_vm2, %v4278_v43 }
 0x1bb   : > { %3193 = vmatmul.mubr.msk.bf16.vlgmr.msra.gmra.mrb[8].mxu0 %vm675_vm2, %v4280_v46  ;;  %3210 = vmatprep.mubr.msk.bf16.mxu1 %vm3913_vm1, %v3912_v28 }
 0x1bc   : > { %3204 = vmatprep.mubr.msk.bf16.mxu0 %vm3913_vm1, %v3912_v28 }
 0x285   : > { %v763_v12 = vpop.f32.mrb[12].mxu1 }
 0x286   : > { %v764_v14 = vadd.f32 %v763_v12, %v673_v11  ;;  %v716_v15 = vpop.f32.mrb[4].mxu0  ;;  %v3188_v16 = vpop.f32.mrb[13].mxu1 }
 0x287   : > { %v717_v17 = vadd.f32 %v716_v15, %v673_v11  ;;  %v3182_v18 = vpop.f32.mrb[5].mxu0  ;;  %v766_v19 = vpop.f32.mrb[14].mxu1 }
 0x288   : > { %v871_v20 = vsel %vm864_vm3, %v764_v14, -inf  ;;  %v767_v21 = vadd.f32 %v766_v19, %v674_v13  ;;  %v719_v22 = vpop.f32.mrb[6].mxu0  ;;  %v3189_v23 = vpop.f32.mrb[15].mxu1 }
 0x289   : > { %872 = vmax.xlane.f32.xlu1 %v871_v20  ;;  %v865_v24 = vsel %vm864_vm3, %v717_v17, -inf  ;;  %v720_v25 = vadd.f32 %v719_v22, %v674_v13  ;;  %v3183_v26 = vpop.f32.mrb[7].mxu0 }
 0x28a   : > { %866 = vmax.xlane.f32.xlu0 %v865_v24  ;;  %v874_v27 = vsel %vm864_vm3, %v767_v21, -inf }
 0x28b   : > { %v868_v30 = vsel %vm864_vm3, %v720_v25, -inf }
 0x28d   : > { %875 = vmax.xlane.f32.xlu1 %v874_v27  ;;  %v857_v29 = vpop.f32.mrb[16].mxu1 }
 0x28e   : > { %v3200_v31 = vpop.f32.mrb[17].mxu1  ;;  %869 = vmax.xlane.f32.xlu0 %v868_v30  ;;  %v810_v32 = vpop.f32.mrb[8].mxu0  ;;  %v858_v38 = vadd.f32 %v857_v29, %v673_v11 }
 0x28f   : > { %v811_v33 = vadd.f32 %v810_v32, %v673_v11  ;;  %v3194_v34 = vpop.f32.mrb[9].mxu0  ;;  %v860_v35 = vpop.f32.mrb[18].mxu1 }
 0x290   : > { %v813_v36 = vpop.f32.mrb[10].mxu0  ;;  %v3201_v37 = vpop.f32.mrb[19].mxu1  ;;  %v883_v41 = vsel %vm864_vm3, %v858_v38, -inf  ;;  %v861_v42 = vadd.f32 %v860_v35, %v674_v13 }
 0x291   : > { %v3195_v39 = vpop.f32.mrb[11].mxu0  ;;  %v877_v40 = vsel %vm864_vm3, %v811_v33, -inf  ;;  %v4334_v44 = vadd.f32 %v813_v36, %v674_v13 }
 0x292   : > { %878 = vmax.xlane.f32.xlu0 %v877_v40  ;;  %v886_v45 = vsel %vm864_vm3, %v861_v42, -inf }
 0x293   : > { %v880_v47 = vsel %vm864_vm3, %v4334_v44, -inf }
 0x296   : > { %884 = vmax.xlane.f32.xlu0 %v883_v41 }
 0x29e   : > { %1006 = vrot.lane.b32.xlu1 %v4289_v59, %s3914_s19 }
 0x2a2   : > { %1054 = vrot.lane.b32.xlu1 %v4301_v8, %s3914_s19 }
 0x2ac   : > { %958 = vrot.lane.b32.xlu0 %v4291_v60, %s3914_s19 }
 0x2c6   : > { %887 = vmax.xlane.f32.xlu1 %v886_v45 }
 0x2ca   : > { %881 = vmax.xlane.f32.xlu1 %v880_v47 }
 0x2db   : > { %1102 = vrot.lane.b32.xlu1 %v4299_v7, %s3914_s19  ;;  %s2862_s19 = sshll.u32 %s435_s30, 4  ;;  %s4769_s19 = int_to_ptr.vmem [resolvable:$true] %s2862_s19 }
 0x316   : > { %v873_v49 = vpop.xlane.xlu1 %872 }
 0x317   : > { %v891_v50 = vsub.f32 %v764_v14, %v873_v49  ;;  %v867_v52 = vpop.xlane.xlu0 %866 }
 0x318   : > { %v889_v53 = vsub.f32 %v717_v17, %v867_v52 }
 0x319   : > { %v901_v54 = vmul.f32 1.442695, %v891_v50 }
 0x31a   : > { %v897_v55 = vmul.f32 1.442695, %v889_v53  ;;  %v876_v56 = vpop.xlane.xlu1 %875 }
 0x31b   : > { %3551 = vpow2.f32 %v901_v54  ;;  %v892_v57 = vsub.f32 %v767_v21, %v876_v56  ;;  %v870_v58 = vpop.xlane.xlu0 %869 }
 0x31c   : > { %v890_v61 = vsub.f32 %v720_v25, %v870_v58  ;;  %3553 = vpow2.f32 %v897_v55 }
 0x31d   : > { %v903_v62 = vmul.f32 1.442695, %v892_v57 }
 0x31e   : > { %v899_v63 = vmul.f32 1.442695, %v890_v61  ;;  %v1007_v0 = vpop.permute.xlu1 %1006 }
 0x31f   : > { %3555 = vpow2.f32 %v903_v62  ;;  %3209 = vmatpush3.bf16.msra.mxu1 %v1007_v0  ;;  %v879_v1 = vpop.xlane.xlu0 %878 }
 0x320   : > { %3220 = vmatprep.subr.bf16.mxu1 %v3912_v28  ;;  %3557 = vpow2.f32 %v899_v63  ;;  %v893_v2 = vsub.f32 %v811_v33, %v879_v1 }
 0x322   : > { %v905_v6 = vmul.f32 1.442695, %v893_v2  ;;  %v1055_v22 = vpop.permute.xlu1 %1054 }
 0x323   : > { %v885_v3 = vpop.xlane.xlu0 %884 }
 0x324   : > { %v895_v4 = vsub.f32 %v858_v38, %v885_v3 }
 0x325   : > { %v3552_v5 = vpop.eup %3551 }
 0x326   : > { %v909_v9 = vmul.f32 1.442695, %v895_v4  ;;  %v919_v10 = vsel %vm864_vm3, %v3552_v5, 0.0  ;;  %v3554_v11 = vpop.eup %3553 }
 0x327   : > { %920 = vadd.xlane.f32.xlu0 %v919_v10  ;;  %v959_v12 = vpop.permute.xlu0 %958  ;;  %v913_v14 = vsel %vm864_vm3, %v3554_v11, 0.0 }
 0x328   : > { %3559 = vpow2.f32 %v909_v9  ;;  %3203 = vmatpush3.bf16.msra.mxu0 %v959_v12 }
 0x329   : > { %v3556_v13 = vpop.eup %3555  ;;  %3214 = vmatprep.subr.bf16.mxu0 %v3912_v28  ;;  %3561 = vpow2.f32 %v905_v6 }
 0x32a   : > { %v922_v15 = vsel %vm864_vm3, %v3556_v13, 0.0  ;;  %v3558_v16 = vpop.eup %3557 }
 0x32b   : > { %914 = vadd.xlane.f32.xlu0 %v913_v14  ;;  %923 = vadd.xlane.f32.xlu1 %v922_v15  ;;  %v916_v17 = vsel %vm864_vm3, %v3558_v16, 0.0 }
 0x32f   : > { %917 = vadd.xlane.f32.xlu1 %v916_v17 }
 0x332   : > { %v4346_v18 = vpop.eup %3559 }
 0x333   : > { %v931_v19 = vsel %vm864_vm3, %v4346_v18, 0.0  ;;  %v4350_v20 = vpop.eup %3561 }
 0x334   : > { %932 = vadd.xlane.f32.xlu0 %v931_v19  ;;  %v925_v21 = vsel %vm864_vm3, %v4350_v20, 0.0 }
 0x338   : > { %926 = vadd.xlane.f32.xlu0 %v925_v21 }
 0x340   : > { %1207 = vrot.lane.b32.xlu1 %v4289_v59, %s3915_s28 }
 0x34e   : > { %1155 = vrot.lane.b32.xlu0 %v4291_v60, %s3915_s28 }
 0x352   : > { %1153 = vrot.lane.b32.xlu0 %v4287_v51, %s3915_s28 }
 0x353   : > { %v888_v23 = vpop.xlane.xlu1 %887 }
 0x354   : > { %v896_v24 = vsub.f32 %v861_v42, %v888_v23 }
 0x356   : > { %v911_v25 = vmul.f32 1.442695, %v896_v24  ;;  %1205 = vrot.lane.b32.xlu0 %v4282_v48, %s3915_s28 }
 0x357   : > { %v882_v26 = vpop.xlane.xlu1 %881 }
 0x358   : > { %3563 = vpow2.f32 %v911_v25  ;;  %v894_v27 = vsub.f32 %v4334_v44, %v882_v26 }
 0x35a   : > { %v907_v29 = vmul.f32 1.442695, %v894_v27  ;;  %1257 = vrot.lane.b32.xlu0 %v4280_v46, %s3915_s28 }
 0x35b   : > { %v1103_v34 = vpop.permute.xlu1 %1102 }
 0x35c   : > { %3565 = vpow2.f32 %v907_v29 }
 0x362   : > { %v3564_v30 = vpop.eup %3563 }
 0x363   : > { %v934_v31 = vsel %vm864_vm3, %v3564_v30, 0.0 }
 0x364   : > { %935 = vadd.xlane.f32.xlu1 %v934_v31 }
 0x366   : > { %v3566_v32 = vpop.eup %3565 }
 0x367   : > { %v928_v33 = vsel %vm864_vm3, %v3566_v32, 0.0 }
 0x368   : > { %929 = vadd.xlane.f32.xlu1 %v928_v33 }
 0x379   : > { %1259 = vrot.lane.b32.xlu1 %v4301_v8, %s3915_s28 }
 0x37d   : > { %1311 = vrot.lane.b32.xlu1 %v4299_v7, %s3915_s28 }
 0x381   : > { %1309 = vrot.lane.b32.xlu1 %v4278_v43, %s3915_s28 }
 0x3b4   : > { %v921_v35 = vpop.xlane.xlu0 %920 }
 0x3b5   : > { %3567 = vrcp.f32 %v921_v35  ;;  %v1150_v35 = vld [vmem:[#allocation10 + $0x10] sm:$0xff] }
 0x3b8   : > { %v915_v36 = vpop.xlane.xlu0 %914  ;;  %v924_v37 = vpop.xlane.xlu1 %923 }
 0x3b9   : > { %3569 = vrcp.f32 %v924_v37 }
 0x3ba   : > { %3571 = vrcp.f32 %v915_v36 }
 0x3bc   : > { %v918_v38 = vpop.xlane.xlu1 %917 }
 0x3bd   : > { %3573 = vrcp.f32 %v918_v38 }
 0x3bf   : > { %v3568_v39 = vpop.eup %3567 }
 0x3c0   : > { %v947_v42 = vmul.f32 %v3568_v39, %v3552_v5  ;;  %v1208_v54 = vpop.permute.xlu1 %1207 }
 0x3c1   : > { %v933_v53 = vpop.xlane.xlu0 %932  ;;  %v1213_v5 = vsel %vm675_vm2, %v1208_v54, 0 }
 0x3c2   : > { %3575 = vrcp.f32 %v933_v53 }
 0x3c3   : > { %v3570_v40 = vpop.eup %3569 }
 0x3c4   : > { %v3572_v41 = vpop.eup %3571  ;;  %v948_v44 = vmul.f32 %v3570_v40, %v3556_v13 }
 0x3c5   : > { %v945_v49 = vmul.f32 %v3572_v41, %v3554_v11  ;;  %v927_v55 = vpop.xlane.xlu0 %926 }
 0x3c6   : > { %v954_v47 = vpack.c.bf16 %v948_v44, %v947_v42  ;;  %v1151_v44 = vld [vmem:[#allocation10 + $0x18] sm:$0xff] }
 0x3c7   : > { %v3574_v45 = vpop.eup %3573 }
 0x3c8   : > { %v946_v50 = vmul.f32 %v3574_v45, %v3558_v16  ;;  %3211 = vmatmul.mubr.msk.bf16.vlgmr.msra.gmra.mrb[20].mxu1 %vm864_vm3, %v954_v47 }
 0x3c9   : > { %3221 = vmatpush3.bf16.msra.mxu1 %v1103_v34  ;;  %3222 = vmatprep.mubr.msk.bf16.mxu1 %vm3913_vm1, %v3912_v28  ;;  %v1156_v62 = vpop.permute.xlu0 %1155 }
 0x3ca   : > { %v953_v52 = vpack.c.bf16 %v946_v50, %v945_v49  ;;  %3232 = vmatprep.subr.bf16.mxu1 %v3912_v28  ;;  %v1161_v12 = vsel %vm675_vm2, %v1156_v62, 0 }
 0x3cc   : > { %3205 = vmatmul.mubr.msk.bf16.vlgmr.msra.gmra.mrb[12].mxu0 %vm864_vm3, %v953_v52  ;;  %v3576_v58 = vpop.eup %3575 }
 0x3cd   : > { %3215 = vmatpush3.bf16.msra.mxu0 %v1055_v22  ;;  %3216 = vmatprep.mubr.msk.bf16.mxu0 %vm3913_vm1, %v3912_v28  ;;  %v951_v63 = vmul.f32 %v3576_v58, %v4346_v18  ;;  %v1154_v10 = vpop.permute.xlu0 %1153 }
 0x3ce   : > { %3226 = vmatprep.subr.bf16.mxu0 %v3912_v28 }
 0x3d1   : > { %v1206_v14 = vpop.permute.xlu0 %1205 }
 0x3d5   : > { %v1258_v18 = vpop.permute.xlu0 %1257 }
 0x3f1   : > { %v936_v56 = vpop.xlane.xlu1 %935 }
 0x3f2   : > { %3577 = vrcp.f32 %v936_v56 }
 0x3f3   : > { %3579 = vrcp.f32 %v927_v55 }
 0x3f5   : > { %v930_v57 = vpop.xlane.xlu1 %929 }
 0x3f6   : > { %3581 = vrcp.f32 %v930_v57 }
 0x3f9   : > { %v1260_v4 = vpop.permute.xlu1 %1259 }
 0x3fa   : > { %v1265_v16 = vsel %vm675_vm2, %v1260_v4, 0 }
 0x3fc   : > { %v3578_v61 = vpop.eup %3577 }
 0x3fd   : > { %v952_v0 = vmul.f32 %v3578_v61, %v3564_v30  ;;  %v3580_v1 = vpop.eup %3579  ;;  %v1312_v13 = vpop.permute.xlu1 %1311 }
 0x3fe   : > { %v949_v6 = vmul.f32 %v3580_v1, %v4350_v20  ;;  %v1317_v15 = vsel %vm675_vm2, %v1312_v13, 0 }
 0x3ff   : > { %v956_v2 = vpack.c.bf16 %v952_v0, %v951_v63 }
 0x400   : > { %v3582_v3 = vpop.eup %3581 }
 0x401   : > { %v950_v9 = vmul.f32 %v3582_v3, %v3566_v32  ;;  %3223 = vmatmul.mubr.msk.bf16.vlgmr.msra.gmra.mrb[24].mxu1 %vm864_vm3, %v956_v2  ;;  %v1310_v17 = vpop.permute.xlu1 %1309 }
 0x402   : > { %3233 = vmatpush3.bf16.xpose.msra.mxu1 %v1213_v5  ;;  %3234 = vmatprep.mubr.msk.bf16.mxu1 %vm3913_vm1, %v3912_v28 }
 0x403   : > { %v955_v11 = vpack.c.bf16 %v950_v9, %v949_v6  ;;  %3244 = vmatprep.subr.bf16.mxu1 %v3912_v28 }
 0x405   : > { %3217 = vmatmul.mubr.msk.bf16.vlgmr.msra.gmra.mrb[16].mxu0 %vm864_vm3, %v955_v11 }
 0x406   : > { %3227 = vmatpush3.bf16.xpose.msra.mxu0 %v1161_v12  ;;  %3228 = vmatprep.mubr.msk.bf16.mxu0 %vm3913_vm1, %v3912_v28 }
 0x407   : > { %3238 = vmatprep.subr.bf16.mxu0 %v3912_v28 }
 0x409   : > { %3235 = vmatmul.mubr.msk.bf16.vlgmr.msra.gmra.mrb[28].mxu1 %vm675_vm2, %v1206_v14 }
 0x40a   : > { %3245 = vmatpush3.bf16.xpose.msra.mxu1 %v1317_v15  ;;  %3246 = vmatprep.mubr.msk.bf16.mxu1 %vm3913_vm1, %v3912_v28 }
 0x40b   : > { %3256 = vmatprep.subr.bf16.mxu1 %v3912_v28 }
 0x40d   : > { %3229 = vmatmul.mubr.msk.bf16.vlgmr.msra.gmra.mrb[20].mxu0 %vm675_vm2, %v1154_v10 }
 0x40e   : > { %3239 = vmatpush3.bf16.xpose.msra.mxu0 %v1265_v16  ;;  %3240 = vmatprep.mubr.msk.bf16.mxu0 %vm3913_vm1, %v3912_v28 }
 0x40f   : > { %3250 = vmatprep.subr.bf16.mxu0 %v3912_v28 }
 0x411   : > { %3247 = vmatmul.mubr.msk.bf16.vlgmr.msra.gmra.mrb[32].mxu1 %vm675_vm2, %v1310_v17 }
 0x412   : > { %3258 = vmatprep.mubr.msk.bf16.mxu1 %vm3913_vm1, %v3912_v28 }
 0x415   : > { %3241 = vmatmul.mubr.msk.bf16.vlgmr.msra.gmra.mrb[24].mxu0 %vm675_vm2, %v1258_v18 }
 0x416   : > { %3252 = vmatprep.mubr.msk.bf16.mxu0 %vm3913_vm1, %v3912_v28 }
 0x49b   : > { %v4401_v19 = vpop.f32.mrb[20].mxu1 }
 0x49c   : > { %v3212_v20 = vpop.f32.mrb[21].mxu1 }
 0x49d   : > { %v4403_v21 = vpop.f32.mrb[22].mxu1 }
 0x49e   : > { %v3213_v22 = vpop.f32.mrb[23].mxu1 }
 0x49f   : > { %v4405_v23 = vpop.f32.mrb[12].mxu0 }
 0x4a0   : > { %v3206_v24 = vpop.f32.mrb[13].mxu0 }
 0x4a1   : > { %v4407_v25 = vpop.f32.mrb[14].mxu0 }
 0x4a2   : > { %v3207_v26 = vpop.f32.mrb[15].mxu0 }
 0x4d4   : > { %v4409_v27 = vpop.f32.mrb[24].mxu1 }
 0x4d5   : > { %v3224_v29 = vpop.f32.mrb[25].mxu1 }
 0x4d6   : > { %v4411_v30 = vpop.f32.mrb[26].mxu1 }
 0x4d7   : > { %v3225_v31 = vpop.f32.mrb[27].mxu1 }
 0x4d8   : > { %v4413_v32 = vpop.f32.mrb[16].mxu0 }
 0x4d9   : > { %v3218_v33 = vpop.f32.mrb[17].mxu0 }
 0x4da   : > { %v4415_v34 = vpop.f32.mrb[18].mxu0 }
 0x4db   : > { %v3219_v36 = vpop.f32.mrb[19].mxu0 }
 0x4dc   : > { %v1249_v37 = vpop.f32.mrb[28].mxu1 }
 0x4dd   : > { %v1250_v38 = vadd.f32 %v1249_v37, %v1150_v35  ;;  %v3236_v39 = vpop.f32.mrb[29].mxu1 }
 0x4de   : > { %v1252_v40 = vpop.f32.mrb[30].mxu1 }
 0x4df   : > { %v3237_v41 = vpop.f32.mrb[31].mxu1  ;;  %v1366_v42 = vsel %vm864_vm3, %v1250_v38, -inf  ;;  %v1253_v52 = vadd.f32 %v1252_v40, %v1151_v44 }
 0x4e0   : > { %1367 = vmax.xlane.f32.xlu0 %v1366_v42  ;;  %v1197_v45 = vpop.f32.mrb[20].mxu0 }
 0x4e1   : > { %v1198_v47 = vadd.f32 %v1197_v45, %v1150_v35  ;;  %v3230_v49 = vpop.f32.mrb[21].mxu0  ;;  %v1369_v63 = vsel %vm864_vm3, %v1253_v52, -inf }
 0x4e2   : > { %v1200_v50 = vpop.f32.mrb[22].mxu0 }
 0x4e3   : > { %v1201_v53 = vadd.f32 %v1200_v50, %v1151_v44  ;;  %v3231_v54 = vpop.f32.mrb[23].mxu0  ;;  %v1360_v55 = vsel %vm864_vm3, %v1198_v47, -inf }
 0x4e4   : > { %v1353_v56 = vpop.f32.mrb[32].mxu1  ;;  %1361 = vmax.xlane.f32.xlu0 %v1360_v55 }
 0x4e5   : > { %v3248_v57 = vpop.f32.mrb[33].mxu1  ;;  %v1363_v58 = vsel %vm864_vm3, %v1201_v53, -inf  ;;  %v1354_v4 = vadd.f32 %v1353_v56, %v1150_v35 }
 0x4e6   : > { %v1356_v61 = vpop.f32.mrb[34].mxu1  ;;  %1364 = vmax.xlane.f32.xlu1 %v1363_v58 }
 0x4e7   : > { %v3249_v62 = vpop.f32.mrb[35].mxu1  ;;  %v1378_v9 = vsel %vm864_vm3, %v1354_v4, -inf  ;;  %v1357_v10 = vadd.f32 %v1356_v61, %v1151_v44 }
 0x4e8   : > { %1370 = vmax.xlane.f32.xlu0 %v1369_v63  ;;  %v1301_v0 = vpop.f32.mrb[24].mxu0 }
 0x4e9   : > { %v1302_v1 = vadd.f32 %v1301_v0, %v1150_v35  ;;  %v3242_v2 = vpop.f32.mrb[25].mxu0  ;;  %v1381_v12 = vsel %vm864_vm3, %v1357_v10, -inf }
 0x4ea   : > { %v1304_v3 = vpop.f32.mrb[26].mxu0 }
 0x4eb   : > { %v3243_v5 = vpop.f32.mrb[27].mxu0  ;;  %v1372_v6 = vsel %vm864_vm3, %v1302_v1, -inf  ;;  %v4426_v11 = vadd.f32 %v1304_v3, %v1151_v44 }
 0x4ec   : > { %1373 = vmax.xlane.f32.xlu0 %v1372_v6 }
 0x4ed   : > { %v1375_v13 = vsel %vm864_vm3, %v4426_v11, -inf }
 0x4f0   : > { %1379 = vmax.xlane.f32.xlu0 %v1378_v9 }
 0x4f7   : > { %1499 = vrot.lane.b32.xlu1 %v4289_v59, %s3916_s14 }
 0x4fb   : > { %1546 = vrot.lane.b32.xlu1 %v4301_v8, %s3916_s14 }
 0x506   : > { %1452 = vrot.lane.b32.xlu0 %v4291_v60, %s3916_s14 }
 0x51f   : > { %1382 = vmax.xlane.f32.xlu1 %v1381_v12 }
 0x523   : > { %1376 = vmax.xlane.f32.xlu1 %v1375_v13 }
 0x534   : > { %1593 = vrot.lane.b32.xlu1 %v4299_v7, %s3916_s14  ;;  %s4864_s14 = sld [smem:[#allocation24_spill]] }
 0x56d   : > { %v1368_v14 = vpop.xlane.xlu0 %1367 }
 0x56e   : > { %v1386_v15 = vsub.f32 %v1250_v38, %v1368_v14 }
 0x570   : > { %v1396_v16 = vmul.f32 1.442695, %v1386_v15 }
 0x571   : > { %v1362_v17 = vpop.xlane.xlu0 %1361 }
 0x572   : > { %3583 = vpow2.f32 %v1396_v16  ;;  %v1384_v18 = vsub.f32 %v1198_v47, %v1362_v17 }
 0x573   : > { %v1365_v20 = vpop.xlane.xlu1 %1364 }
 0x574   : > { %v1392_v22 = vmul.f32 1.442695, %v1384_v18  ;;  %v1385_v24 = vsub.f32 %v1201_v53, %v1365_v20 }
 0x575   : > { %v1371_v26 = vpop.xlane.xlu0 %1370 }
 0x576   : > { %3585 = vpow2.f32 %v1392_v22  ;;  %v1387_v29 = vsub.f32 %v1253_v52, %v1371_v26  ;;  %v1394_v33 = vmul.f32 1.442695, %v1385_v24 }
 0x577   : > { %v1500_v31 = vpop.permute.xlu1 %1499 }
 0x578   : > { %v1398_v35 = vmul.f32 1.442695, %v1387_v29  ;;  %3257 = vmatpush3.bf16.msra.mxu1 %v1500_v31 }
 0x579   : > { %v1374_v36 = vpop.xlane.xlu0 %1373  ;;  %3268 = vmatprep.subr.bf16.mxu1 %v3912_v28 }
 0x57a   : > { %3587 = vpow2.f32 %v1398_v35  ;;  %v1388_v38 = vsub.f32 %v1302_v1, %v1374_v36 }
 0x57b   : > { %3589 = vpow2.f32 %v1394_v33  ;;  %v1547_v61 = vpop.permute.xlu1 %1546 }
 0x57c   : > { %v4433_v37 = vpop.eup %3583  ;;  %v1400_v44 = vmul.f32 1.442695, %v1388_v38 }
 0x57d   : > { %v1380_v39 = vpop.xlane.xlu0 %1379  ;;  %v1414_v40 = vsel %vm864_vm3, %v4433_v37, 0.0 }
 0x57e   : > { %v1390_v41 = vsub.f32 %v1354_v4, %v1380_v39  ;;  %1415 = vadd.xlane.f32.xlu0 %v1414_v40 }
 0x580   : > { %v3586_v42 = vpop.eup %3585  ;;  %v1404_v45 = vmul.f32 1.442695, %v1390_v41 }
 0x581   : > { %v1453_v47 = vpop.permute.xlu0 %1452  ;;  %v1408_v49 = vsel %vm864_vm3, %v3586_v42, 0.0 }
 0x582   : > { %3591 = vpow2.f32 %v1404_v45  ;;  %1409 = vadd.xlane.f32.xlu0 %v1408_v49  ;;  %3251 = vmatpush3.bf16.msra.mxu0 %v1453_v47 }
 0x583   : > { %3262 = vmatprep.subr.bf16.mxu0 %v3912_v28  ;;  %3593 = vpow2.f32 %v1400_v44 }
 0x584   : > { %v3588_v50 = vpop.eup %3587 }
 0x585   : > { %v1417_v52 = vsel %vm864_vm3, %v3588_v50, 0.0  ;;  %v3590_v53 = vpop.eup %3589 }
 0x586   : > { %1418 = vadd.xlane.f32.xlu1 %v1417_v52  ;;  %v1411_v54 = vsel %vm864_vm3, %v3590_v53, 0.0 }
 0x58a   : > { %1412 = vadd.xlane.f32.xlu1 %v1411_v54 }
 0x58c   : > { %v4441_v55 = vpop.eup %3591 }
 0x58d   : > { %v1426_v56 = vsel %vm864_vm3, %v4441_v55, 0.0  ;;  %v4445_v57 = vpop.eup %3593 }
 0x58e   : > { %1427 = vadd.xlane.f32.xlu0 %v1426_v56  ;;  %v1420_v58 = vsel %vm864_vm3, %v4445_v57, 0.0 }
 0x592   : > { %1421 = vadd.xlane.f32.xlu0 %v1420_v58 }
 0x59b   : > { %1696 = vrot.lane.b32.xlu1 %v4289_v59, %s3917_s29 }
 0x5a8   : > { %1645 = vrot.lane.b32.xlu0 %v4291_v60, %s3917_s29 }
 0x5ac   : > { %v1383_v62 = vpop.xlane.xlu1 %1382  ;;  %1643 = vrot.lane.b32.xlu0 %v4287_v51, %s3917_s29 }
 0x5ad   : > { %v1391_v63 = vsub.f32 %v1357_v10, %v1383_v62 }
 0x5af   : > { %v1406_v0 = vmul.f32 1.442695, %v1391_v63 }
 0x5b0   : > { %1694 = vrot.lane.b32.xlu0 %v4282_v48, %s3917_s29  ;;  %v1377_v1 = vpop.xlane.xlu1 %1376 }
 0x5b1   : > { %3595 = vpow2.f32 %v1406_v0  ;;  %v1389_v2 = vsub.f32 %v4426_v11, %v1377_v1 }
 0x5b3   : > { %v1402_v3 = vmul.f32 1.442695, %v1389_v2 }
 0x5b4   : > { %1745 = vrot.lane.b32.xlu0 %v4280_v46, %s3917_s29  ;;  %v1594_v11 = vpop.permute.xlu1 %1593 }
 0x5b5   : > { %3597 = vpow2.f32 %v1402_v3 }
 0x5bb   : > { %v3596_v4 = vpop.eup %3595 }
 0x5bc   : > { %v1429_v5 = vsel %vm864_vm3, %v3596_v4, 0.0 }
 0x5bf   : > { %v3598_v6 = vpop.eup %3597  ;;  %1430 = vadd.xlane.f32.xlu1 %v1429_v5 }
 0x5c0   : > { %v1423_v9 = vsel %vm864_vm3, %v3598_v6, 0.0 }
 0x5c3   : > { %1424 = vadd.xlane.f32.xlu1 %v1423_v9 }
 0x5d4   : > { %1747 = vrot.lane.b32.xlu1 %v4301_v8, %s3917_s29 }
 0x5d8   : > { %1798 = vrot.lane.b32.xlu1 %v4299_v7, %s3917_s29 }
 0x5dc   : > { %1796 = vrot.lane.b32.xlu1 %v4278_v43, %s3917_s29  ;;  %s4766_s29 = scalar_lea.hbm %s4864_s14, %s3071_s16 }
 0x60b   : > { %v1416_v10 = vpop.xlane.xlu0 %1415 }
 0x60c   : > { %3599 = vrcp.f32 %v1416_v10 }
 0x60f   : > { %v1410_v12 = vpop.xlane.xlu0 %1409 }
 0x613   : > { %v1419_v13 = vpop.xlane.xlu1 %1418 }
 0x614   : > { %3601 = vrcp.f32 %v1419_v13 }
 0x615   : > { %3603 = vrcp.f32 %v1410_v12 }
 0x616   : > { %v3600_v15 = vpop.eup %3599 }
 0x617   : > { %v1413_v14 = vpop.xlane.xlu1 %1412  ;;  %v1442_v17 = vmul.f32 %v3600_v15, %v4433_v37 }
 0x618   : > { %3605 = vrcp.f32 %v1413_v14 }
 0x61b   : > { %v1428_v33 = vpop.xlane.xlu0 %1427  ;;  %v1697_v35 = vpop.permute.xlu1 %1696 }
 0x61c   : > { %3607 = vrcp.f32 %v1428_v33  ;;  %v1702_v52 = vsel %vm675_vm2, %v1697_v35, 0 }
 0x61e   : > { %v3602_v16 = vpop.eup %3601 }
 0x61f   : > { %v1443_v18 = vmul.f32 %v3602_v16, %v3588_v50  ;;  %v3604_v20 = vpop.eup %3603  ;;  %v1422_v36 = vpop.xlane.xlu0 %1421 }
 0x620   : > { %v1440_v26 = vmul.f32 %v3604_v20, %v3586_v42 }
 0x621   : > { %v1449_v22 = vpack.c.bf16 %v1443_v18, %v1442_v17 }
 0x622   : > { %v3606_v24 = vpop.eup %3605 }
 0x623   : > { %v1441_v29 = vmul.f32 %v3606_v24, %v3590_v53  ;;  %3259 = vmatmul.mubr.msk.bf16.vlgmr.msra.gmra.mrb[36].mxu1 %vm864_vm3, %v1449_v22  ;;  %v1646_v41 = vpop.permute.xlu0 %1645 }
 0x624   : > { %3269 = vmatpush3.bf16.msra.mxu1 %v1594_v11  ;;  %3270 = vmatprep.mubr.msk.bf16.mxu1 %vm3913_vm1, %v3912_v28 }
 0x625   : > { %v1448_v31 = vpack.c.bf16 %v1441_v29, %v1440_v26  ;;  %3280 = vmatprep.subr.bf16.mxu1 %v3912_v28  ;;  %v1641_v26 = vld [vmem:[#allocation10 + $0x20] sm:$0xff] }
 0x626   : > { %v3608_v39 = vpop.eup %3607 }
 0x627   : > { %3253 = vmatmul.mubr.msk.bf16.vlgmr.msra.gmra.mrb[28].mxu0 %vm864_vm3, %v1448_v31  ;;  %v1446_v42 = vmul.f32 %v3608_v39, %v4441_v55  ;;  %v1644_v56 = vpop.permute.xlu0 %1643  ;;  %v1651_v55 = vsel %vm675_vm2, %v1646_v41, 0 }
 0x628   : > { %3263 = vmatpush3.bf16.msra.mxu0 %v1547_v61  ;;  %3264 = vmatprep.mubr.msk.bf16.mxu0 %vm3913_vm1, %v3912_v28 }
 0x629   : > { %3274 = vmatprep.subr.bf16.mxu0 %v3912_v28 }
 0x64c   : > { %v1431_v37 = vpop.xlane.xlu1 %1430 }
 0x64d   : > { %3609 = vrcp.f32 %v1431_v37 }
 0x64e   : > { %3611 = vrcp.f32 %v1422_v36 }
 0x650   : > { %v1425_v38 = vpop.xlane.xlu1 %1424 }
 0x651   : > { %3613 = vrcp.f32 %v1425_v38 }
 0x654   : > { %v1748_v50 = vpop.permute.xlu1 %1747 }
 0x655   : > { %v1753_v63 = vsel %vm675_vm2, %v1748_v50, 0 }
 0x657   : > { %v3610_v40 = vpop.eup %3609 }
 0x658   : > { %v1447_v44 = vmul.f32 %v3610_v40, %v3596_v4  ;;  %v3612_v45 = vpop.eup %3611  ;;  %v1799_v61 = vpop.permute.xlu1 %1798  ;;  %v1642_v40 = vld [vmem:[#allocation10 + $0x28] sm:$0xff] }
 0x659   : > { %v1444_v53 = vmul.f32 %v3612_v45, %v4445_v57  ;;  %v1695_v57 = vpop.permute.xlu0 %1694  ;;  %v1804_v62 = vsel %vm675_vm2, %v1799_v61, 0 }
 0x65a   : > { %v1451_v47 = vpack.c.bf16 %v1447_v44, %v1446_v42 }
 0x65b   : > { %v3614_v49 = vpop.eup %3613 }
 0x65c   : > { %v1445_v54 = vmul.f32 %v3614_v49, %v3598_v6  ;;  %3271 = vmatmul.mubr.msk.bf16.vlgmr.msra.gmra.mrb[40].mxu1 %vm864_vm3, %v1451_v47  ;;  %v1797_v0 = vpop.permute.xlu1 %1796 }
 0x65d   : > { %3281 = vmatpush3.bf16.xpose.msra.mxu1 %v1702_v52  ;;  %3282 = vmatprep.mubr.msk.bf16.mxu1 %vm3913_vm1, %v3912_v28  ;;  %v1746_v1 = vpop.permute.xlu0 %1745 }
 0x65e   : > { %v1450_v58 = vpack.c.bf16 %v1445_v54, %v1444_v53  ;;  %3292 = vmatprep.subr.bf16.mxu1 %v3912_v28 }
 0x660   : > { %3265 = vmatmul.mubr.msk.bf16.vlgmr.msra.gmra.mrb[32].mxu0 %vm864_vm3, %v1450_v58 }
 0x661   : > { %3275 = vmatpush3.bf16.xpose.msra.mxu0 %v1651_v55  ;;  %3276 = vmatprep.mubr.msk.bf16.mxu0 %vm3913_vm1, %v3912_v28 }
 0x662   : > { %3286 = vmatprep.subr.bf16.mxu0 %v3912_v28 }
 0x664   : > { %3283 = vmatmul.mubr.msk.bf16.vlgmr.msra.gmra.mrb[44].mxu1 %vm675_vm2, %v1695_v57 }
 0x665   : > { %3293 = vmatpush3.bf16.xpose.msra.mxu1 %v1804_v62  ;;  %3294 = vmatprep.mubr.msk.bf16.mxu1 %vm3913_vm1, %v3912_v28 }
 0x666   : > { %3304 = vmatprep.subr.bf16.mxu1 %v3912_v28 }
 0x668   : > { %3277 = vmatmul.mubr.msk.bf16.vlgmr.msra.gmra.mrb[36].mxu0 %vm675_vm2, %v1644_v56 }
 0x669   : > { %3287 = vmatpush3.bf16.xpose.msra.mxu0 %v1753_v63  ;;  %3288 = vmatprep.mubr.msk.bf16.mxu0 %vm3913_vm1, %v3912_v28 }
 0x66a   : > { %3298 = vmatprep.subr.bf16.mxu0 %v3912_v28 }
 0x66c   : > { %3295 = vmatmul.mubr.msk.bf16.vlgmr.msra.gmra.mrb[48].mxu1 %vm675_vm2, %v1797_v0 }
 0x66d   : > { %3306 = vmatprep.mubr.msk.bf16.mxu1 %vm3913_vm1, %v3912_v28 }
 0x670   : > { %3289 = vmatmul.mubr.msk.bf16.vlgmr.msra.gmra.mrb[40].mxu0 %vm675_vm2, %v1746_v1 }
 0x671   : > { %3300 = vmatprep.mubr.msk.bf16.mxu0 %vm3913_vm1, %v3912_v28 }
 0x6f6   : > { %v4497_v2 = vpop.f32.mrb[36].mxu1 }
 0x6f7   : > { %v3260_v3 = vpop.f32.mrb[37].mxu1 }
 0x6f8   : > { %v4499_v4 = vpop.f32.mrb[38].mxu1 }
 0x6f9   : > { %v3490_v5 = vpack.i.bf16 %v4499_v4, %v4497_v2  ;;  %v3261_v6 = vpop.f32.mrb[39].mxu1 }
 0x6fa   : > { %v4503_v9 = vpop.f32.mrb[28].mxu0 }
 0x6fb   : > { %v3254_v10 = vpop.f32.mrb[29].mxu0 }
 0x6fc   : > { %v4505_v11 = vpop.f32.mrb[30].mxu0 }
 0x6fd   : > { %v3485_v12 = vpack.i.bf16 %v4505_v11, %v4503_v9  ;;  %v3255_v13 = vpop.f32.mrb[31].mxu0 }
 0x72f   : > { %v4509_v14 = vpop.f32.mrb[40].mxu1 }
 0x730   : > { %v3272_v15 = vpop.f32.mrb[41].mxu1 }
 0x731   : > { %v4511_v16 = vpop.f32.mrb[42].mxu1 }
 0x732   : > { %v3510_v17 = vpack.i.bf16 %v4511_v16, %v4509_v14  ;;  %v3273_v18 = vpop.f32.mrb[43].mxu1 }
 0x733   : > { %v4515_v20 = vpop.f32.mrb[32].mxu0 }
 0x734   : > { %v3266_v22 = vpop.f32.mrb[33].mxu0 }
 0x735   : > { %v4517_v24 = vpop.f32.mrb[34].mxu0 }
 0x736   : > { %v3505_v29 = vpack.i.bf16 %v4517_v24, %v4515_v20  ;;  %v3267_v31 = vpop.f32.mrb[35].mxu0 }
 0x737   : > { %v1738_v33 = vpop.f32.mrb[44].mxu1 }
 0x738   : > { %v1739_v35 = vadd.f32 %v1738_v33, %v1641_v26  ;;  %v3284_v36 = vpop.f32.mrb[45].mxu1 }
 0x739   : > { %v1741_v37 = vpop.f32.mrb[46].mxu1 }
 0x73a   : > { %v3285_v38 = vpop.f32.mrb[47].mxu1  ;;  %v1853_v39 = vsel %vm864_vm3, %v1739_v35, -inf  ;;  %v1742_v47 = vadd.f32 %v1741_v37, %v1642_v40 }
 0x73b   : > { %1854 = vmax.xlane.f32.xlu0 %v1853_v39  ;;  %v1687_v41 = vpop.f32.mrb[36].mxu0 }
 0x73c   : > { %v1688_v42 = vadd.f32 %v1687_v41, %v1641_v26  ;;  %v3278_v44 = vpop.f32.mrb[37].mxu0  ;;  %v1856_v61 = vsel %vm864_vm3, %v1742_v47, -inf }
 0x73d   : > { %v1690_v45 = vpop.f32.mrb[38].mxu0 }
 0x73e   : > { %v1691_v49 = vadd.f32 %v1690_v45, %v1642_v40  ;;  %v3279_v50 = vpop.f32.mrb[39].mxu0  ;;  %v1847_v52 = vsel %vm864_vm3, %v1688_v42, -inf }
 0x73f   : > { %v1840_v53 = vpop.f32.mrb[48].mxu1  ;;  %1848 = vmax.xlane.f32.xlu0 %v1847_v52 }
 0x740   : > { %v3296_v54 = vpop.f32.mrb[49].mxu1  ;;  %v1850_v56 = vsel %vm864_vm3, %v1691_v49, -inf  ;;  %v1841_v1 = vadd.f32 %v1840_v53, %v1641_v26 }
 0x741   : > { %v1843_v58 = vpop.f32.mrb[50].mxu1  ;;  %1851 = vmax.xlane.f32.xlu1 %v1850_v56 }
 0x742   : > { %v3297_v55 = vpop.f32.mrb[51].mxu1  ;;  %v1865_v10 = vsel %vm864_vm3, %v1841_v1, -inf  ;;  %v1844_v13 = vadd.f32 %v1843_v58, %v1642_v40 }
 0x743   : > { %1857 = vmax.xlane.f32.xlu0 %v1856_v61  ;;  %v1789_v57 = vpop.f32.mrb[40].mxu0 }
 0x744   : > { %v1790_v62 = vadd.f32 %v1789_v57, %v1641_v26  ;;  %v3290_v63 = vpop.f32.mrb[41].mxu0  ;;  %v1868_v18 = vsel %vm864_vm3, %v1844_v13, -inf }
 0x745   : > { %v1792_v0 = vpop.f32.mrb[42].mxu0 }
 0x746   : > { %v3291_v3 = vpop.f32.mrb[43].mxu0  ;;  %v1859_v6 = vsel %vm864_vm3, %v1790_v62, -inf  ;;  %v4530_v15 = vadd.f32 %v1792_v0, %v1642_v40 }
 0x747   : > { %1860 = vmax.xlane.f32.xlu0 %v1859_v6 }
 0x748   : > { %v1862_v22 = vsel %vm864_vm3, %v4530_v15, -inf }
 0x74b   : > { %1866 = vmax.xlane.f32.xlu0 %v1865_v10 }
 0x752   : > { %1986 = vrot.lane.b32.xlu1 %v4289_v59, %s3918_s3 }
 0x756   : > { %2033 = vrot.lane.b32.xlu1 %v4301_v8, %s3918_s3 }
 0x761   : > { %1939 = vrot.lane.b32.xlu0 %v4291_v60, %s3918_s3 }
 0x77a   : > { %1869 = vmax.xlane.f32.xlu1 %v1868_v18 }
 0x77e   : > { %1863 = vmax.xlane.f32.xlu1 %v1862_v22 }
 0x78f   : > { %2080 = vrot.lane.b32.xlu1 %v4299_v7, %s3918_s3  ;;  %s3823_s3 = scalar_lea.vmem %s4769_s19, 1024 }
 0x790   : > { %p3824_p1 = scmp.ne.s32.totalorder %s4769_s19, %s3823_s3 }
 0x792   : > { %p3825_p4 = pnand %p3824_p1, %p4124_p5 }
 0x794   : > { %p3826_p0 = pneg %p3825_p4 }
 0x7c8   : > { %v1855_v26 = vpop.xlane.xlu0 %1854 }
 0x7c9   : > { %v1873_v31 = vsub.f32 %v1739_v35, %v1855_v26 }
 0x7cb   : > { %v1883_v33 = vmul.f32 1.442695, %v1873_v31 }
 0x7cc   : > { %v1849_v36 = vpop.xlane.xlu0 %1848 }
 0x7cd   : > { %3615 = vpow2.f32 %v1883_v33  ;;  %v1871_v37 = vsub.f32 %v1688_v42, %v1849_v36 }
 0x7ce   : > { %v1852_v38 = vpop.xlane.xlu1 %1851 }
 0x7cf   : > { %v1879_v39 = vmul.f32 1.442695, %v1871_v37  ;;  %v1872_v41 = vsub.f32 %v1691_v49, %v1852_v38 }
 0x7d0   : > { %v1858_v40 = vpop.xlane.xlu0 %1857 }
 0x7d1   : > { %3617 = vpow2.f32 %v1879_v39  ;;  %v1874_v44 = vsub.f32 %v1742_v47, %v1858_v40  ;;  %v1881_v50 = vmul.f32 1.442695, %v1872_v41 }
 0x7d2   : > { %v1987_v45 = vpop.permute.xlu1 %1986 }
 0x7d3   : > { %v1885_v52 = vmul.f32 1.442695, %v1874_v44  ;;  %3305 = vmatpush3.bf16.msra.mxu1 %v1987_v45 }
 0x7d4   : > { %v1861_v53 = vpop.xlane.xlu0 %1860  ;;  %3316 = vmatprep.subr.bf16.mxu1 %v3912_v28 }
 0x7d5   : > { %3619 = vpow2.f32 %v1885_v52  ;;  %v1875_v35 = vsub.f32 %v1790_v62, %v1861_v53 }
 0x7d6   : > { %3621 = vpow2.f32 %v1881_v50  ;;  %v2034_v22 = vpop.permute.xlu1 %2033 }
 0x7d7   : > { %v4537_v54 = vpop.eup %3615  ;;  %v1887_v47 = vmul.f32 1.442695, %v1875_v35 }
 0x7d8   : > { %v1867_v56 = vpop.xlane.xlu0 %1866  ;;  %v1901_v42 = vsel %vm864_vm3, %v4537_v54, 0.0 }
 0x7d9   : > { %v1877_v49 = vsub.f32 %v1841_v1, %v1867_v56  ;;  %1902 = vadd.xlane.f32.xlu0 %v1901_v42 }
 0x7db   : > { %v3618_v58 = vpop.eup %3617  ;;  %v1891_v55 = vmul.f32 1.442695, %v1877_v49 }
 0x7dc   : > { %v1940_v61 = vpop.permute.xlu0 %1939  ;;  %v1895_v57 = vsel %vm864_vm3, %v3618_v58, 0.0 }
 0x7dd   : > { %3623 = vpow2.f32 %v1891_v55  ;;  %1896 = vadd.xlane.f32.xlu0 %v1895_v57  ;;  %3299 = vmatpush3.bf16.msra.mxu0 %v1940_v61 }
 0x7de   : > { %3310 = vmatprep.subr.bf16.mxu0 %v3912_v28  ;;  %3625 = vpow2.f32 %v1887_v47 }
 0x7df   : > { %v3620_v63 = vpop.eup %3619 }
 0x7e0   : > { %v1904_v62 = vsel %vm864_vm3, %v3620_v63, 0.0  ;;  %v3622_v0 = vpop.eup %3621 }
 0x7e1   : > { %1905 = vadd.xlane.f32.xlu1 %v1904_v62  ;;  %v1898_v1 = vsel %vm864_vm3, %v3622_v0, 0.0 }
 0x7e5   : > { %1899 = vadd.xlane.f32.xlu1 %v1898_v1 }
 0x7e7   : > { %v4545_v3 = vpop.eup %3623 }
 0x7e8   : > { %v1913_v6 = vsel %vm864_vm3, %v4545_v3, 0.0  ;;  %v4549_v10 = vpop.eup %3625 }
 0x7e9   : > { %1914 = vadd.xlane.f32.xlu0 %v1913_v6  ;;  %v1907_v18 = vsel %vm864_vm3, %v4549_v10, 0.0 }
 0x7ed   : > { %1908 = vadd.xlane.f32.xlu0 %v1907_v18 }
 0x7f6   : > { %2183 = vrot.lane.b32.xlu1 %v4289_v59, %s3919_s24 }
 0x803   : > { %2132 = vrot.lane.b32.xlu0 %v4291_v60, %s3919_s24 }
 0x807   : > { %v1870_v26 = vpop.xlane.xlu1 %1869  ;;  %2130 = vrot.lane.b32.xlu0 %v4287_v51, %s3919_s24 }
 0x808   : > { %v1878_v31 = vsub.f32 %v1844_v13, %v1870_v26 }
 0x80a   : > { %v1893_v33 = vmul.f32 1.442695, %v1878_v31 }
 0x80b   : > { %2181 = vrot.lane.b32.xlu0 %v4282_v48, %s3919_s24  ;;  %v1864_v36 = vpop.xlane.xlu1 %1863 }
 0x80c   : > { %3627 = vpow2.f32 %v1893_v33  ;;  %v1876_v37 = vsub.f32 %v4530_v15, %v1864_v36 }
 0x80e   : > { %v1889_v38 = vmul.f32 1.442695, %v1876_v37 }
 0x80f   : > { %2232 = vrot.lane.b32.xlu0 %v4280_v46, %s3919_s24  ;;  %v2081_v51 = vpop.permute.xlu1 %2080 }
 0x810   : > { %3629 = vpow2.f32 %v1889_v38 }
 0x816   : > { %v3628_v39 = vpop.eup %3627 }
 0x817   : > { %v1916_v41 = vsel %vm864_vm3, %v3628_v39, 0.0 }
 0x81a   : > { %v3630_v40 = vpop.eup %3629  ;;  %1917 = vadd.xlane.f32.xlu1 %v1916_v41 }
 0x81b   : > { %v1910_v44 = vsel %vm864_vm3, %v3630_v40, 0.0 }
 0x81e   : > { %1911 = vadd.xlane.f32.xlu1 %v1910_v44 }
 0x82f   : > { %2234 = vrot.lane.b32.xlu1 %v4301_v8, %s3919_s24 }
 0x833   : > { %2285 = vrot.lane.b32.xlu1 %v4299_v7, %s3919_s24 }
 0x837   : > { %2283 = vrot.lane.b32.xlu1 %v4278_v43, %s3919_s24  ;;  %s3924_s24 = smov [#allocation11]  }
 0x866   : > { %v1903_v48 = vpop.xlane.xlu0 %1902 }
 0x867   : > { %3631 = vrcp.f32 %v1903_v48 }
 0x86a   : > { %v1897_v13 = vpop.xlane.xlu0 %1896 }
 0x86e   : > { %v1906_v46 = vpop.xlane.xlu1 %1905 }
 0x86f   : > { %3633 = vrcp.f32 %v1906_v46 }
 0x870   : > { %3635 = vrcp.f32 %v1897_v13 }
 0x871   : > { %v3632_v45 = vpop.eup %3631 }
 0x872   : > { %v1900_v15 = vpop.xlane.xlu1 %1899  ;;  %v1929_v52 = vmul.f32 %v3632_v45, %v4537_v54 }
 0x873   : > { %3637 = vrcp.f32 %v1900_v15 }
 0x876   : > { %v1915_v54 = vpop.xlane.xlu0 %1914 }
 0x877   : > { %3639 = vrcp.f32 %v1915_v54 }
 0x879   : > { %v3634_v50 = vpop.eup %3633 }
 0x87a   : > { %v1930_v53 = vmul.f32 %v3634_v50, %v3620_v63  ;;  %v3636_v35 = vpop.eup %3635  ;;  %v1909_v55 = vpop.xlane.xlu0 %1908 }
 0x87b   : > { %v1927_v49 = vmul.f32 %v3636_v35, %v3618_v58  ;;  %v2184_v58 = vpop.permute.xlu1 %2183 }
 0x87c   : > { %v1936_v56 = vpack.c.bf16 %v1930_v53, %v1929_v52  ;;  %v2189_v33 = vsel %vm675_vm2, %v2184_v58, 0 }
 0x87d   : > { %v3638_v42 = vpop.eup %3637 }
 0x87e   : > { %v1928_v47 = vmul.f32 %v3638_v42, %v3622_v0  ;;  %3307 = vmatmul.mubr.msk.bf16.vlgmr.msra.gmra.mrb[52].mxu1 %vm864_vm3, %v1936_v56  ;;  %v2133_v0 = vpop.permute.xlu0 %2132 }
 0x87f   : > { %3317 = vmatpush3.bf16.msra.mxu1 %v2081_v51  ;;  %3318 = vmatprep.mubr.msk.bf16.mxu1 %vm3913_vm1, %v3912_v28 }
 0x880   : > { %v1935_v43 = vpack.c.bf16 %v1928_v47, %v1927_v49  ;;  %3328 = vmatprep.subr.bf16.mxu1 %v3912_v28 }
 0x881   : > { %v3640_v63 = vpop.eup %3639 }
 0x882   : > { %3301 = vmatmul.mubr.msk.bf16.vlgmr.msra.gmra.mrb[44].mxu0 %vm864_vm3, %v1935_v43  ;;  %v1933_v1 = vmul.f32 %v3640_v63, %v4545_v3  ;;  %v2131_v38 = vpop.permute.xlu0 %2130  ;;  %v2138_v3 = vsel %vm675_vm2, %v2133_v0, 0 }
 0x883   : > { %3311 = vmatpush3.bf16.msra.mxu0 %v2034_v22  ;;  %3312 = vmatprep.mubr.msk.bf16.mxu0 %vm3913_vm1, %v3912_v28 }
 0x884   : > { %3322 = vmatprep.subr.bf16.mxu0 %v3912_v28 }
 0x8a7   : > { %v1918_v61 = vpop.xlane.xlu1 %1917 }
 0x8a8   : > { %3641 = vrcp.f32 %v1918_v61 }
 0x8a9   : > { %3643 = vrcp.f32 %v1909_v55 }
 0x8ab   : > { %v1912_v57 = vpop.xlane.xlu1 %1911 }
 0x8ac   : > { %3645 = vrcp.f32 %v1912_v57 }
 0x8af   : > { %v2235_v31 = vpop.permute.xlu1 %2234 }
 0x8b0   : > { %v2240_v44 = vsel %vm675_vm2, %v2235_v31, 0 }
 0x8b2   : > { %v3642_v62 = vpop.eup %3641 }
 0x8b3   : > { %v1934_v6 = vmul.f32 %v3642_v62, %v3628_v39  ;;  %v3644_v18 = vpop.eup %3643  ;;  %v2286_v39 = vpop.permute.xlu1 %2285 }
 0x8b4   : > { %v1931_v36 = vmul.f32 %v3644_v18, %v4549_v10  ;;  %v2182_v10 = vpop.permute.xlu0 %2181 }
 0x8b5   : > { %v1938_v22 = vpack.c.bf16 %v1934_v6, %v1933_v1 }
 0x8b6   : > { %v3646_v26 = vpop.eup %3645 }
 0x8b7   : > { %v1932_v37 = vmul.f32 %v3646_v26, %v3630_v40  ;;  %3319 = vmatmul.mubr.msk.bf16.vlgmr.msra.gmra.mrb[56].mxu1 %vm864_vm3, %v1938_v22  ;;  %v2291_v40 = vsel %vm675_vm2, %v2286_v39, 0  ;;  %v2284_v48 = vpop.permute.xlu1 %2283  ;;  %v2128_v22 = vld [vmem:[#allocation10 + $0x30] sm:$0xff] }
 0x8b8   : > { %3329 = vmatpush3.bf16.xpose.msra.mxu1 %v2189_v33  ;;  %3330 = vmatprep.mubr.msk.bf16.mxu1 %vm3913_vm1, %v3912_v28  ;;  %v2233_v51 = vpop.permute.xlu0 %2232 }
 0x8b9   : > { %v1937_v41 = vpack.c.bf16 %v1932_v37, %v1931_v36  ;;  %3340 = vmatprep.subr.bf16.mxu1 %v3912_v28  ;;  %v2129_v36 = vld [vmem:[#allocation10 + $0x38] sm:$0xff] }
 0x8bb   : > { %3313 = vmatmul.mubr.msk.bf16.vlgmr.msra.gmra.mrb[48].mxu0 %vm864_vm3, %v1937_v41 }
 0x8bc   : > { %3323 = vmatpush3.bf16.xpose.msra.mxu0 %v2138_v3  ;;  %3324 = vmatprep.mubr.msk.bf16.mxu0 %vm3913_vm1, %v3912_v28 }
 0x8bd   : > { %3334 = vmatprep.subr.bf16.mxu0 %v3912_v28 }
 0x8bf   : > { %3331 = vmatmul.mubr.msk.bf16.vlgmr.msra.gmra.mrb[60].mxu1 %vm675_vm2, %v2182_v10 }
 0x8c0   : > { %3341 = vmatpush3.bf16.xpose.msra.mxu1 %v2291_v40  ;;  %3342 = vmatprep.mubr.msk.bf16.mxu1 %vm3913_vm1, %v3912_v28 }
 0x8c1   : > { %3352 = vmatprep.subr.bf16.mxu1 %v3912_v28 }
 0x8c3   : > { %3325 = vmatmul.mubr.msk.bf16.vlgmr.msra.gmra.mrb[52].mxu0 %vm675_vm2, %v2131_v38 }
 0x8c4   : > { %3335 = vmatpush3.bf16.xpose.msra.mxu0 %v2240_v44  ;;  %3336 = vmatprep.mubr.msk.bf16.mxu0 %vm3913_vm1, %v3912_v28 }
 0x8c5   : > { %3346 = vmatprep.subr.bf16.mxu0 %v3912_v28 }
 0x8c7   : > { %3343 = vmatmul.mubr.msk.bf16.vlgmr.msra.gmra.mrb[64].mxu1 %vm675_vm2, %v2284_v48 }
 0x8c8   : > { %3354 = vmatprep.mubr.msk.bf16.mxu1 %vm3913_vm1, %v3912_v28 }
 0x8cb   : > { %3337 = vmatmul.mubr.msk.bf16.vlgmr.msra.gmra.mrb[56].mxu0 %vm675_vm2, %v2233_v51 }
 0x8cc   : > { %3348 = vmatprep.mubr.msk.bf16.mxu0 %vm3913_vm1, %v3912_v28 }
 0x951   : > { %v4601_v13 = vpop.f32.mrb[52].mxu1 }
 0x952   : > { %v3308_v46 = vpop.f32.mrb[53].mxu1 }
 0x953   : > { %v4603_v15 = vpop.f32.mrb[54].mxu1 }
 0x954   : > { %v3500_v45 = vpack.i.bf16 %v4603_v15, %v4601_v13  ;;  %v3309_v50 = vpop.f32.mrb[55].mxu1 }
 0x955   : > { %v4607_v52 = vpop.f32.mrb[44].mxu0 }
 0x956   : > { %v3302_v53 = vpop.f32.mrb[45].mxu0 }
 0x957   : > { %v4609_v35 = vpop.f32.mrb[46].mxu0 }
 0x958   : > { %v3495_v56 = vpack.i.bf16 %v4609_v35, %v4607_v52  ;;  %v3303_v42 = vpop.f32.mrb[47].mxu0 }
 0x98a   : > { %v4613_v49 = vpop.f32.mrb[56].mxu1 }
 0x98b   : > { %v3320_v47 = vpop.f32.mrb[57].mxu1 }
 0x98c   : > { %v4615_v43 = vpop.f32.mrb[58].mxu1 }
 0x98d   : > { %v3530_v54 = vpack.i.bf16 %v4615_v43, %v4613_v49  ;;  %v3321_v58 = vpop.f32.mrb[59].mxu1 }
 0x98e   : > { %v4619_v55 = vpop.f32.mrb[48].mxu0 }
 0x98f   : > { %v3314_v61 = vpop.f32.mrb[49].mxu0 }
 0x990   : > { %v4621_v57 = vpop.f32.mrb[50].mxu0 }
 0x991   : > { %v3525_v63 = vpack.i.bf16 %v4621_v57, %v4619_v55  ;;  %v3315_v62 = vpop.f32.mrb[51].mxu0 }
 0x992   : > { %v2225_v0 = vpop.f32.mrb[60].mxu1 }
 0x993   : > { %v3332_v1 = vpop.f32.mrb[61].mxu1  ;;  %v2226_v38 = vadd.f32 %v2225_v0, %v2128_v22 }
 0x994   : > { %v2228_v6 = vpop.f32.mrb[62].mxu1 }
 0x995   : > { %v3333_v18 = vpop.f32.mrb[63].mxu1  ;;  %v2229_v51 = vadd.f32 %v2228_v6, %v2129_v36  ;;  %v2340_v50 = vsel %vm864_vm3, %v2226_v38, -inf }
 0x996   : > { %v2174_v26 = vpop.f32.mrb[52].mxu0 }
 0x997   : > { %v2175_v31 = vadd.f32 %v2174_v26, %v2128_v22  ;;  %v3326_v33 = vpop.f32.mrb[53].mxu0  ;;  %v2343_v0 = vsel %vm864_vm3, %v2229_v51, -inf }
 0x998   : > { %v2177_v37 = vpop.f32.mrb[54].mxu0 }
 0x999   : > { %v2178_v41 = vadd.f32 %v2177_v37, %v2129_v36  ;;  %v3327_v3 = vpop.f32.mrb[55].mxu0  ;;  %v2334_v39 = vsel %vm864_vm3, %v2175_v31, -inf }
 0x99a   : > { %v2327_v10 = vpop.f32.mrb[64].mxu1  ;;  %2335 = vmax.xlane.f32.xlu0 %v2334_v39 }
 0x99b   : > { %v3344_v40 = vpop.f32.mrb[65].mxu1  ;;  %v2337_v44 = vsel %vm864_vm3, %v2178_v41, -inf  ;;  %v2328_v6 = vadd.f32 %v2327_v10, %v2128_v22 }
 0x99c   : > { %v2330_v48 = vpop.f32.mrb[66].mxu1  ;;  %2338 = vmax.xlane.f32.xlu1 %v2337_v44 }
 0x99d   : > { %v3345_v46 = vpop.f32.mrb[67].mxu1  ;;  %v4631_v1 = vadd.f32 %v2330_v48, %v2129_v36  ;;  %v2352_v37 = vsel %vm864_vm3, %v2328_v6, -inf }
 0x99e   : > { %2341 = vmax.xlane.f32.xlu0 %v2340_v50  ;;  %v2276_v53 = vpop.f32.mrb[56].mxu0 }
 0x99f   : > { %v3338_v42 = vpop.f32.mrb[57].mxu0  ;;  %v2277_v58 = vadd.f32 %v2276_v53, %v2128_v22  ;;  %v2355_v33 = vsel %vm864_vm3, %v4631_v1, -inf }
 0x9a0   : > { %v2279_v47 = vpop.f32.mrb[58].mxu0 }
 0x9a1   : > { %v4628_v61 = vadd.f32 %v2279_v47, %v2129_v36  ;;  %v3339_v62 = vpop.f32.mrb[59].mxu0  ;;  %v2346_v26 = vsel %vm864_vm3, %v2277_v58, -inf }
 0x9a2   : > { %2344 = vmax.xlane.f32.xlu0 %v2343_v0 }
 0x9a3   : > { %v2349_v18 = vsel %vm864_vm3, %v4628_v61, -inf }
 0x9a4   : > { %2350 = vmax.xlane.f32.xlu1 %v2349_v18 }
 0x9a6   : > { %2347 = vmax.xlane.f32.xlu0 %v2346_v26 }
 0x9a8   : > { %2356 = vmax.xlane.f32.xlu1 %v2355_v33 }
 0x9aa   : > { %2353 = vmax.xlane.f32.xlu0 %v2352_v37 }
 0xa27   : > { %v2336_v3 = vpop.xlane.xlu0 %2335 }
 0xa28   : > { %v2358_v39 = vsub.f32 %v2175_v31, %v2336_v3 }
 0xa29   : > { %v2339_v40 = vpop.xlane.xlu1 %2338 }
 0xa2a   : > { %v2366_v48 = vmul.f32 1.442695, %v2358_v39  ;;  %v2359_v46 = vsub.f32 %v2178_v41, %v2339_v40 }
 0xa2b   : > { %v2342_v36 = vpop.xlane.xlu0 %2341 }
 0xa2c   : > { %v2360_v44 = vsub.f32 %v2226_v38, %v2342_v36  ;;  %v2368_v10 = vmul.f32 1.442695, %v2359_v46 }
 0xa2e   : > { %v2370_v50 = vmul.f32 1.442695, %v2360_v44 }
 0xa2f   : > { %v2345_v53 = vpop.xlane.xlu0 %2344 }
 0xa30   : > { %3647 = vpow2.f32 %v2370_v50  ;;  %v2361_v22 = vsub.f32 %v2229_v51, %v2345_v53 }
 0xa31   : > { %3649 = vpow2.f32 %v2366_v48  ;;  %v2351_v48 = vpop.xlane.xlu1 %2350 }
 0xa32   : > { %v2372_v42 = vmul.f32 1.442695, %v2361_v22 }
 0xa33   : > { %v2348_v47 = vpop.xlane.xlu0 %2347 }
 0xa34   : > { %3651 = vpow2.f32 %v2372_v42  ;;  %v2362_v62 = vsub.f32 %v2277_v58, %v2348_v47 }
 0xa35   : > { %3653 = vpow2.f32 %v2368_v10  ;;  %v2357_v46 = vpop.xlane.xlu1 %2356 }
 0xa36   : > { %v2374_v31 = vmul.f32 1.442695, %v2362_v62  ;;  %v2365_v50 = vsub.f32 %v4631_v1, %v2357_v46 }
 0xa37   : > { %v2354_v0 = vpop.xlane.xlu0 %2353 }
 0xa38   : > { %v2364_v18 = vsub.f32 %v2328_v6, %v2354_v0 }
 0xa3a   : > { %v4639_v26 = vpop.eup %3647  ;;  %v2378_v33 = vmul.f32 1.442695, %v2364_v18 }
 0xa3b   : > { %v2388_v38 = vsel %vm864_vm3, %v4639_v26, 0.0  ;;  %v4643_v41 = vpop.eup %3649 }
 0xa3c   : > { %3655 = vpow2.f32 %v2378_v33  ;;  %2389 = vadd.xlane.f32.xlu0 %v2388_v38  ;;  %v2382_v37 = vsel %vm864_vm3, %v4643_v41, 0.0 }
 0xa3d   : > { %3657 = vpow2.f32 %v2374_v31 }
 0xa3e   : > { %v3652_v51 = vpop.eup %3651 }
 0xa3f   : > { %v2391_v58 = vsel %vm864_vm3, %v3652_v51, 0.0  ;;  %v3654_v3 = vpop.eup %3653 }
 0xa40   : > { %2383 = vadd.xlane.f32.xlu0 %v2382_v37  ;;  %2392 = vadd.xlane.f32.xlu1 %v2391_v58  ;;  %v2385_v6 = vsel %vm864_vm3, %v3654_v3, 0.0  ;;  %v3549_v37 = vld [vmem:[%s4822_s6] sm:$0xff]   ;;  %v3550_v58 = vld [vmem:[%s4822_s6 + $0x8] sm:$0xff]  }
 0xa44   : > { %2386 = vadd.xlane.f32.xlu1 %v2385_v6 }
 0xa46   : > { %v4649_v39 = vpop.eup %3655 }
 0xa47   : > { %v2400_v40 = vsel %vm864_vm3, %v4649_v39, 0.0  ;;  %v4653_v36 = vpop.eup %3657 }
 0xa48   : > { %2401 = vadd.xlane.f32.xlu0 %v2400_v40  ;;  %v2394_v44 = vsel %vm864_vm3, %v4653_v36, 0.0 }
 0xa4c   : > { %2395 = vadd.xlane.f32.xlu0 %v2394_v44 }
 0xa55   : > { %2473 = vrot.lane.b32.xlu1 %v4289_v59, %s3920_s23  ;;  %v2363_v59 = vsub.f32 %v4628_v61, %v2351_v48 }
 0xa59   : > { %2520 = vrot.lane.b32.xlu1 %v4301_v8, %s3920_s23  ;;  %v2380_v8 = vmul.f32 1.442695, %v2365_v50 }
 0xa5b   : > { %3659 = vpow2.f32 %v2380_v8 }
 0xa62   : > { %2426 = vrot.lane.b32.xlu0 %v4291_v60, %s3920_s23  ;;  %v2376_v60 = vmul.f32 1.442695, %v2363_v59 }
 0xa64   : > { %3661 = vpow2.f32 %v2376_v60 }
 0xa65   : > { %v3660_v9 = vpop.eup %3659 }
 0xa66   : > { %3486 = vrot.lane.b32.xlu0 %v3485_v12, %s3921_s25  ;;  %v2403_v11 = vsel %vm864_vm3, %v3660_v9, 0.0 }
 0xa6a   : > { %3496 = vrot.lane.b32.xlu0 %v3495_v56, %s3922_s0 }
 0xa6e   : > { %3506 = vrot.lane.b32.xlu0 %v3505_v29, %s3921_s25  ;;  %v3662_v12 = vpop.eup %3661 }
 0xa6f   : > { %v2397_v1 = vsel %vm864_vm3, %v3662_v12, 0.0 }
 0xa7d   : > { %2404 = vadd.xlane.f32.xlu1 %v2403_v11 }
 0xa81   : > { %2398 = vadd.xlane.f32.xlu1 %v2397_v1 }
 0xa92   : > { %2567 = vrot.lane.b32.xlu1 %v4299_v7, %s3920_s23  ;;  %s3827_s23 = sshll.u32 %s3924_s24, 4  ;;  %s3828_s23 = int_to_ptr.vmem [resolvable:$false] %s3827_s23 }
 0xa93   : > { %p3830_p8 = scmp.lt.s32.totalorder %s4769_s19, %s3828_s23 }
 0xa96   : > { %3491 = vrot.lane.b32.xlu1 %v3490_v5, %s3921_s25 }
 0xa9a   : > { %3501 = vrot.lane.b32.xlu1 %v3500_v45, %s3922_s0 }
 0xa9e   : > { %3511 = vrot.lane.b32.xlu1 %v3510_v17, %s3921_s25 }
 0xac9   : > { %v2390_v20 = vpop.xlane.xlu0 %2389 }
 0xaca   : > { %3663 = vrcp.f32 %v2390_v20 }
 0xacd   : > { %v2384_v24 = vpop.xlane.xlu0 %2383  ;;  %v2393_v29 = vpop.xlane.xlu1 %2392 }
 0xace   : > { %3665 = vrcp.f32 %v2393_v29 }
 0xacf   : > { %3667 = vrcp.f32 %v2384_v24 }
 0xad1   : > { %v2387_v7 = vpop.xlane.xlu1 %2386 }
 0xad2   : > { %3669 = vrcp.f32 %v2387_v7 }
 0xad4   : > { %v3664_v5 = vpop.eup %3663 }
 0xad5   : > { %v2402_v2 = vpop.xlane.xlu0 %2401  ;;  %v2474_v4 = vpop.permute.xlu1 %2473  ;;  %v2416_v14 = vmul.f32 %v3664_v5, %v4639_v26 }
 0xad6   : > { %3353 = vmatpush3.bf16.msra.mxu1 %v2474_v4  ;;  %3671 = vrcp.f32 %v2402_v2 }
 0xad7   : > { %3364 = vmatprep.subr.bf16.mxu1 %v3912_v28 }
 0xad8   : > { %v3666_v13 = vpop.eup %3665 }
 0xad9   : > { %v2396_v15 = vpop.xlane.xlu0 %2395  ;;  %v3668_v45 = vpop.eup %3667  ;;  %v2417_v16 = vmul.f32 %v3666_v13, %v3652_v51 }
 0xada   : > { %v2414_v35 = vmul.f32 %v3668_v45, %v4643_v41  ;;  %v2521_v22 = vpop.permute.xlu1 %2520 }
 0xadb   : > { %v2423_v52 = vpack.c.bf16 %v2417_v16, %v2416_v14 }
 0xadc   : > { %v3670_v17 = vpop.eup %3669 }
 0xadd   : > { %v2415_v56 = vmul.f32 %v3670_v17, %v3654_v3  ;;  %v2427_v61 = vpop.permute.xlu0 %2426  ;;  %3355 = vmatmul.mubr.msk.bf16.vlgmr.msra.gmra.mrb[68].mxu1 %vm864_vm3, %v2423_v52 }
 0xade   : > { %3347 = vmatpush3.bf16.msra.mxu0 %v2427_v61  ;;  %3366 = vmatprep.mubr.msk.bf16.mxu1 %vm3913_vm1, %v3912_v28 }
 0xadf   : > { %3358 = vmatprep.subr.bf16.mxu0 %v3912_v28  ;;  %v2422_v53 = vpack.c.bf16 %v2415_v56, %v2414_v35 }
 0xae0   : > { %v3672_v62 = vpop.eup %3671 }
 0xae1   : > { %3349 = vmatmul.mubr.msk.bf16.vlgmr.msra.gmra.mrb[60].mxu0 %vm864_vm3, %v2422_v53  ;;  %v2420_v18 = vmul.f32 %v3672_v62, %v4649_v39  ;;  %v3487_v49 = vpop.permute.xlu0 %3486 }
 0xae2   : > { %3359 = vmatpush3.bf16.msra.mxu0 %v2521_v22  ;;  %3360 = vmatprep.mubr.msk.bf16.mxu0 %vm3913_vm1, %v3912_v28  ;;  %v3489_v13 = vunpack.i.h.bf16 %v3487_v49  ;;  %v3488_v45 = vunpack.i.l.bf16 %v3487_v49 }
 0xae3   : > { %3370 = vmatprep.subr.bf16.mxu0 %v3549_v37 }
 0xb0a   : > { %v2405_v10 = vpop.xlane.xlu1 %2404 }
 0xb0b   : > { %3673 = vrcp.f32 %v2405_v10  ;;  %v2711_v10 = vsel %vm675_vm2, %v4407_v25, %v3489_v13 }
 0xb0c   : > { %3675 = vrcp.f32 %v2396_v15 }
 0xb0e   : > { %v2399_v42 = vpop.xlane.xlu1 %2398 }
 0xb0f   : > { %3677 = vrcp.f32 %v2399_v42 }
 0xb12   : > { %v2568_v47 = vpop.permute.xlu1 %2567 }
 0xb13   : > { %3365 = vmatpush3.bf16.msra.mxu1 %v2568_v47 }
 0xb15   : > { %v3674_v0 = vpop.eup %3673 }
 0xb16   : > { %v2421_v26 = vmul.f32 %v3674_v0, %v3660_v9  ;;  %v3676_v31 = vpop.eup %3675  ;;  %v3492_v2 = vpop.permute.xlu1 %3491 }
 0xb17   : > { %v2418_v41 = vmul.f32 %v3676_v31, %v4653_v36  ;;  %v3494_v5 = vunpack.i.h.bf16 %v3492_v2  ;;  %v3493_v55 = vunpack.i.l.bf16 %v3492_v2 }
 0xb18   : > { %v2425_v33 = vpack.c.bf16 %v2421_v26, %v2420_v18 }
 0xb19   : > { %v3678_v38 = vpop.eup %3677  ;;  %v2713_v52 = vsel %vm675_vm2, %v4403_v21, %v3494_v5  ;;  %v2712_v35 = vsel %vm675_vm2, %v4401_v19, %v3493_v55  ;;  %v2710_v21 = vsel %vm675_vm2, %v4405_v23, %v3488_v45 }
 0xb1a   : > { %v2419_v51 = vmul.f32 %v3678_v38, %v3662_v12  ;;  %3367 = vmatmul.mubr.msk.bf16.vlgmr.msra.gmra.mrb[72].mxu1 %vm864_vm3, %v2425_v33  ;;  %v3502_v43 = vpop.permute.xlu1 %3501 }
 0xb1b   : > { %v3504_v57 = vunpack.i.h.bf16 %v3502_v43 }
 0xb1c   : > { %v2424_v28 = vpack.c.bf16 %v2419_v51, %v2418_v41 }
 0xb1d   : > { %v2721_v22 = vsel %vm864_vm3, %v2713_v52, %v3504_v57 }
 0xb1e   : > { %3361 = vmatmul.mubr.msk.bf16.vlgmr.msra.gmra.mrb[64].mxu0 %vm864_vm3, %v2424_v28  ;;  %v3512_v4 = vpop.permute.xlu1 %3511 }
 0xb1f   : > { %3371 = vmatpush3.bf16.msra.mxu0 %v3549_v37  ;;  %v3514_v51 = vunpack.i.h.bf16 %v3512_v4  ;;  %v3513_v28 = vunpack.i.l.bf16 %v3512_v4 }
 0xb20   : > { %3372 = vmatprep.subr.bf16.mxu0 %v3550_v58 }
 0xb23   : > { %3373 = vmatpush3.bf16.msra.mxu0 %v3550_v58 }
 0xbb0   : > { %v2513_v3 = vpop.f32.mrb[68].mxu1 }
 0xbb1   : > { %v3356_v6 = vpop.f32.mrb[69].mxu1 }
 0xbb2   : > { %v2516_v39 = vpop.f32.mrb[70].mxu1 }
 0xbb3   : > { %v3515_v40 = vpack.i.bf16 %v2516_v39, %v2513_v3  ;;  %v3357_v36 = vpop.f32.mrb[71].mxu1 }
 0xbb4   : > { %v2466_v44 = vpop.f32.mrb[60].mxu0  ;;  %v2716_v36 = vsel %vm675_vm2, %v4409_v27, %v3513_v28 }
 0xbb5   : > { %v3350_v48 = vpop.f32.mrb[61].mxu0  ;;  %3516 = vrot.lane.b32.xlu1 %v3515_v40, %s3923_s2  ;;  %v2717_v40 = vsel %vm675_vm2, %v4411_v30, %v3514_v51 }
 0xbb6   : > { %v2469_v46 = vpop.f32.mrb[62].mxu0 }
 0xbb7   : > { %v3520_v50 = vpack.i.bf16 %v2469_v46, %v2466_v44  ;;  %v3351_v59 = vpop.f32.mrb[63].mxu0 }
 0xbb9   : > { %3521 = vrot.lane.b32.xlu0 %v3520_v50, %s3923_s2  ;;  %3531 = vrot.lane.b32.xlu1 %v3530_v54, %s3922_s0  ;;  %v3497_v54 = vpop.permute.xlu0 %3496 }
 0xbba   : > { %v3499_v14 = vunpack.i.h.bf16 %v3497_v54  ;;  %v3498_v16 = vunpack.i.l.bf16 %v3497_v54 }
 0xbbc   : > { %v2718_v26 = vsel %vm864_vm3, %v2710_v21, %v3498_v16  ;;  %v2719_v31 = vsel %vm864_vm3, %v2711_v10, %v3499_v14 }
 0xbbd   : > { %3526 = vrot.lane.b32.xlu0 %v3525_v63, %s3922_s0  ;;  %v3503_v63 = vunpack.i.l.bf16 %v3502_v43  ;;  %v3507_v15 = vpop.permute.xlu0 %3506  ;;  %s3829_s0 = scalar_lea.vmem %s3828_s23, 2048 }
 0xbbe   : > { %v3509_v3 = vunpack.i.h.bf16 %v3507_v15  ;;  %v3508_v6 = vunpack.i.l.bf16 %v3507_v15  ;;  %p3831_p6 = scmp.lt.s32.totalorder %s3829_s0, %s3823_s3 }
 0xbbf   : > { %v2720_v53 = vsel %vm864_vm3, %v2712_v35, %v3503_v63 }
 0xbc0   : > { %v2715_v30 = vsel %vm675_vm2, %v4415_v34, %v3509_v3  ;;  %v2714_v27 = vsel %vm675_vm2, %v4413_v32, %v3508_v6  ;;  %v3053_v32 = vld [vmem:[%s4823_s7] ss:$0 sm:$0xff]  ;;  %p3832_p10 = por %p3831_p6, %p3830_p8 }
 0xbc2   : > { %p3833_p3 = pnand %p3832_p10, %p3826_p0 }
 0xbed   : > { %v2607_v8 = vpop.f32.mrb[72].mxu1 }
 0xbee   : > { %v3368_v60 = vpop.f32.mrb[73].mxu1 }
 0xbef   : > { %v2610_v9 = vpop.f32.mrb[74].mxu1 }
 0xbf0   : > { %v3540_v11 = vpack.i.bf16 %v2610_v9, %v2607_v8  ;;  %v3369_v12 = vpop.f32.mrb[75].mxu1 }
 0xbf1   : > { %v2560_v1 = vpop.f32.mrb[64].mxu0 }
 0xbf2   : > { %3541 = vrot.lane.b32.xlu1 %v3540_v11, %s3923_s2  ;;  %v3362_v20 = vpop.f32.mrb[65].mxu0 }
 0xbf3   : > { %v2563_v24 = vpop.f32.mrb[66].mxu0 }
 0xbf4   : > { %v3535_v29 = vpack.i.bf16 %v2563_v24, %v2560_v1  ;;  %v3363_v7 = vpop.f32.mrb[67].mxu0 }
 0xbf6   : > { %3536 = vrot.lane.b32.xlu0 %v3535_v29, %s3923_s2 }
 0xc27   : > { %v3517_v17 = vpop.permute.xlu1 %3516 }
 0xc28   : > { %v3519_v56 = vunpack.i.h.bf16 %v3517_v17  ;;  %v3518_v61 = vunpack.i.l.bf16 %v3517_v17 }
 0xc2a   : > { %v2729_v42 = vsel %vm2726_vm4, %v2720_v53, %v3518_v61  ;;  %v2730_v47 = vsel %vm2726_vm4, %v2721_v22, %v3519_v56 }
 0xc2b   : > { %v3522_v62 = vpop.permute.xlu0 %3521  ;;  %v2736_v0 = vpack.c.bf16 %v2730_v47, %v2729_v42  ;;  %v3532_v41 = vpop.permute.xlu1 %3531 }
 0xc2c   : > { %v3524_v18 = vunpack.i.h.bf16 %v3522_v62  ;;  %v3523_v19 = vunpack.i.l.bf16 %v3522_v62  ;;  %v3534_v23 = vunpack.i.h.bf16 %v3532_v41  ;;  %v3533_v37 = vunpack.i.l.bf16 %v3532_v41 }
 0xc2e   : > { %v2728_v33 = vsel %vm2726_vm4, %v2719_v31, %v3524_v18  ;;  %v2727_v38 = vsel %vm2726_vm4, %v2718_v26, %v3523_v19  ;;  %v2724_v46 = vsel %vm864_vm3, %v2716_v36, %v3533_v37  ;;  %v2725_v50 = vsel %vm864_vm3, %v2717_v40, %v3534_v23 }
 0xc2f   : > { %v2735_v25 = vpack.c.bf16 %v2728_v33, %v2727_v38  ;;  %v3527_v58 = vpop.permute.xlu0 %3526 }
 0xc30   : > { %v3529_v59 = vunpack.i.h.bf16 %v3527_v58  ;;  %v3528_v8 = vunpack.i.l.bf16 %v3527_v58 }
 0xc31   : > { %3374 = vmatprep.mubr.msk.bf16.mxu0 %vm487_vm0, %v2735_v25 }
 0xc32   : > { %3375 = vmatmul.mubr.msk.bf16.vlgmr.msra.gmra.mrb[68].mxu0 %vm487_vm0, %v2736_v0  ;;  %v2723_v24 = vsel %vm864_vm3, %v2715_v30, %v3529_v59  ;;  %v2722_v29 = vsel %vm864_vm3, %v2714_v27, %v3528_v8 }
 0xc64   : > { %v3542_v39 = vpop.permute.xlu1 %3541 }
 0xc65   : > { %v3544_v44 = vunpack.i.h.bf16 %v3542_v39  ;;  %v3543_v48 = vunpack.i.l.bf16 %v3542_v39 }
 0xc67   : > { %v2733_v60 = vsel %vm2726_vm4, %v2724_v46, %v3543_v48  ;;  %v2734_v9 = vsel %vm2726_vm4, %v2725_v50, %v3544_v44 }
 0xc68   : > { %v2738_v11 = vpack.c.bf16 %v2734_v9, %v2733_v60  ;;  %v3537_v12 = vpop.permute.xlu0 %3536 }
 0xc69   : > { %v3539_v1 = vunpack.i.h.bf16 %v3537_v12  ;;  %v3538_v20 = vunpack.i.l.bf16 %v3537_v12 }
 0xc6b   : > { %v2732_v7 = vsel %vm2726_vm4, %v2723_v24, %v3539_v1  ;;  %v2731_v2 = vsel %vm2726_vm4, %v2722_v29, %v3538_v20 }
 0xc6c   : > { %v2737_v49 = vpack.c.bf16 %v2732_v7, %v2731_v2 }
 0xc6e   : > { %3378 = vmatprep.mubr.msk.bf16.mxu0 %vm487_vm0, %v2737_v49 }
 0xc6f   : > { %3379 = vmatmul.mubr.msk.bf16.gmra.mrb[72].mxu0 %vm487_vm0, %v2738_v11 }
 0xd05   : > { %v3376_v34 = vpop.f32.mrb[68].mxu0 }
 0xd06   : > { %v2817_v43 = vadd.f32 %v3376_v34, %v3053_v32  ;;  %v2808_v54 = vpop.f32.mrb[69].mxu0 }
 0xd07   : > { %v2809_v4 = vadd.f32 %v3053_v32, %v2808_v54  ;;  %v3377_v5 = vpop.f32.mrb[70].mxu0 }
 0xd08   : > { %2841 = vst.msk [vmem:[%s435_s30 + $0x10] sm:$0xff] %vm487_vm0, %v2817_v43  ;;  %v2820_v55 = vadd.f32 %v3377_v5, %v3053_v32  ;;  %v2811_v57 = vpop.f32.mrb[71].mxu0 }
 0xd09   : > { %2839 = vst.msk [vmem:[%s435_s30] sm:$0xff] %vm487_vm0, %v2809_v4  ;;  %v2812_v63 = vadd.f32 %v3053_v32, %v2811_v57 }
 0xd0a   : > { %2842 = vst.msk [vmem:[%s435_s30 + $0x18] sm:$0xff] %vm487_vm0, %v2820_v55 }
 0xd0b   : > { %2840 = vst.msk [vmem:[%s435_s30 + $0x8] sm:$0xff] %vm487_vm0, %v2812_v63 }
 0xd42   : > { %v3380_v13 = vpop.f32.mrb[72].mxu0 }
 0xd43   : > { %v2833_v15 = vadd.f32 %v3380_v13, %v3053_v32  ;;  %v2824_v45 = vpop.f32.mrb[73].mxu0 }
 0xd44   : > { %v2825_v14 = vadd.f32 %v3053_v32, %v2824_v45  ;;  %v3381_v16 = vpop.f32.mrb[74].mxu0 }
 0xd45   : > { %2845 = vst.msk [vmem:[%s435_s30 + $0x30] sm:$0xff] %vm487_vm0, %v2833_v15  ;;  %v2836_v17 = vadd.f32 %v3381_v16, %v3053_v32  ;;  %v2827_v52 = vpop.f32.mrb[75].mxu0 }
 0xd46   : > { %2843 = vst.msk [vmem:[%s435_s30 + $0x20] sm:$0xff] %vm487_vm0, %v2825_v14  ;;  %v2828_v35 = vadd.f32 %v3053_v32, %v2827_v52 }
 0xd47   : > { %2846 = vst.msk [vmem:[%s435_s30 + $0x38] sm:$0xff] %vm487_vm0, %v2836_v17 }
 0xd48   : > { %2844 = vst.msk [vmem:[%s435_s30 + $0x28] sm:$0xff] %vm487_vm0, %v2828_v35 }
 0xd49   : > { %3836 = shalt.err (!%p3833_p3)
}
 0xd4a   : > { %s3837_s26 = scalar_lea.hbm %s4766_s29, 1024  ;;  %s3841_s18 = scalar_lea.hbm %s4864_s14, 2048 }
 0xd4b   : > { %p3838_p9 = scmp.ne.s32.totalorder %s4766_s29, %s3837_s26  ;;  %p3842_p7 = scmp.lt.u32.totalorder %s4766_s29, %s4864_s14 }
 0xd4c   : > { %p3843_p12 = scmp.lt.u32.totalorder %s3841_s18, %s3837_s26  ;;  %p3845_p1 = scmp.lt.u32.totalorder %s3837_s26, %s4766_s29 }
 0xd4d   : > { %p3839_p13 = pnand %p3838_p9, %p4124_p5 }
 0xd4e   : > { %p3844_p2 = por %p3843_p12, %p3842_p7 }
 0xd4f   : > { %p3840_p11 = pneg %p3839_p13 }
 0xd50   : > { %p3846_p4 = por %p3845_p1, %p3844_p2 }
 0xd52   : > { %p3847_p0 = pnand %p3846_p4, %p3840_p11 }
 0xd54   : > { %3850 = shalt.err (!%p3847_p0)
}
 0xd55   : > { %s3925_s8 = smov 128  }
 0xd56   : > { %3402 = dma.vmem_to_hbm [thread:$0]  (%p4124_p5), %s4769_s19, 1024, %s4766_s29, %s2848_s13, %s3925_s8, %s3925_s8, %s3921_s25  }
 0xd57 PF: > { %s4865_s30 = sld [smem:[#allocation17_spill]]  ;;  %s4866_s16 = sld [smem:[#allocation18_spill]] }
 0xd58   : > { %p4868_p6 = scmp.ge.s32.totalorder %s3901_s12, 2 }
 0xd5d   : > { %s2877_s21 = sand.u32 1, %s4865_s30   ;;  %p4867_p8 = scmp.ne.s32.totalorder %s4866_s16, 0 }
 0xd5e   : > { %s2878_s28 = scalar_lea.sflag [#allocation4], %s2877_s21 }
 0xd5f   : > { %p3422_p10 = pnand %p4868_p6, %p4867_p8 }
 0xd61   : > { %3884 = dma.done.wait (!%p3422_p10), %s2878_s28, 1024  }
 0xd62   : > { %3886 = vsyncadd (!%p3422_p10), %s2878_s28, 4294966272  ;;  %s4869_s20 = sld [smem:[#allocation19_spill]]  ;;  %p26_p3 = scmp.ge.s32.totalorder %s4110_s9, 4  }
 0xd63   : > { %s4870_s30 = smov %s3893_s10  ;;  %s4871_s10 = smov %s3897_s11 }
 0xd64   : > { %s4873_s12 = smov %s4110_s9  ;;  %28 = sbr.rel (!%p26_p3) target bundleno = 14 (0xe), region = 129 }
 0xd68   : > { %s4872_s11 = smov %s4869_s20 }
 0xd6b   :  { %2883 = vsyncpa [#allocation3], 1 }
 0xd6c   :  { %2885 = vsyncpa [#allocation3 + $0x1], 1 }
 0xd6d   :  { %2886 = vsyncpa [#allocation6], 1 }
 0xd6e   :  { %2888 = vsyncpa [#allocation6 + $0x1], 1 }
 0xd6f   :  { %2889 = vsyncpa [#allocation9], 1 }
 0xd70   :  { %2890 = vsyncpa [#allocation4], 1 }
 0xd71   :  { %2892 = vsyncpa [#allocation4 + $0x1], 1 }

</bundles_post_ra>
